<compile_context>
chip_gen: v7x
topology: tpu7x:2x2x1
jax: 0.10.0
libtpu: 0.0.40
codegen_flags: <defaults>
</compile_context>

<pallas_src>
import functools

import jax
import jax.numpy as jnp
import numpy as np
from jax import lax
from jax.experimental import pallas as pl
from jax.experimental.pallas import tpu as pltpu

_PAD_ALIGN = 8  # sublane alignment for the scratch interior

# Tap offsets (dy, dx) relative to the output pixel, in the (possibly phase-
# decomposed) image grid.  Weight packing below follows the same ordering.
TAPS_3X3 = tuple((dy, dx) for dy in (-1, 0, 1) for dx in (-1, 0, 1))
TAPS_S2D = ((-1, -1), (-1, 0), (0, -1), (0, 0))   # stride-2 3x3 after space-to-depth


def _round_up(x, m):
    return ((x + m - 1) // m) * m


# ----------------------------------------------------------------------------
# Fused kernel:  relu(x*scale+bias) -> multi-tap conv  [+ fused 1x1 shortcut]
#                                                      [+ fused residual add]
# Everything is 2-D (rows, channels); processes `Nb` images per grid step.
# ----------------------------------------------------------------------------
def _fused_conv_kernel(x_ref, w_ref, s_ref, b_ref, *rest,
                       taps, W, int_off, cin_sc, has_sc, has_res, res_preact):
    taps = tuple(taps)
    need_pad = any(t != (0, 0) for t in taps)
    need_mask = any(dx != 0 for _, dx in taps)

    rest = list(rest)
    cm_ref = rest.pop(0) if need_mask else None            # (2, HW, 1) edge masks
    wsc_ref = rest.pop(0) if has_sc else None               # (cin_sc, Cout_sc)
    r_ref = rest.pop(0) if has_res else None                # (Nb, HW, Cout) residual
    if has_res and res_preact:
        rs_ref = rest.pop(0)                                 # (1, Cout) folded-BN scale
        rb_ref = rest.pop(0)                                 # (1, Cout) folded-BN bias
    else:
        rs_ref = rb_ref = None
    o_ref = rest.pop(0)                                      # (Nb, HW, Cout)
    sc_ref = rest.pop(0) if has_sc else None                 # (Nb, HW, Cout_sc)
    xp_ref = rest.pop(0) if need_pad else None               # padded f32 scratch

    Nb, HW, Cin = x_ref.shape
    Cout = o_ref.shape[2]

    # Resident small operands: load once per grid step.
    scale = s_ref[...]
    bias = b_ref[...]
    wsc = wsc_ref[...] if has_sc else None
    lmask = cm_ref[0] if need_mask else None                 # zero at column 0
    rmask = cm_ref[1] if need_mask else None                 # zero at column W-1
    rs = rs_ref[...] if rs_ref is not None else None
    rb = rb_ref[...] if rb_ref is not None else None

    if need_pad:
        # Zero ONLY the halo; the interior is fully overwritten for every image.
        rows = xp_ref.shape[0]
        tail = rows - (int_off + HW)
        xp_ref[0:int_off, :] = jnp.zeros((int_off, Cin), xp_ref.dtype)
        xp_ref[int_off + HW:rows, :] = jnp.zeros((tail, Cin), xp_ref.dtype)

    for i in range(Nb):  # static unroll: Nb images per grid step
        # Folded-BN pre-activation relu(x*scale + bias): f32 on the VPU.
        a = jnp.maximum(x_ref[i].astype(jnp.float32) * scale + bias, 0.0)

        if has_sc:
            # Fused 1x1 projection shortcut (for stride-2 blocks this is the
            # (0,0)-phase channel slice == x[::2, ::2] pre-activated).
            sc = jnp.dot(a[:, :cin_sc].astype(jnp.bfloat16), wsc,
                         preferred_element_type=jnp.float32)
            sc_ref[i] = sc.astype(sc_ref.dtype)

        if need_pad:
            # Interior store AFTER the pre-activation so the conv sees exact
            # zeros in the padding (matches F.conv2d zero padding of the
            # pre-activated tensor).  Scratch is VMEM-only.
            xp_ref[int_off:int_off + HW, :] = a

            # One MXU dot per tap; bf16 inputs, f32 accumulation, grouped by the
            # tap's dx so the flatten wrap-around is cancelled with 2 (HW,Cout)
            # multiplies instead of per-tap (HW,Cin) multiplies.
            group = {}
            for t, (dy, dx) in enumerate(taps):
                start = int_off + dy * W + dx
                patch = xp_ref[start:start + HW, :].astype(jnp.bfloat16)
                d = jnp.dot(patch, w_ref[t], preferred_element_type=jnp.float32)
                group[dx] = d if dx not in group else group[dx] + d
            acc = group.get(0)
            if acc is None:
                acc = jnp.zeros((HW, Cout), jnp.float32)
            if -1 in group:
                acc = acc + lmask * group[-1]
            if 1 in group:
                acc = acc + rmask * group[1]
        else:
            acc = jnp.dot(a.astype(jnp.bfloat16), w_ref[0],
                          preferred_element_type=jnp.float32)

        if has_res:
            r = r_ref[i].astype(jnp.float32)
            if res_preact:
                # Identity shortcut of PreActBlock is relu(bn1(x)); recompute it
                # here (cheap VPU work) instead of round-tripping through HBM.
                r = jnp.maximum(r * rs + rb, 0.0)
            acc = acc + r

        o_ref[i] = acc.astype(o_ref.dtype)


# ----------------------------------------------------------------------------
# pallas_call wrapper
# ----------------------------------------------------------------------------
def _fused_conv(x2, scale, bias, w_taps, *, taps, W,
                w_sc=None, residual=None, res_affine=None,
                out_dtype=jnp.bfloat16, sc_dtype=jnp.bfloat16,
                images_per_step=4):
    """relu(x*scale+bias) -> multi-tap conv (+fused 1x1 shortcut, +residual).

    x2 is (N, H*W, Cin) flattened NHWC.  `taps` are (dy, dx) offsets in the
    flattened image grid of width W.
    """
    N, HW, Cin = x2.shape
    T, Cin_w, Cout = w_taps.shape
    assert T == len(taps) and Cin_w == Cin and HW % W == 0

    need_pad = any(t != (0, 0) for t in taps)
    need_mask = any(dx != 0 for _, dx in taps)
    int_off = _round_up(W + 1, _PAD_ALIGN)        # interior start (aligned store)

    # Images per grid step: amortizes per-step overhead / enlarges DMAs.
    nb = max(d for d in range(1, min(images_per_step, N) + 1) if N % d == 0)
    grid = (N // nb,)

    args = [x2,
            w_taps,
            scale.reshape(1, Cin).astype(jnp.float32),
            bias.reshape(1, Cin).astype(jnp.float32)]
    in_specs = [
        pl.BlockSpec((nb, HW, Cin), lambda n: (n, 0, 0)),
        # constant index_maps: resident in VMEM for the whole batch grid
        pl.BlockSpec((T, Cin, Cout), lambda n: (0, 0, 0)),
        pl.BlockSpec((1, Cin), lambda n: (0, 0)),
        pl.BlockSpec((1, Cin), lambda n: (0, 0)),
    ]

    if need_mask:
        q = np.arange(HW, dtype=np.int64) % W
        cm = np.stack([(q >= 1), (q <= W - 2)]).astype(np.float32)
        args.append(jnp.asarray(cm.reshape(2, HW, 1)))
        in_specs.append(pl.BlockSpec((2, HW, 1), lambda n: (0, 0, 0)))

    has_sc = w_sc is not None
    cin_sc = cout_sc = 0
    if has_sc:
        cin_sc, cout_sc = w_sc.shape
        args.append(w_sc)
        in_specs.append(pl.BlockSpec((cin_sc, cout_sc), lambda n: (0, 0)))

    has_res = residual is not None
    res_preact = res_affine is not None
    if has_res:
        assert residual.shape == (N, HW, Cout)
        args.append(residual)
        in_specs.append(pl.BlockSpec((nb, HW, Cout), lambda n: (n, 0, 0)))
        if res_preact:
            rs, rb = res_affine
            args += [rs.reshape(1, Cout).astype(jnp.float32),
                     rb.reshape(1, Cout).astype(jnp.float32)]
            in_specs += [pl.BlockSpec((1, Cout), lambda n: (0, 0)),
                         pl.BlockSpec((1, Cout), lambda n: (0, 0))]

    out_shape = [jax.ShapeDtypeStruct((N, HW, Cout), out_dtype)]
    out_specs = [pl.BlockSpec((nb, HW, Cout), lambda n: (n, 0, 0))]
    if has_sc:
        out_shape.append(jax.ShapeDtypeStruct((N, HW, cout_sc), sc_dtype))
        out_specs.append(pl.BlockSpec((nb, HW, cout_sc), lambda n: (n, 0, 0)))

    scratch_shapes = []
    if need_pad:
        rows = int_off + HW + W + _PAD_ALIGN      # top halo + interior + bottom halo
        scratch_shapes.append(pltpu.VMEM((rows, Cin), jnp.float32))

    kernel = functools.partial(
        _fused_conv_kernel, taps=tuple(taps), W=W, int_off=int_off,
        cin_sc=cin_sc, has_sc=has_sc, has_res=has_res, res_preact=res_preact)

    outs = pl.pallas_call(
        kernel,
        out_shape=tuple(out_shape) if has_sc else out_shape[0],
        grid=grid,
        in_specs=in_specs,
        out_specs=tuple(out_specs) if has_sc else out_specs[0],
        scratch_shapes=scratch_shapes,
        compiler_params=pltpu.CompilerParams(
            dimension_semantics=("parallel",),            # batch across TCs
            vmem_limit_bytes=64 * 1024 * 1024),           # v5e default is 16 MiB
    )(*args)
    return outs


# ----------------------------------------------------------------------------
# PreActBlock forward (NHWC in / NHWC out)
# ----------------------------------------------------------------------------
def preact_block(x_nhwc, p, out_dtype=jnp.float32):
    stride = p["stride"]
    s1, b1 = p["bn1"]
    s2, b2 = p["bn2"]
    N, H, W, Cin = x_nhwc.shape
    planes = p["w2"].shape[2]

    if stride == 1:
        Ho, Wo = H, W
        x2 = x_nhwc.reshape(N, H * W, Cin)
        if "w_sc" in p:
            # conv1(relu(bn1(x))) + fused 1x1 projection shortcut (two outputs)
            h, sc = _fused_conv(x2, s1, b1, p["w1"], taps=TAPS_3X3, W=W,
                                w_sc=p["w_sc"], out_dtype=jnp.bfloat16)
            res, res_aff = sc, None
        else:
            h = _fused_conv(x2, s1, b1, p["w1"], taps=TAPS_3X3, W=W,
                            out_dtype=jnp.bfloat16)
            # identity shortcut = relu(bn1(x)); recomputed in conv2's epilogue
            res, res_aff = x2, (s1, b1)
    else:
        assert stride == 2 and H % 2 == 0 and W % 2 == 0
        Ho, Wo = H // 2, W // 2
        # Space-to-depth(2): the stride-2 3x3 conv becomes a stride-1 conv with
        # taps in {-1,0}^2 over the 4x-channel phase image (exact).
        xs = jnp.transpose(x_nhwc.reshape(N, Ho, 2, Wo, 2, Cin),
                           (0, 1, 3, 2, 4, 5)).reshape(N, Ho * Wo, 4 * Cin)
        h, sc = _fused_conv(xs, jnp.tile(s1, 4), jnp.tile(b1, 4),
                            p["w1_s2d"], taps=TAPS_S2D, W=Wo,
                            w_sc=p["w_sc"], out_dtype=jnp.bfloat16)
        res, res_aff = sc, None

    # conv2(relu(bn2(h))) + shortcut   (no trailing relu)
    out = _fused_conv(h, s2, b2, p["w2"], taps=TAPS_3X3, W=Wo,
                      residual=res, res_affine=res_aff, out_dtype=out_dtype)
    return out.reshape(N, Ho, Wo, planes)


# ----------------------------------------------------------------------------
# Parameters (synthetic, deterministic) + packing
# ----------------------------------------------------------------------------
def fold_bn(gamma, beta, mean, var, eps=1e-5):
    scale = gamma / jnp.sqrt(var + eps)
    return scale, beta - mean * scale


def pack_conv3x3(w_oihw):
    """(Cout, Cin, 3, 3) f32 -> (9, Cin, Cout) bf16, tap order == TAPS_3X3."""
    cout, cin, kh, kw = w_oihw.shape
    w = jnp.transpose(w_oihw, (2, 3, 1, 0)).reshape(kh * kw, cin, cout)
    return w.astype(jnp.bfloat16)


def pack_conv1x1(w_oihw):
    """(Cout, Cin, 1, 1) f32 -> (Cin, Cout) bf16."""
    return jnp.transpose(w_oihw[:, :, 0, 0], (1, 0)).astype(jnp.bfloat16)


def pack_conv3x3_s2d(w_oihw):
    """Stride-2 3x3 conv weight -> space-to-depth form (4, 4*Cin, Cout) bf16.

    Channel order of the s2d input is (py, px, c) with c fastest; tap order is
    TAPS_S2D; (tap, phase) combinations that fall outside the 3x3 kernel get
    zero weights.
    """
    cout, cin, _, _ = w_oihw.shape
    w_hwio = np.asarray(jnp.transpose(w_oihw, (2, 3, 1, 0)), dtype=np.float32)
    wt = np.zeros((len(TAPS_S2D), 4 * cin, cout), np.float32)
    for t, (ky, kx) in enumerate(TAPS_S2D):
        for py in (0, 1):
            for px in (0, 1):
                dy = 2 * ky + py + 1
                dx = 2 * kx + px + 1
                if 0 <= dy < 3 and 0 <= dx < 3:
                    c0 = (py * 2 + px) * cin
                    wt[t, c0:c0 + cin, :] = w_hwio[dy, dx]
    return jnp.asarray(wt, dtype=jnp.bfloat16)


def init_preact_block(key, in_planes, planes, stride=1):
    ks = jax.random.split(key, 8)

    def conv_w(k, cout, cin, ksz):
        fan_in = cin * ksz * ksz
        return (jax.random.normal(k, (cout, cin, ksz, ksz), jnp.float32)
                * float(np.sqrt(2.0 / fan_in)))

    def bn(k, c):
        k1, k2, k3, k4 = jax.random.split(k, 4)
        gamma = 1.0 + 0.1 * jax.random.normal(k1, (c,), jnp.float32)
        beta = 0.1 * jax.random.normal(k2, (c,), jnp.float32)
        mean = 0.1 * jax.random.normal(k3, (c,), jnp.float32)
        var = 1.0 + 0.1 * jax.random.uniform(k4, (c,), jnp.float32)
        return fold_bn(gamma, beta, mean, var)

    p = {
        "stride": stride,
        "bn1": bn(ks[0], in_planes),
        "bn2": bn(ks[1], planes),
        "conv1_oihw": conv_w(ks[2], planes, in_planes, 3),
        "conv2_oihw": conv_w(ks[3], planes, planes, 3),
    }
    if stride != 1 or in_planes != planes:
        p["sc_oihw"] = conv_w(ks[4], planes, in_planes, 1)
        p["w_sc"] = pack_conv1x1(p["sc_oihw"])
    # Pack conv weights ONCE at init (bf16, tap-major): no per-call casts.
    if stride == 1:
        p["w1"] = pack_conv3x3(p["conv1_oihw"])
    else:
        p["w1_s2d"] = pack_conv3x3_s2d(p["conv1_oihw"])
    p["w2"] = pack_conv3x3(p["conv2_oihw"])
    return p


# ----------------------------------------------------------------------------
# Pure-JAX f32 reference (identical PreActBlock semantics)
# ----------------------------------------------------------------------------
def _ref_conv(a, w_oihw, stride, pad):
    return lax.conv_general_dilated(
        a, jnp.transpose(w_oihw, (2, 3, 1, 0)),
        window_strides=(stride, stride),
        padding=[(pad, pad), (pad, pad)],
        dimension_numbers=("NHWC", "HWIO", "NHWC"),
        precision=lax.Precision.HIGHEST)


def ref_preact_block(x_nhwc, p):
    stride = p["stride"]
    s1, b1 = p["bn1"]
    s2, b2 = p["bn2"]
    a = jnp.maximum(x_nhwc * s1 + b1, 0.0)
    sc = _ref_conv(a, p["sc_oihw"], stride, 0) if "sc_oihw" in p else a
    h = _ref_conv(a, p["conv1_oihw"], stride, 1)
    a2 = jnp.maximum(h * s2 + b2, 0.0)
    return _ref_conv(a2, p["conv2_oihw"], 1, 1) + sc


# ----------------------------------------------------------------------------
# Main
# ----------------------------------------------------------------------------
if __name__ == "__main__":
    key = jax.random.PRNGKey(0)
    kx, kb1, kb2, kb3 = jax.random.split(key, 4)

    # Small deterministic NCHW input (PyTorch convention).
    x_nchw = jax.random.normal(kx, (2, 4, 16, 16), jnp.float32)

    # Three PreActBlock configs covering every code path:
    #   (4 -> 8,  stride 1): projection shortcut fused into conv1's kernel
    #   (8 -> 8,  stride 1): identity shortcut recomputed in conv2's epilogue
    #   (8 -> 16, stride 2): stride folded via space-to-depth + fused projection
    blocks = [
        init_preact_block(kb1, in_planes=4, planes=8, stride=1),
        init_preact_block(kb2, in_planes=8, planes=8, stride=1),
        init_preact_block(kb3, in_planes=8, planes=16, stride=2),
    ]

    x = jnp.transpose(x_nchw, (0, 2, 3, 1))          # NHWC internally
    out, ref = x, x.astype(jnp.float32)
    for i, blk in enumerate(blocks):
        last = (i == len(blocks) - 1)
        out = preact_block(out, blk,
                           out_dtype=jnp.float32 if last else jnp.bfloat16)
        ref = ref_preact_block(ref, blk)

    out = jnp.transpose(out, (0, 3, 1, 2))           # back to NCHW
    ref = jnp.transpose(ref, (0, 3, 1, 2))
    out = jax.block_until_ready(out)

    assert out.shape == (2, 16, 8, 8), out.shape
    assert bool(jnp.all(jnp.isfinite(out)))
    np.testing.assert_allclose(np.asarray(out, dtype=np.float32),
                               np.asarray(ref, dtype=np.float32),
                               rtol=1e-1, atol=1e-1)
    print("KERNEL_OK")
</pallas_src>

<mosaic_0001>
module attributes {stable_mosaic.version = 11 : i64} {
  func.func @_fused_conv_kernel(%arg0: i32, %arg1: memref<2x256x4xf32, #tpu.memory_space<vmem>>, %arg2: memref<9x4x8xbf16, #tpu.memory_space<vmem>>, %arg3: memref<1x4xf32, #tpu.memory_space<vmem>>, %arg4: memref<1x4xf32, #tpu.memory_space<vmem>>, %arg5: memref<2x256x1xf32, #tpu.memory_space<vmem>>, %arg6: memref<4x8xbf16, #tpu.memory_space<vmem>>, %arg7: memref<2x256x8xbf16, #tpu.memory_space<vmem>>, %arg8: memref<2x256x8xbf16, #tpu.memory_space<vmem>>, %arg9: memref<304x4xf32, #tpu.memory_space<vmem>>) attributes {dimension_semantics = [#tpu.dimension_semantics<parallel>], iteration_bounds = array<i64: 1>, scalar_prefetch = 0 : i64, scratch_operands = 1 : i64, tpu.core_type = #tpu.core_type<tc>, window_params = [{transform_indices = @transform_0, window_bounds = array<i64: 2, 256, 4>}, {pipeline_mode = #tpu.pipeline_mode<synchronous>, transform_indices = @transform_1, window_bounds = array<i64: 9, 4, 8>}, {pipeline_mode = #tpu.pipeline_mode<synchronous>, transform_indices = @transform_2, window_bounds = array<i64: 1, 4>}, {pipeline_mode = #tpu.pipeline_mode<synchronous>, transform_indices = @transform_3, window_bounds = array<i64: 1, 4>}, {pipeline_mode = #tpu.pipeline_mode<synchronous>, transform_indices = @transform_4, window_bounds = array<i64: 2, 256, 1>}, {pipeline_mode = #tpu.pipeline_mode<synchronous>, transform_indices = @transform_5, window_bounds = array<i64: 4, 8>}, {transform_indices = @transform_6, window_bounds = array<i64: 2, 256, 8>}, {transform_indices = @transform_7, window_bounds = array<i64: 2, 256, 8>}]} {
    %c0 = arith.constant 0 : index
    %c0_0 = arith.constant 0 : index
    %0 = vector.load %arg3[%c0, %c0_0] : memref<1x4xf32, #tpu.memory_space<vmem>>, vector<1x4xf32>
    %c0_1 = arith.constant 0 : index
    %c0_2 = arith.constant 0 : index
    %1 = vector.load %arg4[%c0_1, %c0_2] : memref<1x4xf32, #tpu.memory_space<vmem>>, vector<1x4xf32>
    %c0_3 = arith.constant 0 : index
    %c0_4 = arith.constant 0 : index
    %2 = vector.load %arg6[%c0_3, %c0_4] : memref<4x8xbf16, #tpu.memory_space<vmem>>, vector<4x8xbf16>
    %c0_5 = arith.constant 0 : index
    %c0_6 = arith.constant 0 : index
    %c0_7 = arith.constant 0 : index
    %3 = vector.load %arg5[%c0_5, %c0_6, %c0_7] : memref<2x256x1xf32, #tpu.memory_space<vmem>>, vector<1x256x1xf32>
    %4 = vector.shape_cast %3 : vector<1x256x1xf32> to vector<256x1xf32>
    %c1 = arith.constant 1 : index
    %c0_8 = arith.constant 0 : index
    %c0_9 = arith.constant 0 : index
    %5 = vector.load %arg5[%c1, %c0_8, %c0_9] : memref<2x256x1xf32, #tpu.memory_space<vmem>>, vector<1x256x1xf32>
    %6 = vector.shape_cast %5 : vector<1x256x1xf32> to vector<256x1xf32>
    %cst = arith.constant 0.000000e+00 : f32
    %7 = vector.broadcast %cst : f32 to vector<24x4xf32>
    %c0_10 = arith.constant 0 : index
    %c0_11 = arith.constant 0 : index
    %8 = vector.load %arg9[%c0_10, %c0_11] : memref<304x4xf32, #tpu.memory_space<vmem>>, vector<24x4xf32>
    tpu.vector_store %arg9[%c0_10, %c0_11], %7 {strides = array<i32>} : memref<304x4xf32, #tpu.memory_space<vmem>>, vector<24x4xf32>,
    %cst_12 = arith.constant 0.000000e+00 : f32
    %9 = vector.broadcast %cst_12 : f32 to vector<24x4xf32>
    %c280 = arith.constant 280 : index
    %c0_13 = arith.constant 0 : index
    %10 = vector.load %arg9[%c280, %c0_13] : memref<304x4xf32, #tpu.memory_space<vmem>>, vector<24x4xf32>
    tpu.vector_store %arg9[%c280, %c0_13], %9 {strides = array<i32>} : memref<304x4xf32, #tpu.memory_space<vmem>>, vector<24x4xf32>,
    %c0_14 = arith.constant 0 : index
    %c0_15 = arith.constant 0 : index
    %c0_16 = arith.constant 0 : index
    %11 = vector.load %arg1[%c0_14, %c0_15, %c0_16] : memref<2x256x4xf32, #tpu.memory_space<vmem>>, vector<1x256x4xf32>
    %12 = vector.shape_cast %11 : vector<1x256x4xf32> to vector<256x4xf32>
    %13 = vector.broadcast %0 : vector<1x4xf32> to vector<256x4xf32>
    %14 = arith.mulf %12, %13 : vector<256x4xf32>
    %15 = vector.broadcast %1 : vector<1x4xf32> to vector<256x4xf32>
    %16 = arith.addf %14, %15 : vector<256x4xf32>
    %cst_17 = arith.constant 0.000000e+00 : f32
    %17 = vector.broadcast %cst_17 : f32 to vector<256x4xf32>
    %18 = arith.maximumf %16, %17 : vector<256x4xf32>
    %19 = arith.truncf %18 : vector<256x4xf32> to vector<256x4xbf16>
    %cst_18 = arith.constant dense<0.000000e+00> : vector<256x8xf32>
    %20 = tpu.matmul %19, %2, %cst_18 {dimension_numbers = #tpu.dot_dimension_numbers<[1], [0], [0], [1], [0, 0, 1, 1], [], []>} : vector<256x4xbf16>, vector<4x8xbf16>, vector<256x8xf32> -> vector<256x8xf32>
    %21 = arith.truncf %20 : vector<256x8xf32> to vector<256x8xbf16>
    %c0_19 = arith.constant 0 : index
    %c0_20 = arith.constant 0 : index
    %c0_21 = arith.constant 0 : index
    %22 = vector.load %arg8[%c0_19, %c0_20, %c0_21] : memref<2x256x8xbf16, #tpu.memory_space<vmem>>, vector<1x256x8xbf16>
    %23 = vector.shape_cast %22 : vector<1x256x8xbf16> to vector<256x8xbf16>
    %24 = vector.shape_cast %21 : vector<256x8xbf16> to vector<1x256x8xbf16>
    tpu.vector_store %arg8[%c0_19, %c0_20, %c0_21], %24 {strides = array<i32>} : memref<2x256x8xbf16, #tpu.memory_space<vmem>>, vector<1x256x8xbf16>,
    %c24 = arith.constant 24 : index
    %c0_22 = arith.constant 0 : index
    %25 = vector.load %arg9[%c24, %c0_22] : memref<304x4xf32, #tpu.memory_space<vmem>>, vector<256x4xf32>
    tpu.vector_store %arg9[%c24, %c0_22], %18 {strides = array<i32>} : memref<304x4xf32, #tpu.memory_space<vmem>>, vector<256x4xf32>,
    %c7 = arith.constant 7 : index
    %c0_23 = arith.constant 0 : index
    %26 = vector.load %arg9[%c7, %c0_23] : memref<304x4xf32, #tpu.memory_space<vmem>>, vector<256x4xf32>
    %27 = arith.truncf %26 : vector<256x4xf32> to vector<256x4xbf16>
    %c0_24 = arith.constant 0 : index
    %c0_25 = arith.constant 0 : index
    %c0_26 = arith.constant 0 : index
    %28 = vector.load %arg2[%c0_24, %c0_25, %c0_26] : memref<9x4x8xbf16, #tpu.memory_space<vmem>>, vector<1x4x8xbf16>
    %29 = vector.shape_cast %28 : vector<1x4x8xbf16> to vector<4x8xbf16>
    %cst_27 = arith.constant dense<0.000000e+00> : vector<256x8xf32>
    %30 = tpu.matmul %27, %29, %cst_27 {dimension_numbers = #tpu.dot_dimension_numbers<[1], [0], [0], [1], [0, 0, 1, 1], [], []>} : vector<256x4xbf16>, vector<4x8xbf16>, vector<256x8xf32> -> vector<256x8xf32>
    %c8 = arith.constant 8 : index
    %c0_28 = arith.constant 0 : index
    %31 = vector.load %arg9[%c8, %c0_28] : memref<304x4xf32, #tpu.memory_space<vmem>>, vector<256x4xf32>
    %32 = arith.truncf %31 : vector<256x4xf32> to vector<256x4xbf16>
    %c1_29 = arith.constant 1 : index
    %c0_30 = arith.constant 0 : index
    %c0_31 = arith.constant 0 : index
    %33 = vector.load %arg2[%c1_29, %c0_30, %c0_31] : memref<9x4x8xbf16, #tpu.memory_space<vmem>>, vector<1x4x8xbf16>
    %34 = vector.shape_cast %33 : vector<1x4x8xbf16> to vector<4x8xbf16>
    %cst_32 = arith.constant dense<0.000000e+00> : vector<256x8xf32>
    %35 = tpu.matmul %32, %34, %cst_32 {dimension_numbers = #tpu.dot_dimension_numbers<[1], [0], [0], [1], [0, 0, 1, 1], [], []>} : vector<256x4xbf16>, vector<4x8xbf16>, vector<256x8xf32> -> vector<256x8xf32>
    %c9 = arith.constant 9 : index
    %c0_33 = arith.constant 0 : index
    %36 = vector.load %arg9[%c9, %c0_33] : memref<304x4xf32, #tpu.memory_space<vmem>>, vector<256x4xf32>
    %37 = arith.truncf %36 : vector<256x4xf32> to vector<256x4xbf16>
    %c2 = arith.constant 2 : index
    %c0_34 = arith.constant 0 : index
    %c0_35 = arith.constant 0 : index
    %38 = vector.load %arg2[%c2, %c0_34, %c0_35] : memref<9x4x8xbf16, #tpu.memory_space<vmem>>, vector<1x4x8xbf16>
    %39 = vector.shape_cast %38 : vector<1x4x8xbf16> to vector<4x8xbf16>
    %cst_36 = arith.constant dense<0.000000e+00> : vector<256x8xf32>
    %40 = tpu.matmul %37, %39, %cst_36 {dimension_numbers = #tpu.dot_dimension_numbers<[1], [0], [0], [1], [0, 0, 1, 1], [], []>} : vector<256x4xbf16>, vector<4x8xbf16>, vector<256x8xf32> -> vector<256x8xf32>
    %c23 = arith.constant 23 : index
    %c0_37 = arith.constant 0 : index
    %41 = vector.load %arg9[%c23, %c0_37] : memref<304x4xf32, #tpu.memory_space<vmem>>, vector<256x4xf32>
    %42 = arith.truncf %41 : vector<256x4xf32> to vector<256x4xbf16>
    %c3 = arith.constant 3 : index
    %c0_38 = arith.constant 0 : index
    %c0_39 = arith.constant 0 : index
    %43 = vector.load %arg2[%c3, %c0_38, %c0_39] : memref<9x4x8xbf16, #tpu.memory_space<vmem>>, vector<1x4x8xbf16>
    %44 = vector.shape_cast %43 : vector<1x4x8xbf16> to vector<4x8xbf16>
    %cst_40 = arith.constant dense<0.000000e+00> : vector<256x8xf32>
    %45 = tpu.matmul %42, %44, %cst_40 {dimension_numbers = #tpu.dot_dimension_numbers<[1], [0], [0], [1], [0, 0, 1, 1], [], []>} : vector<256x4xbf16>, vector<4x8xbf16>, vector<256x8xf32> -> vector<256x8xf32>
    %46 = arith.addf %30, %45 : vector<256x8xf32>
    %c24_41 = arith.constant 24 : index
    %c0_42 = arith.constant 0 : index
    %47 = vector.load %arg9[%c24_41, %c0_42] : memref<304x4xf32, #tpu.memory_space<vmem>>, vector<256x4xf32>
    %48 = arith.truncf %47 : vector<256x4xf32> to vector<256x4xbf16>
    %c4 = arith.constant 4 : index
    %c0_43 = arith.constant 0 : index
    %c0_44 = arith.constant 0 : index
    %49 = vector.load %arg2[%c4, %c0_43, %c0_44] : memref<9x4x8xbf16, #tpu.memory_space<vmem>>, vector<1x4x8xbf16>
    %50 = vector.shape_cast %49 : vector<1x4x8xbf16> to vector<4x8xbf16>
    %cst_45 = arith.constant dense<0.000000e+00> : vector<256x8xf32>
    %51 = tpu.matmul %48, %50, %cst_45 {dimension_numbers = #tpu.dot_dimension_numbers<[1], [0], [0], [1], [0, 0, 1, 1], [], []>} : vector<256x4xbf16>, vector<4x8xbf16>, vector<256x8xf32> -> vector<256x8xf32>
    %52 = arith.addf %35, %51 : vector<256x8xf32>
    %c25 = arith.constant 25 : index
    %c0_46 = arith.constant 0 : index
    %53 = vector.load %arg9[%c25, %c0_46] : memref<304x4xf32, #tpu.memory_space<vmem>>, vector<256x4xf32>
    %54 = arith.truncf %53 : vector<256x4xf32> to vector<256x4xbf16>
    %c5 = arith.constant 5 : index
    %c0_47 = arith.constant 0 : index
    %c0_48 = arith.constant 0 : index
    %55 = vector.load %arg2[%c5, %c0_47, %c0_48] : memref<9x4x8xbf16, #tpu.memory_space<vmem>>, vector<1x4x8xbf16>
    %56 = vector.shape_cast %55 : vector<1x4x8xbf16> to vector<4x8xbf16>
    %cst_49 = arith.constant dense<0.000000e+00> : vector<256x8xf32>
    %57 = tpu.matmul %54, %56, %cst_49 {dimension_numbers = #tpu.dot_dimension_numbers<[1], [0], [0], [1], [0, 0, 1, 1], [], []>} : vector<256x4xbf16>, vector<4x8xbf16>, vector<256x8xf32> -> vector<256x8xf32>
    %58 = arith.addf %40, %57 : vector<256x8xf32>
    %c39 = arith.constant 39 : index
    %c0_50 = arith.constant 0 : index
    %59 = vector.load %arg9[%c39, %c0_50] : memref<304x4xf32, #tpu.memory_space<vmem>>, vector<256x4xf32>
    %60 = arith.truncf %59 : vector<256x4xf32> to vector<256x4xbf16>
    %c6 = arith.constant 6 : index
    %c0_51 = arith.constant 0 : index
    %c0_52 = arith.constant 0 : index
    %61 = vector.load %arg2[%c6, %c0_51, %c0_52] : memref<9x4x8xbf16, #tpu.memory_space<vmem>>, vector<1x4x8xbf16>
    %62 = vector.shape_cast %61 : vector<1x4x8xbf16> to vector<4x8xbf16>
    %cst_53 = arith.constant dense<0.000000e+00> : vector<256x8xf32>
    %63 = tpu.matmul %60, %62, %cst_53 {dimension_numbers = #tpu.dot_dimension_numbers<[1], [0], [0], [1], [0, 0, 1, 1], [], []>} : vector<256x4xbf16>, vector<4x8xbf16>, vector<256x8xf32> -> vector<256x8xf32>
    %64 = arith.addf %46, %63 : vector<256x8xf32>
    %c40 = arith.constant 40 : index
    %c0_54 = arith.constant 0 : index
    %65 = vector.load %arg9[%c40, %c0_54] : memref<304x4xf32, #tpu.memory_space<vmem>>, vector<256x4xf32>
    %66 = arith.truncf %65 : vector<256x4xf32> to vector<256x4xbf16>
    %c7_55 = arith.constant 7 : index
    %c0_56 = arith.constant 0 : index
    %c0_57 = arith.constant 0 : index
    %67 = vector.load %arg2[%c7_55, %c0_56, %c0_57] : memref<9x4x8xbf16, #tpu.memory_space<vmem>>, vector<1x4x8xbf16>
    %68 = vector.shape_cast %67 : vector<1x4x8xbf16> to vector<4x8xbf16>
    %cst_58 = arith.constant dense<0.000000e+00> : vector<256x8xf32>
    %69 = tpu.matmul %66, %68, %cst_58 {dimension_numbers = #tpu.dot_dimension_numbers<[1], [0], [0], [1], [0, 0, 1, 1], [], []>} : vector<256x4xbf16>, vector<4x8xbf16>, vector<256x8xf32> -> vector<256x8xf32>
    %70 = arith.addf %52, %69 : vector<256x8xf32>
    %c41 = arith.constant 41 : index
    %c0_59 = arith.constant 0 : index
    %71 = vector.load %arg9[%c41, %c0_59] : memref<304x4xf32, #tpu.memory_space<vmem>>, vector<256x4xf32>
    %72 = arith.truncf %71 : vector<256x4xf32> to vector<256x4xbf16>
    %c8_60 = arith.constant 8 : index
    %c0_61 = arith.constant 0 : index
    %c0_62 = arith.constant 0 : index
    %73 = vector.load %arg2[%c8_60, %c0_61, %c0_62] : memref<9x4x8xbf16, #tpu.memory_space<vmem>>, vector<1x4x8xbf16>
    %74 = vector.shape_cast %73 : vector<1x4x8xbf16> to vector<4x8xbf16>
    %cst_63 = arith.constant dense<0.000000e+00> : vector<256x8xf32>
    %75 = tpu.matmul %72, %74, %cst_63 {dimension_numbers = #tpu.dot_dimension_numbers<[1], [0], [0], [1], [0, 0, 1, 1], [], []>} : vector<256x4xbf16>, vector<4x8xbf16>, vector<256x8xf32> -> vector<256x8xf32>
    %76 = arith.addf %58, %75 : vector<256x8xf32>
    %77 = vector.broadcast %4 : vector<256x1xf32> to vector<256x8xf32>
    %78 = arith.mulf %77, %64 : vector<256x8xf32>
    %79 = arith.addf %70, %78 : vector<256x8xf32>
    %80 = vector.broadcast %6 : vector<256x1xf32> to vector<256x8xf32>
    %81 = arith.mulf %80, %76 : vector<256x8xf32>
    %82 = arith.addf %79, %81 : vector<256x8xf32>
    %83 = arith.truncf %82 : vector<256x8xf32> to vector<256x8xbf16>
    %c0_64 = arith.constant 0 : index
    %c0_65 = arith.constant 0 : index
    %c0_66 = arith.constant 0 : index
    %84 = vector.load %arg7[%c0_64, %c0_65, %c0_66] : memref<2x256x8xbf16, #tpu.memory_space<vmem>>, vector<1x256x8xbf16>
    %85 = vector.shape_cast %84 : vector<1x256x8xbf16> to vector<256x8xbf16>
    %86 = vector.shape_cast %83 : vector<256x8xbf16> to vector<1x256x8xbf16>
    tpu.vector_store %arg7[%c0_64, %c0_65, %c0_66], %86 {strides = array<i32>} : memref<2x256x8xbf16, #tpu.memory_space<vmem>>, vector<1x256x8xbf16>,
    %c1_67 = arith.constant 1 : index
    %c0_68 = arith.constant 0 : index
    %c0_69 = arith.constant 0 : index
    %87 = vector.load %arg1[%c1_67, %c0_68, %c0_69] : memref<2x256x4xf32, #tpu.memory_space<vmem>>, vector<1x256x4xf32>
    %88 = vector.shape_cast %87 : vector<1x256x4xf32> to vector<256x4xf32>
    %89 = vector.broadcast %0 : vector<1x4xf32> to vector<256x4xf32>
    %90 = arith.mulf %88, %89 : vector<256x4xf32>
    %91 = vector.broadcast %1 : vector<1x4xf32> to vector<256x4xf32>
    %92 = arith.addf %90, %91 : vector<256x4xf32>
    %cst_70 = arith.constant 0.000000e+00 : f32
    %93 = vector.broadcast %cst_70 : f32 to vector<256x4xf32>
    %94 = arith.maximumf %92, %93 : vector<256x4xf32>
    %95 = arith.truncf %94 : vector<256x4xf32> to vector<256x4xbf16>
    %cst_71 = arith.constant dense<0.000000e+00> : vector<256x8xf32>
    %96 = tpu.matmul %95, %2, %cst_71 {dimension_numbers = #tpu.dot_dimension_numbers<[1], [0], [0], [1], [0, 0, 1, 1], [], []>} : vector<256x4xbf16>, vector<4x8xbf16>, vector<256x8xf32> -> vector<256x8xf32>
    %97 = arith.truncf %96 : vector<256x8xf32> to vector<256x8xbf16>
    %c1_72 = arith.constant 1 : index
    %c0_73 = arith.constant 0 : index
    %c0_74 = arith.constant 0 : index
    %98 = vector.load %arg8[%c1_72, %c0_73, %c0_74] : memref<2x256x8xbf16, #tpu.memory_space<vmem>>, vector<1x256x8xbf16>
    %99 = vector.shape_cast %98 : vector<1x256x8xbf16> to vector<256x8xbf16>
    %100 = vector.shape_cast %97 : vector<256x8xbf16> to vector<1x256x8xbf16>
    tpu.vector_store %arg8[%c1_72, %c0_73, %c0_74], %100 {strides = array<i32>} : memref<2x256x8xbf16, #tpu.memory_space<vmem>>, vector<1x256x8xbf16>,
    %c24_75 = arith.constant 24 : index
    %c0_76 = arith.constant 0 : index
    %101 = vector.load %arg9[%c24_75, %c0_76] : memref<304x4xf32, #tpu.memory_space<vmem>>, vector<256x4xf32>
    tpu.vector_store %arg9[%c24_75, %c0_76], %94 {strides = array<i32>} : memref<304x4xf32, #tpu.memory_space<vmem>>, vector<256x4xf32>,
    %c7_77 = arith.constant 7 : index
    %c0_78 = arith.constant 0 : index
    %102 = vector.load %arg9[%c7_77, %c0_78] : memref<304x4xf32, #tpu.memory_space<vmem>>, vector<256x4xf32>
    %103 = arith.truncf %102 : vector<256x4xf32> to vector<256x4xbf16>
    %c0_79 = arith.constant 0 : index
    %c0_80 = arith.constant 0 : index
    %c0_81 = arith.constant 0 : index
    %104 = vector.load %arg2[%c0_79, %c0_80, %c0_81] : memref<9x4x8xbf16, #tpu.memory_space<vmem>>, vector<1x4x8xbf16>
    %105 = vector.shape_cast %104 : vector<1x4x8xbf16> to vector<4x8xbf16>
    %cst_82 = arith.constant dense<0.000000e+00> : vector<256x8xf32>
    %106 = tpu.matmul %103, %105, %cst_82 {dimension_numbers = #tpu.dot_dimension_numbers<[1], [0], [0], [1], [0, 0, 1, 1], [], []>} : vector<256x4xbf16>, vector<4x8xbf16>, vector<256x8xf32> -> vector<256x8xf32>
    %c8_83 = arith.constant 8 : index
    %c0_84 = arith.constant 0 : index
    %107 = vector.load %arg9[%c8_83, %c0_84] : memref<304x4xf32, #tpu.memory_space<vmem>>, vector<256x4xf32>
    %108 = arith.truncf %107 : vector<256x4xf32> to vector<256x4xbf16>
    %c1_85 = arith.constant 1 : index
    %c0_86 = arith.constant 0 : index
    %c0_87 = arith.constant 0 : index
    %109 = vector.load %arg2[%c1_85, %c0_86, %c0_87] : memref<9x4x8xbf16, #tpu.memory_space<vmem>>, vector<1x4x8xbf16>
    %110 = vector.shape_cast %109 : vector<1x4x8xbf16> to vector<4x8xbf16>
    %cst_88 = arith.constant dense<0.000000e+00> : vector<256x8xf32>
    %111 = tpu.matmul %108, %110, %cst_88 {dimension_numbers = #tpu.dot_dimension_numbers<[1], [0], [0], [1], [0, 0, 1, 1], [], []>} : vector<256x4xbf16>, vector<4x8xbf16>, vector<256x8xf32> -> vector<256x8xf32>
    %c9_89 = arith.constant 9 : index
    %c0_90 = arith.constant 0 : index
    %112 = vector.load %arg9[%c9_89, %c0_90] : memref<304x4xf32, #tpu.memory_space<vmem>>, vector<256x4xf32>
    %113 = arith.truncf %112 : vector<256x4xf32> to vector<256x4xbf16>
    %c2_91 = arith.constant 2 : index
    %c0_92 = arith.constant 0 : index
    %c0_93 = arith.constant 0 : index
    %114 = vector.load %arg2[%c2_91, %c0_92, %c0_93] : memref<9x4x8xbf16, #tpu.memory_space<vmem>>, vector<1x4x8xbf16>
    %115 = vector.shape_cast %114 : vector<1x4x8xbf16> to vector<4x8xbf16>
    %cst_94 = arith.constant dense<0.000000e+00> : vector<256x8xf32>
    %116 = tpu.matmul %113, %115, %cst_94 {dimension_numbers = #tpu.dot_dimension_numbers<[1], [0], [0], [1], [0, 0, 1, 1], [], []>} : vector<256x4xbf16>, vector<4x8xbf16>, vector<256x8xf32> -> vector<256x8xf32>
    %c23_95 = arith.constant 23 : index
    %c0_96 = arith.constant 0 : index
    %117 = vector.load %arg9[%c23_95, %c0_96] : memref<304x4xf32, #tpu.memory_space<vmem>>, vector<256x4xf32>
    %118 = arith.truncf %117 : vector<256x4xf32> to vector<256x4xbf16>
    %c3_97 = arith.constant 3 : index
    %c0_98 = arith.constant 0 : index
    %c0_99 = arith.constant 0 : index
    %119 = vector.load %arg2[%c3_97, %c0_98, %c0_99] : memref<9x4x8xbf16, #tpu.memory_space<vmem>>, vector<1x4x8xbf16>
    %120 = vector.shape_cast %119 : vector<1x4x8xbf16> to vector<4x8xbf16>
    %cst_100 = arith.constant dense<0.000000e+00> : vector<256x8xf32>
    %121 = tpu.matmul %118, %120, %cst_100 {dimension_numbers = #tpu.dot_dimension_numbers<[1], [0], [0], [1], [0, 0, 1, 1], [], []>} : vector<256x4xbf16>, vector<4x8xbf16>, vector<256x8xf32> -> vector<256x8xf32>
    %122 = arith.addf %106, %121 : vector<256x8xf32>
    %c24_101 = arith.constant 24 : index
    %c0_102 = arith.constant 0 : index
    %123 = vector.load %arg9[%c24_101, %c0_102] : memref<304x4xf32, #tpu.memory_space<vmem>>, vector<256x4xf32>
    %124 = arith.truncf %123 : vector<256x4xf32> to vector<256x4xbf16>
    %c4_103 = arith.constant 4 : index
    %c0_104 = arith.constant 0 : index
    %c0_105 = arith.constant 0 : index
    %125 = vector.load %arg2[%c4_103, %c0_104, %c0_105] : memref<9x4x8xbf16, #tpu.memory_space<vmem>>, vector<1x4x8xbf16>
    %126 = vector.shape_cast %125 : vector<1x4x8xbf16> to vector<4x8xbf16>
    %cst_106 = arith.constant dense<0.000000e+00> : vector<256x8xf32>
    %127 = tpu.matmul %124, %126, %cst_106 {dimension_numbers = #tpu.dot_dimension_numbers<[1], [0], [0], [1], [0, 0, 1, 1], [], []>} : vector<256x4xbf16>, vector<4x8xbf16>, vector<256x8xf32> -> vector<256x8xf32>
    %128 = arith.addf %111, %127 : vector<256x8xf32>
    %c25_107 = arith.constant 25 : index
    %c0_108 = arith.constant 0 : index
    %129 = vector.load %arg9[%c25_107, %c0_108] : memref<304x4xf32, #tpu.memory_space<vmem>>, vector<256x4xf32>
    %130 = arith.truncf %129 : vector<256x4xf32> to vector<256x4xbf16>
    %c5_109 = arith.constant 5 : index
    %c0_110 = arith.constant 0 : index
    %c0_111 = arith.constant 0 : index
    %131 = vector.load %arg2[%c5_109, %c0_110, %c0_111] : memref<9x4x8xbf16, #tpu.memory_space<vmem>>, vector<1x4x8xbf16>
    %132 = vector.shape_cast %131 : vector<1x4x8xbf16> to vector<4x8xbf16>
    %cst_112 = arith.constant dense<0.000000e+00> : vector<256x8xf32>
    %133 = tpu.matmul %130, %132, %cst_112 {dimension_numbers = #tpu.dot_dimension_numbers<[1], [0], [0], [1], [0, 0, 1, 1], [], []>} : vector<256x4xbf16>, vector<4x8xbf16>, vector<256x8xf32> -> vector<256x8xf32>
    %134 = arith.addf %116, %133 : vector<256x8xf32>
    %c39_113 = arith.constant 39 : index
    %c0_114 = arith.constant 0 : index
    %135 = vector.load %arg9[%c39_113, %c0_114] : memref<304x4xf32, #tpu.memory_space<vmem>>, vector<256x4xf32>
    %136 = arith.truncf %135 : vector<256x4xf32> to vector<256x4xbf16>
    %c6_115 = arith.constant 6 : index
    %c0_116 = arith.constant 0 : index
    %c0_117 = arith.constant 0 : index
    %137 = vector.load %arg2[%c6_115, %c0_116, %c0_117] : memref<9x4x8xbf16, #tpu.memory_space<vmem>>, vector<1x4x8xbf16>
    %138 = vector.shape_cast %137 : vector<1x4x8xbf16> to vector<4x8xbf16>
    %cst_118 = arith.constant dense<0.000000e+00> : vector<256x8xf32>
    %139 = tpu.matmul %136, %138, %cst_118 {dimension_numbers = #tpu.dot_dimension_numbers<[1], [0], [0], [1], [0, 0, 1, 1], [], []>} : vector<256x4xbf16>, vector<4x8xbf16>, vector<256x8xf32> -> vector<256x8xf32>
    %140 = arith.addf %122, %139 : vector<256x8xf32>
    %c40_119 = arith.constant 40 : index
    %c0_120 = arith.constant 0 : index
    %141 = vector.load %arg9[%c40_119, %c0_120] : memref<304x4xf32, #tpu.memory_space<vmem>>, vector<256x4xf32>
    %142 = arith.truncf %141 : vector<256x4xf32> to vector<256x4xbf16>
    %c7_121 = arith.constant 7 : index
    %c0_122 = arith.constant 0 : index
    %c0_123 = arith.constant 0 : index
    %143 = vector.load %arg2[%c7_121, %c0_122, %c0_123] : memref<9x4x8xbf16, #tpu.memory_space<vmem>>, vector<1x4x8xbf16>
    %144 = vector.shape_cast %143 : vector<1x4x8xbf16> to vector<4x8xbf16>
    %cst_124 = arith.constant dense<0.000000e+00> : vector<256x8xf32>
    %145 = tpu.matmul %142, %144, %cst_124 {dimension_numbers = #tpu.dot_dimension_numbers<[1], [0], [0], [1], [0, 0, 1, 1], [], []>} : vector<256x4xbf16>, vector<4x8xbf16>, vector<256x8xf32> -> vector<256x8xf32>
    %146 = arith.addf %128, %145 : vector<256x8xf32>
    %c41_125 = arith.constant 41 : index
    %c0_126 = arith.constant 0 : index
    %147 = vector.load %arg9[%c41_125, %c0_126] : memref<304x4xf32, #tpu.memory_space<vmem>>, vector<256x4xf32>
    %148 = arith.truncf %147 : vector<256x4xf32> to vector<256x4xbf16>
    %c8_127 = arith.constant 8 : index
    %c0_128 = arith.constant 0 : index
    %c0_129 = arith.constant 0 : index
    %149 = vector.load %arg2[%c8_127, %c0_128, %c0_129] : memref<9x4x8xbf16, #tpu.memory_space<vmem>>, vector<1x4x8xbf16>
    %150 = vector.shape_cast %149 : vector<1x4x8xbf16> to vector<4x8xbf16>
    %cst_130 = arith.constant dense<0.000000e+00> : vector<256x8xf32>
    %151 = tpu.matmul %148, %150, %cst_130 {dimension_numbers = #tpu.dot_dimension_numbers<[1], [0], [0], [1], [0, 0, 1, 1], [], []>} : vector<256x4xbf16>, vector<4x8xbf16>, vector<256x8xf32> -> vector<256x8xf32>
    %152 = arith.addf %134, %151 : vector<256x8xf32>
    %153 = vector.broadcast %4 : vector<256x1xf32> to vector<256x8xf32>
    %154 = arith.mulf %153, %140 : vector<256x8xf32>
    %155 = arith.addf %146, %154 : vector<256x8xf32>
    %156 = vector.broadcast %6 : vector<256x1xf32> to vector<256x8xf32>
    %157 = arith.mulf %156, %152 : vector<256x8xf32>
    %158 = arith.addf %155, %157 : vector<256x8xf32>
    %159 = arith.truncf %158 : vector<256x8xf32> to vector<256x8xbf16>
    %c1_131 = arith.constant 1 : index
    %c0_132 = arith.constant 0 : index
    %c0_133 = arith.constant 0 : index
    %160 = vector.load %arg7[%c1_131, %c0_132, %c0_133] : memref<2x256x8xbf16, #tpu.memory_space<vmem>>, vector<1x256x8xbf16>
    %161 = vector.shape_cast %160 : vector<1x256x8xbf16> to vector<256x8xbf16>
    %162 = vector.shape_cast %159 : vector<256x8xbf16> to vector<1x256x8xbf16>
    tpu.vector_store %arg7[%c1_131, %c0_132, %c0_133], %162 {strides = array<i32>} : memref<2x256x8xbf16, #tpu.memory_space<vmem>>, vector<1x256x8xbf16>,
    return
  }
  func.func @transform_0(%arg0: i32) -> (i32, i32, i32) {
    %c0_i32 = arith.constant 0 : i32
    %c0_i32_0 = arith.constant 0 : i32
    %c0_i32_1 = arith.constant 0 : i32
    return %arg0, %c0_i32, %c0_i32_0 : i32, i32, i32
  }
  func.func @transform_1(%arg0: i32) -> (i32, i32, i32) {
    %c0_i32 = arith.constant 0 : i32
    %c0_i32_0 = arith.constant 0 : i32
    %c0_i32_1 = arith.constant 0 : i32
    %c0_i32_2 = arith.constant 0 : i32
    return %c0_i32, %c0_i32_0, %c0_i32_1 : i32, i32, i32
  }
  func.func @transform_2(%arg0: i32) -> (i32, i32) {
    %c0_i32 = arith.constant 0 : i32
    %c0_i32_0 = arith.constant 0 : i32
    %c0_i32_1 = arith.constant 0 : i32
    return %c0_i32, %c0_i32_0 : i32, i32
  }
  func.func @transform_3(%arg0: i32) -> (i32, i32) {
    %c0_i32 = arith.constant 0 : i32
    %c0_i32_0 = arith.constant 0 : i32
    %c0_i32_1 = arith.constant 0 : i32
    return %c0_i32, %c0_i32_0 : i32, i32
  }
  func.func @transform_4(%arg0: i32) -> (i32, i32, i32) {
    %c0_i32 = arith.constant 0 : i32
    %c0_i32_0 = arith.constant 0 : i32
    %c0_i32_1 = arith.constant 0 : i32
    %c0_i32_2 = arith.constant 0 : i32
    return %c0_i32, %c0_i32_0, %c0_i32_1 : i32, i32, i32
  }
  func.func @transform_5(%arg0: i32) -> (i32, i32) {
    %c0_i32 = arith.constant 0 : i32
    %c0_i32_0 = arith.constant 0 : i32
    %c0_i32_1 = arith.constant 0 : i32
    return %c0_i32, %c0_i32_0 : i32, i32
  }
  func.func @transform_6(%arg0: i32) -> (i32, i32, i32) {
    %c0_i32 = arith.constant 0 : i32
    %c0_i32_0 = arith.constant 0 : i32
    %c0_i32_1 = arith.constant 0 : i32
    return %arg0, %c0_i32, %c0_i32_0 : i32, i32, i32
  }
  func.func @transform_7(%arg0: i32) -> (i32, i32, i32) {
    %c0_i32 = arith.constant 0 : i32
    %c0_i32_0 = arith.constant 0 : i32
    %c0_i32_1 = arith.constant 0 : i32
    return %arg0, %c0_i32, %c0_i32_0 : i32, i32, i32
  }
}

</mosaic_0001>

<bundles_post_ra>
// kernel: tpu_custom_call.1
= control target key start
LH: loop header
LB: loop body
LE: loop exit
PB: predicated region body
PF: predicated region fallthrough
CT: control target
= control target key end

     0   :  { %13 = vsyncpa [#allocation4], 0  ;;  %s11532_s0 = inlined_call_operand.hbm [shape: f32[2,256,4], index: 0, kind: input, shape index: {}]   ;;  %s11533_s1 = inlined_call_operand.hbm [shape: bf16[9,4,8], index: 1, kind: input, shape index: {}]   ;;  %s11534_s2 = inlined_call_operand.hbm [shape: f32[1,4], index: 2, kind: input, shape index: {}]   ;;  %s11535_s3 = inlined_call_operand.hbm [shape: f32[1,4], index: 3, kind: input, shape index: {}]   ;;  %s11536_s4 = inlined_call_operand.hbm [shape: f32[2,256,1], index: 4, kind: input, shape index: {}]   ;;  %s11537_s5 = inlined_call_operand.hbm [shape: bf16[4,8], index: 5, kind: input, shape index: {}]   ;;  %s11538_s6 = inlined_call_operand.hbm [shape: bf16[2,256,8], index: 6, kind: output, shape index: {0}]   ;;  %s11539_s7 = inlined_call_operand.hbm [shape: bf16[2,256,8], index: 7, kind: output, shape index: {1}]  }
   0x1   :  { %14 = vsyncpa [#allocation7], 0 }
   0x2   :  { %15 = vsyncpa [#allocation10], 0 }
   0x3   :  { %16 = vsyncpa [#allocation13], 0 }
   0x4   :  { %17 = vsyncpa [#allocation5], 0 }
   0x5   :  { %18 = vsyncpa [#allocation16], 0  ;;  %s9149_s24 = smov [#allocation6]   ;;  %s8961_s28 = scalar_lea.hbm %s11533_s1, 288 }
   0x6   :  { %s36_s25 = sshll.u32 %s9149_s24, 4  ;;  %p8962_p0 = scmp.ne.s32.totalorder %s11533_s1, %s8961_s28  ;;  %s37_s25 = int_to_ptr.vmem [resolvable:$true] %s36_s25 }
   0x7   :  { %p8965_p1 = scmp.lt.u32.totalorder %s8961_s28, %s11533_s1 }
   0x9   :  { %p8967_p2 = pnand %p8965_p1, %p8962_p0 }
   0xb   :  { %8970 = shalt.err (!%p8967_p2)
}
   0xc   :  { %s8971_s10 = scalar_lea.vmem %s37_s25, 288  ;;  %p8976_p4 = scmp.lt.s32.totalorder %s37_s25, %s37_s25 }
   0xd   :  { %p8972_p3 = scmp.ne.s32.totalorder %s37_s25, %s8971_s10  ;;  %p8977_p5 = scmp.lt.s32.totalorder %s8971_s10, %s8971_s10 }
   0xf   :  { %p8978_p6 = por %p8977_p5, %p8976_p4 }
  0x11   :  { %p8979_p7 = pnand %p8978_p6, %p8972_p3 }
  0x13   :  { %8982 = shalt.err (!%p8979_p7)
}
  0x14   :  { %s9150_s11 = smov 32   ;;  %s9151_s12 = smov 2  }
  0x15   :  { %42 = dma.hbm_to_vmem [thread:$0]  %s11533_s1, 288, %s37_s25, [#allocation7], %s9150_s11, %s9150_s11, %s9151_s12  }
  0x16   :  { %s9152_s15 = smov [#allocation9]   ;;  %s9153_s17 = smov [#allocation3]  }
  0x17   :  { %s59_s16 = sshll.u32 %s9152_s15, 4  ;;  %s24_s18 = sshll.u32 %s9153_s17, 4  ;;  %s60_s16 = int_to_ptr.vmem [resolvable:$true] %s59_s16  ;;  %s25_s18 = int_to_ptr.vmem [resolvable:$true] %s24_s18 }
  0x18   :  { %s8983_s21 = scalar_lea.hbm %s11535_s3, 16 }
  0x19   :  { %p8984_p8 = scmp.ne.s32.totalorder %s11535_s3, %s8983_s21  ;;  %p8987_p9 = scmp.lt.u32.totalorder %s8983_s21, %s11535_s3 }
  0x1b   :  { %p8989_p10 = pnand %p8987_p9, %p8984_p8 }
  0x1d   :  { %8992 = shalt.err (!%p8989_p10)
}
  0x1e   :  { %s8993_s1 = scalar_lea.vmem %s60_s16, 16  ;;  %s8997_s25 = scalar_lea.vmem %s60_s16, 32 }
  0x1f   :  { %p8994_p11 = scmp.ne.s32.totalorder %s60_s16, %s8993_s1  ;;  %p8998_p12 = scmp.lt.s32.totalorder %s60_s16, %s60_s16 }
  0x20   :  { %p8999_p13 = scmp.lt.s32.totalorder %s8997_s25, %s8993_s1 }
  0x22   :  { %p9000_p0 = por %p8999_p13, %p8998_p12 }
  0x24   :  { %p9001_p1 = pnand %p9000_p0, %p8994_p11 }
  0x26   :  { %9004 = shalt.err (!%p9001_p1)
}
  0x27   :  { %62 = dma.hbm_to_vmem [thread:$0]  %s11535_s3, 16, %s60_s16, [#allocation10]  }
  0x28   :  { %s9005_s8 = scalar_lea.hbm %s11532_s0, 8192 }
  0x29   :  { %p9006_p2 = scmp.ne.s32.totalorder %s11532_s0, %s9005_s8  ;;  %p9009_p3 = scmp.lt.u32.totalorder %s9005_s8, %s11532_s0 }
  0x2b   :  { %p9011_p4 = pnand %p9009_p3, %p9006_p2 }
  0x2d   :  { %9014 = shalt.err (!%p9011_p4)
}
  0x2e   :  { %s9015_s13 = scalar_lea.vmem %s25_s18, 8192  ;;  %p9020_p6 = scmp.lt.s32.totalorder %s25_s18, %s25_s18 }
  0x2f   :  { %p9016_p5 = scmp.ne.s32.totalorder %s25_s18, %s9015_s13  ;;  %p9021_p7 = scmp.lt.s32.totalorder %s9015_s13, %s9015_s13 }
  0x31   :  { %p9022_p8 = por %p9021_p7, %p9020_p6 }
  0x33   :  { %p9023_p9 = pnand %p9022_p8, %p9016_p5 }
  0x35   :  { %9026 = shalt.err (!%p9023_p9)
}
  0x36   :  { %s9154_s3 = smov 128   ;;  %s9155_s14 = smov 8  }
  0x37   :  { %30 = dma.hbm_to_vmem [thread:$0]  %s11532_s0, 8192, %s25_s18, [#allocation4], %s9154_s3, %s9154_s3, %s9155_s14  }
  0x38   :  { %s9156_s17 = smov [#allocation8]   ;;  %s9157_s20 = smov [#allocation11]  }
  0x39   :  { %s49_s19 = sshll.u32 %s9156_s17, 4  ;;  %s68_s21 = sshll.u32 %s9157_s20, 4  ;;  %s50_s19 = int_to_ptr.vmem [resolvable:$true] %s49_s19  ;;  %s69_s21 = int_to_ptr.vmem [resolvable:$true] %s68_s21 }
  0x3a   :  { %s9027_s24 = scalar_lea.hbm %s11534_s2, 16 }
  0x3b   :  { %p9028_p10 = scmp.ne.s32.totalorder %s11534_s2, %s9027_s24  ;;  %p9031_p11 = scmp.lt.u32.totalorder %s9027_s24, %s11534_s2 }
  0x3d   :  { %p9033_p12 = pnand %p9031_p11, %p9028_p10 }
  0x3f   :  { %9036 = shalt.err (!%p9033_p12)
}
  0x40   :  { %s9037_s0 = scalar_lea.vmem %s50_s19, 16  ;;  %s9041_s18 = scalar_lea.vmem %s50_s19, 32 }
  0x41   :  { %p9038_p13 = scmp.ne.s32.totalorder %s50_s19, %s9037_s0  ;;  %p9042_p0 = scmp.lt.s32.totalorder %s50_s19, %s50_s19 }
  0x42   :  { %p9043_p1 = scmp.lt.s32.totalorder %s9041_s18, %s9037_s0 }
  0x44   :  { %p9044_p2 = por %p9043_p1, %p9042_p0 }
  0x46   :  { %p9045_p3 = pnand %p9044_p2, %p9038_p13 }
  0x48   :  { %9048 = shalt.err (!%p9045_p3)
}
  0x49   :  { %52 = dma.hbm_to_vmem [thread:$0]  %s11534_s2, 16, %s50_s19, [#allocation7]  }
  0x4a   :  { %s9049_s9 = scalar_lea.hbm %s11536_s4, 8192 }
  0x4b   :  { %p9050_p4 = scmp.ne.s32.totalorder %s11536_s4, %s9049_s9  ;;  %p9053_p5 = scmp.lt.u32.totalorder %s9049_s9, %s11536_s4 }
  0x4d   :  { %p9055_p6 = pnand %p9053_p5, %p9050_p4 }
  0x4f   :  { %9058 = shalt.err (!%p9055_p6)
}
  0x50   :  { %s9059_s15 = scalar_lea.vmem %s69_s21, 8192  ;;  %p9064_p8 = scmp.lt.s32.totalorder %s69_s21, %s69_s21 }
  0x51   :  { %p9060_p7 = scmp.ne.s32.totalorder %s69_s21, %s9059_s15  ;;  %p9065_p9 = scmp.lt.s32.totalorder %s9059_s15, %s9059_s15 }
  0x53   :  { %p9066_p10 = por %p9065_p9, %p9064_p8 }
  0x55   :  { %p9067_p11 = pnand %p9066_p10, %p9060_p7 }
  0x57   :  { %9070 = shalt.err (!%p9067_p11)
}
  0x58   :  { %74 = dma.hbm_to_vmem [thread:$0]  %s11536_s4, 8192, %s69_s21, [#allocation10], %s9154_s3, %s9154_s3, %s9155_s14  }
  0x59   :  { %s9158_s17 = smov [#allocation12]   ;;  %s9071_s23 = scalar_lea.hbm %s11537_s5, 32 }
  0x5a   :  { %s81_s19 = sshll.u32 %s9158_s17, 4  ;;  %p9072_p12 = scmp.ne.s32.totalorder %s11537_s5, %s9071_s23  ;;  %s82_s19 = int_to_ptr.vmem [resolvable:$true] %s81_s19 }
  0x5b   :  { %p9075_p13 = scmp.lt.u32.totalorder %s9071_s23, %s11537_s5 }
  0x5d   :  { %p9077_p0 = pnand %p9075_p13, %p9072_p12 }
  0x5f   :  { %9080 = shalt.err (!%p9077_p0)
}
  0x60   :  { %s9081_s27 = scalar_lea.vmem %s82_s19, 32  ;;  %p9086_p2 = scmp.lt.s32.totalorder %s82_s19, %s82_s19 }
  0x61   :  { %p9082_p1 = scmp.ne.s32.totalorder %s82_s19, %s9081_s27  ;;  %p9087_p3 = scmp.lt.s32.totalorder %s9081_s27, %s9081_s27 }
  0x63   :  { %p9088_p4 = por %p9087_p3, %p9086_p2 }
  0x65   :  { %p9089_p5 = pnand %p9088_p4, %p9082_p1 }
  0x67   :  { %9092 = shalt.err (!%p9089_p5)
}
  0x68   :  { %84 = dma.hbm_to_vmem [thread:$0]  %s11537_s5, 32, %s82_s19, [#allocation13]  }
  0x69   :  { %9137 = dma.done.wait [#allocation4], 8192  }
  0x6a   :  { %9138 = vsyncadd [#allocation4], 4294959104 }
  0x6b   :  { %9139 = dma.done.wait [#allocation7], 304  }
  0x6c   :  { %9140 = vsyncadd [#allocation7], 4294966992 }
  0x6d   :  { %9141 = dma.done.wait [#allocation10], 8208  }
  0x6e   :  { %9142 = vsyncadd [#allocation10], 4294959088 }
  0x6f   :  { %9143 = dma.done.wait [#allocation13], 32  }
  0x70   :  { %9144 = vsyncadd [#allocation13], 4294967264  ;;  %vm172_vm0 = vcmask 31744   ;;  %v9159_v0 = vmov 0.0   ;;  %vm383_vm1 = vcmask 1041408   ;;  %v179_v5 = vld [vmem:[#allocation3] sm:$0xff] }
  0x71   :  { %175 = vst.msk [vmem:[#allocation2 + $0x10] sm:$0xff] %vm172_vm0, %v9159_v0  ;;  %173 = vst.msk [vmem:[#allocation2] sm:$0xff] %vm172_vm0, %v9159_v0  ;;  %v9289_v1 = vld [vmem:[#allocation12] sm:$0x3]  ;;  %v9291_v2 = vld [vmem:[#allocation8] ss:$0 sm:$0xff] }
  0x72   :  { %174 = vst.msk [vmem:[#allocation2 + $0x8] sm:$0xff] %vm172_vm0, %v9159_v0  ;;  %176 = vst.msk [vmem:[#allocation2 + $0x118] sm:$0xff] %vm172_vm0, %v9159_v0  ;;  %v9293_v3 = vld [vmem:[#allocation9] ss:$0 sm:$0xff]  ;;  %8921 = vmatprep.subr.msk.bf16.mxu1 %vm383_vm1, %v9289_v1  ;;  %v9299_v4 = vsel %vm383_vm1, %v9289_v1, 0  ;;  %v180_v6 = vld [vmem:[#allocation3 + $0x8] sm:$0xff]  ;;  %v217_v8 = vmul.f32 %v9291_v2, %v179_v5 }
  0x73   :  { %177 = vst.msk [vmem:[#allocation2 + $0x120] sm:$0xff] %vm172_vm0, %v9159_v0  ;;  %178 = vst.msk [vmem:[#allocation2 + $0x128] sm:$0xff] %vm172_vm0, %v9159_v0  ;;  %v181_v7 = vld [vmem:[#allocation3 + $0x10] sm:$0xff]  ;;  %7858 = vmatpush3.bf16.msra.mxu1 %v9299_v4  ;;  %v218_v9 = vmul.f32 %v9291_v2, %v180_v6  ;;  %v182_v10 = vld [vmem:[#allocation3 + $0x18] sm:$0xff]  ;;  %vm676_vm2 = vcmask 60416   ;;  %s9161_s5 = smov [#allocation15]  }
  0x74   :  { %v219_v11 = vmul.f32 %v9291_v2, %v181_v7  ;;  %v1323_v12 = vld [vmem:[#allocation6 + $0x8] sm:$0x3]  ;;  %v183_v13 = vld [vmem:[#allocation3 + $0x20] sm:$0xff]  ;;  %v220_v14 = vmul.f32 %v9291_v2, %v182_v10  ;;  %v255_v20 = vadd.f32 %v9293_v3, %v217_v8  ;;  %v185_v24 = vld [vmem:[#allocation3 + $0x30] sm:$0xff]  ;;  %s6920_s14 = sshll.u32 %s9161_s5, 4  ;;  %s6921_s14 = int_to_ptr.vmem [resolvable:$true] %s6920_s14 }
  0x75   :  { %8924 = vmatprep.subr.msk.bf16.mxu0 %vm383_vm1, %v1323_v12  ;;  %v1373_v15 = vsel %vm383_vm1, %v1323_v12, 0  ;;  %v184_v16 = vld [vmem:[#allocation3 + $0x28] sm:$0xff]  ;;  %v221_v17 = vmul.f32 %v9291_v2, %v183_v13  ;;  %v894_v18 = vld [vmem:[#allocation6 + $0x6] sm:$0x3]  ;;  %v9309_v19 = vld [vmem:[#allocation6 + $0x2] sm:$0x3]  ;;  %v256_v21 = vadd.f32 %v9293_v3, %v218_v9  ;;  %v223_v28 = vmul.f32 %v9291_v2, %v185_v24  ;;  %p9098_p7 = scmp.lt.s32.totalorder %s6921_s14, %s6921_s14 }
  0x76   :  { %v257_v22 = vadd.f32 %v9293_v3, %v219_v11  ;;  %7960 = vmatpush3.bf16.msra.mxu0 %v1373_v15  ;;  %v222_v23 = vmul.f32 %v9291_v2, %v184_v16  ;;  %v186_v25 = vld [vmem:[#allocation3 + $0x38] sm:$0xff]  ;;  %v258_v26 = vadd.f32 %v9293_v3, %v220_v14  ;;  %8922 = vmatprep.subr.msk.bf16.mxu1 %vm383_vm1, %v894_v18  ;;  %v187_v29 = vld [vmem:[#allocation3 + $0x40] sm:$0xff]  ;;  %v287_v30 = vmax.f32 %v255_v20, 0.0  ;;  %v188_v34 = vld [vmem:[#allocation3 + $0x48] sm:$0xff]  ;;  %s9093_s21 = scalar_lea.vmem %s6921_s14, 4096 }
  0x77   :  { %v259_v27 = vadd.f32 %v9293_v3, %v221_v17  ;;  %8925 = vmatprep.subr.msk.bf16.mxu0 %vm383_vm1, %v9309_v19  ;;  %v288_v31 = vmax.f32 %v256_v21, 0.0  ;;  %v224_v37 = vmul.f32 %v9291_v2, %v186_v25  ;;  %v261_v38 = vadd.f32 %v9293_v3, %v223_v28  ;;  %v189_v39 = vld [vmem:[#allocation3 + $0x50] sm:$0xff]  ;;  %v190_v40 = vld [vmem:[#allocation3 + $0x58] sm:$0xff]  ;;  %v191_v45 = vld [vmem:[#allocation3 + $0x60] sm:$0xff]  ;;  %p9094_p6 = scmp.ne.s32.totalorder %s6921_s14, %s9093_s21  ;;  %p9099_p8 = scmp.lt.s32.totalorder %s9093_s21, %s9093_s21 }
  0x78   :  { %v289_v32 = vmax.f32 %v257_v22, 0.0  ;;  %v260_v33 = vadd.f32 %v9293_v3, %v222_v23  ;;  %v290_v35 = vmax.f32 %v258_v26, 0.0  ;;  %709 = vst.msk [vmem:[#allocation2 + $0x18] sm:$0xff] %vm172_vm0, %v287_v30  ;;  %v944_v43 = vsel %vm383_vm1, %v894_v18, 0  ;;  %v192_v46 = vld [vmem:[#allocation3 + $0x68] sm:$0xff]  ;;  %v193_v51 = vld [vmem:[#allocation3 + $0x70] sm:$0xff] }
  0x79   :  { %v291_v36 = vmax.f32 %v259_v27, 0.0  ;;  %v319_v41 = vpack.c.bf16 %v288_v31, %v287_v30  ;;  %710 = vst.msk [vmem:[#allocation2 + $0x20] sm:$0xff] %vm172_vm0, %v288_v31  ;;  %v225_v44 = vmul.f32 %v9291_v2, %v187_v29  ;;  %v262_v48 = vadd.f32 %v9293_v3, %v224_v37  ;;  %v194_v60 = vld [vmem:[#allocation3 + $0x78] sm:$0xff]  ;;  %v195_v5 = vld [vmem:[#allocation3 + $0x80] sm:$0xff]  ;;  %v196_v10 = vld [vmem:[#allocation3 + $0x88] sm:$0xff]  ;;  %p9100_p9 = por %p9099_p8, %p9098_p7 }
  0x7a   :  { %711 = vst.msk [vmem:[#allocation2 + $0x28] sm:$0xff] %vm172_vm0, %v289_v32  ;;  %v292_v42 = vmax.f32 %v260_v33, 0.0  ;;  %v320_v47 = vpack.c.bf16 %v290_v35, %v289_v32  ;;  %712 = vst.msk [vmem:[#allocation2 + $0x30] sm:$0xff] %vm172_vm0, %v290_v35  ;;  %v293_v49 = vmax.f32 %v261_v38, 0.0  ;;  %v226_v50 = vmul.f32 %v9291_v2, %v188_v34  ;;  %v9351_v6 = vld [vmem:[#allocation6] sm:$0x3] }
  0x7b   :  { %713 = vst.msk [vmem:[#allocation2 + $0x38] sm:$0xff] %vm172_vm0, %v291_v36  ;;  %7859 = vmatprep.mubr.msk.bf16.mxu1 %vm172_vm0, %v319_v41  ;;  %v263_v53 = vadd.f32 %v9293_v3, %v225_v44  ;;  %v227_v54 = vmul.f32 %v9291_v2, %v189_v39  ;;  %v228_v55 = vmul.f32 %v9291_v2, %v190_v40  ;;  %v294_v56 = vmax.f32 %v262_v48, 0.0  ;;  %v197_v15 = vld [vmem:[#allocation3 + $0x90] sm:$0xff]  ;;  %v198_v16 = vld [vmem:[#allocation3 + $0x98] sm:$0xff]  ;;  %v199_v17 = vld [vmem:[#allocation3 + $0xa0] sm:$0xff]  ;;  %p9101_p10 = pnand %p9100_p9, %p9094_p6 }
  0x7c   :  { %v321_v52 = vpack.c.bf16 %v292_v42, %v291_v36  ;;  %714 = vst.msk [vmem:[#allocation2 + $0x40] sm:$0xff] %vm172_vm0, %v292_v42  ;;  %7860 = vmatmul.mubr.msk.bf16.vlgmr.msra.gmra.mrb[0].mxu1 %vm172_vm0, %v320_v47  ;;  %715 = vst.msk [vmem:[#allocation2 + $0x48] sm:$0xff] %vm172_vm0, %v293_v49  ;;  %v264_v57 = vadd.f32 %v9293_v3, %v226_v50  ;;  %v229_v58 = vmul.f32 %v9291_v2, %v191_v45  ;;  %v200_v25 = vld [vmem:[#allocation3 + $0xa8] sm:$0xff]  ;;  %v201_v30 = vld [vmem:[#allocation3 + $0xb0] sm:$0xff] }
  0x7d   :  { %v230_v59 = vmul.f32 %v9291_v2, %v192_v46  ;;  %7892 = vmatpush3.bf16.msra.mxu1 %v944_v43  ;;  %v295_v61 = vmax.f32 %v263_v53, 0.0  ;;  %v9345_v62 = vadd.f32 %v9293_v3, %v227_v54  ;;  %v9348_v63 = vadd.f32 %v9293_v3, %v228_v55  ;;  %716 = vst.msk [vmem:[#allocation2 + $0x50] sm:$0xff] %vm172_vm0, %v294_v56  ;;  %v202_v39 = vld [vmem:[#allocation3 + $0xb8] sm:$0xff]  ;;  %v204_v55 = vld [vmem:[#allocation3 + $0xc8] sm:$0xff] }
  0x7e   :  { %7863 = vmatprep.mubr.msk.bf16.mxu1 %vm172_vm0, %v321_v52  ;;  %v231_v0 = vmul.f32 %v9291_v2, %v193_v51  ;;  %v296_v7 = vmax.f32 %v264_v57, 0.0  ;;  %v9355_v8 = vadd.f32 %v9293_v3, %v229_v58  ;;  %8923 = vmatprep.subr.msk.bf16.mxu1 %vm383_vm1, %v9351_v6  ;;  %v232_v13 = vmul.f32 %v9291_v2, %v194_v60  ;;  %v203_v51 = vld [vmem:[#allocation3 + $0xc0] sm:$0xff]  ;;  %v9438_v57 = vld [vmem:[#allocation6 + $0xe] sm:$0x3] }
  0x7f   :  { %v9358_v9 = vadd.f32 %v9293_v3, %v230_v59  ;;  %717 = vst.msk [vmem:[#allocation2 + $0x58] sm:$0xff] %vm172_vm0, %v295_v61  ;;  %v297_v11 = vmax.f32 %v9345_v62, 0.0  ;;  %v298_v12 = vmax.f32 %v9348_v63, 0.0  ;;  %v1274_v18 = vld [vmem:[#allocation2 + $0x18] sm:$0xff]  ;;  %v322_v21 = vpack.c.bf16 %v294_v56, %v293_v49  ;;  %v205_v56 = vld [vmem:[#allocation3 + $0xd0] sm:$0xff] }
  0x80   :  { %v9367_v14 = vadd.f32 %v9293_v3, %v231_v0  ;;  %v1275_v20 = vld [vmem:[#allocation2 + $0x20] sm:$0xff]  ;;  %718 = vst.msk [vmem:[#allocation2 + $0x60] sm:$0xff] %vm172_vm0, %v296_v7  ;;  %v299_v22 = vmax.f32 %v9355_v8, 0.0  ;;  %v233_v24 = vmul.f32 %v9291_v2, %v195_v5  ;;  %v323_v27 = vpack.c.bf16 %v296_v7, %v295_v61  ;;  %v206_v5 = vld [vmem:[#allocation3 + $0xd8] sm:$0xff] }
  0x81   :  { %v300_v23 = vmax.f32 %v9358_v9, 0.0  ;;  %v9373_v26 = vpack.c.bf16 %v1275_v20, %v1274_v18  ;;  %719 = vst.msk [vmem:[#allocation2 + $0x68] sm:$0xff] %vm172_vm0, %v297_v11  ;;  %720 = vst.msk [vmem:[#allocation2 + $0x70] sm:$0xff] %vm172_vm0, %v298_v12  ;;  %v9382_v28 = vadd.f32 %v9293_v3, %v232_v13  ;;  %v234_v31 = vmul.f32 %v9291_v2, %v196_v10  ;;  %v1276_v34 = vld [vmem:[#allocation2 + $0x28] sm:$0xff]  ;;  %v1277_v40 = vld [vmem:[#allocation2 + $0x30] sm:$0xff] }
  0x82   :  { %v301_v29 = vmax.f32 %v9367_v14, 0.0  ;;  %721 = vst.msk [vmem:[#allocation2 + $0x78] sm:$0xff] %vm172_vm0, %v299_v22  ;;  %v9393_v32 = vadd.f32 %v9293_v3, %v233_v24  ;;  %v235_v33 = vmul.f32 %v9291_v2, %v197_v15  ;;  %v236_v36 = vmul.f32 %v9291_v2, %v198_v16  ;;  %v1278_v41 = vld [vmem:[#allocation2 + $0x38] sm:$0xff] }
  0x83   :  { %722 = vst.msk [vmem:[#allocation2 + $0x80] sm:$0xff] %vm172_vm0, %v300_v23  ;;  %7961 = vmatprep.mubr.msk.bf16.mxu0 %vm172_vm0, %v9373_v26  ;;  %v302_v35 = vmax.f32 %v9382_v28, 0.0  ;;  %v237_v37 = vmul.f32 %v9291_v2, %v199_v17  ;;  %v238_v38 = vmul.f32 %v9291_v2, %v200_v25  ;;  %v1279_v42 = vld [vmem:[#allocation2 + $0x40] sm:$0xff]  ;;  %v9407_v43 = vadd.f32 %v9293_v3, %v234_v31  ;;  %v1280_v58 = vld [vmem:[#allocation2 + $0x48] sm:$0xff]  ;;  %v207_v17 = vld [vmem:[#allocation3 + $0xe0] sm:$0xff] }
  0x84   :  { %723 = vst.msk [vmem:[#allocation2 + $0x88] sm:$0xff] %vm172_vm0, %v301_v29  ;;  %7864 = vmatmul.mubr.msk.bf16.gmra.mrb[4].mxu1 %vm172_vm0, %v322_v21  ;;  %v303_v44 = vmax.f32 %v9393_v32, 0.0  ;;  %v9411_v45 = vadd.f32 %v9293_v3, %v235_v33  ;;  %v239_v46 = vmul.f32 %v9291_v2, %v201_v30  ;;  %v9414_v47 = vpack.c.bf16 %v1277_v40, %v1276_v34  ;;  %v1281_v59 = vld [vmem:[#allocation2 + $0x50] sm:$0xff]  ;;  %v208_v18 = vld [vmem:[#allocation3 + $0xe8] sm:$0xff]  ;;  %v209_v30 = vld [vmem:[#allocation3 + $0xf0] sm:$0xff] }
  0x85   :  { %v1585_v48 = vsel %vm383_vm1, %v9309_v19, 0  ;;  %7867 = vmatprep.mubr.msk.bf16.mxu1 %vm172_vm0, %v323_v27  ;;  %v9419_v49 = vpack.c.bf16 %v1279_v42, %v1278_v41  ;;  %724 = vst.msk [vmem:[#allocation2 + $0x90] sm:$0xff] %vm172_vm0, %v302_v35  ;;  %v9425_v50 = vadd.f32 %v9293_v3, %v236_v36  ;;  %v304_v52 = vmax.f32 %v9407_v43, 0.0 }
  0x86   :  { %725 = vst.msk [vmem:[#allocation2 + $0x98] sm:$0xff] %vm172_vm0, %v303_v44  ;;  %v305_v19 = vmax.f32 %v9411_v45, 0.0  ;;  %v9433_v53 = vadd.f32 %v9293_v3, %v237_v37  ;;  %v9436_v54 = vadd.f32 %v9293_v3, %v238_v38  ;;  %7962 = vmatmul.mubr.msk.bf16.vlgmr.msra.gmra.mrb[0].mxu0 %vm172_vm0, %v9414_v47  ;;  %v240_v61 = vmul.f32 %v9291_v2, %v202_v39  ;;  %v1282_v10 = vld [vmem:[#allocation2 + $0x58] sm:$0xff]  ;;  %v210_v39 = vld [vmem:[#allocation3 + $0xf8] sm:$0xff] }
  0x87   :  { %v306_v60 = vmax.f32 %v9425_v50, 0.0  ;;  %v9445_v0 = vadd.f32 %v9293_v3, %v239_v46  ;;  %7994 = vmatpush3.bf16.msra.mxu0 %v1585_v48  ;;  %7965 = vmatprep.mubr.msk.bf16.mxu0 %vm172_vm0, %v9419_v49  ;;  %v324_v7 = vpack.c.bf16 %v298_v12, %v297_v11  ;;  %726 = vst.msk [vmem:[#allocation2 + $0xa0] sm:$0xff] %vm172_vm0, %v304_v52  ;;  %v1283_v8 = vld [vmem:[#allocation2 + $0x60] sm:$0xff] }
  0x88   :  { %727 = vst.msk [vmem:[#allocation2 + $0xa8] sm:$0xff] %vm172_vm0, %v305_v19  ;;  %v307_v13 = vmax.f32 %v9433_v53, 0.0  ;;  %v308_v15 = vmax.f32 %v9436_v54, 0.0  ;;  %v241_v16 = vmul.f32 %v9291_v2, %v203_v51  ;;  %v325_v62 = vpack.c.bf16 %v300_v23, %v299_v22  ;;  %8929 = vmatprep.subr.msk.bf16.mxu0 %vm383_vm1, %v9438_v57 }
  0x89   :  { %728 = vst.msk [vmem:[#allocation2 + $0xb0] sm:$0xff] %vm172_vm0, %v306_v60  ;;  %v9470_v63 = vadd.f32 %v9293_v3, %v240_v61  ;;  %v309_v11 = vmax.f32 %v9445_v0, 0.0  ;;  %v242_v12 = vmul.f32 %v9291_v2, %v204_v55  ;;  %v9476_v20 = vpack.c.bf16 %v1281_v59, %v1280_v58  ;;  %v1284_v55 = vld [vmem:[#allocation2 + $0x68] sm:$0xff]  ;;  %v1286_v14 = vld [vmem:[#allocation2 + $0x78] sm:$0xff] }
  0x8a   :  { %729 = vst.msk [vmem:[#allocation2 + $0xb8] sm:$0xff] %vm172_vm0, %v307_v13  ;;  %730 = vst.msk [vmem:[#allocation2 + $0xc0] sm:$0xff] %vm172_vm0, %v308_v15  ;;  %v9485_v9 = vadd.f32 %v9293_v3, %v241_v16  ;;  %v243_v21 = vmul.f32 %v9291_v2, %v205_v56  ;;  %v244_v22 = vmul.f32 %v9291_v2, %v206_v5  ;;  %v1285_v56 = vld [vmem:[#allocation2 + $0x70] sm:$0xff] }
  0x8b   :  { %v9489_v23 = vpack.c.bf16 %v1283_v8, %v1282_v10  ;;  %v310_v24 = vmax.f32 %v9470_v63, 0.0  ;;  %731 = vst.msk [vmem:[#allocation2 + $0xc8] sm:$0xff] %vm172_vm0, %v309_v11  ;;  %v280_v25 = vadd.f32 %v9293_v3, %v242_v12  ;;  %v245_v27 = vmul.f32 %v9291_v2, %v207_v17  ;;  %v1288_v43 = vld [vmem:[#allocation2 + $0x88] sm:$0xff] }
  0x8c   :  { %7868 = vmatmul.mubr.msk.bf16.gmra.mrb[8].mxu1 %vm172_vm0, %v324_v7  ;;  %v311_v31 = vmax.f32 %v9485_v9, 0.0  ;;  %v9500_v33 = vadd.f32 %v9293_v3, %v243_v21  ;;  %v9503_v34 = vadd.f32 %v9293_v3, %v244_v22  ;;  %v246_v36 = vmul.f32 %v9291_v2, %v208_v18  ;;  %v1287_v7 = vld [vmem:[#allocation2 + $0x80] sm:$0xff] }
  0x8d   :  { %7871 = vmatprep.mubr.msk.bf16.mxu1 %vm172_vm0, %v325_v62  ;;  %732 = vst.msk [vmem:[#allocation2 + $0xd0] sm:$0xff] %vm172_vm0, %v310_v24  ;;  %v312_v37 = vmax.f32 %v280_v25, 0.0  ;;  %v9509_v38 = vadd.f32 %v9293_v3, %v245_v27  ;;  %v247_v46 = vmul.f32 %v9291_v2, %v209_v30  ;;  %v326_v51 = vpack.c.bf16 %v302_v35, %v301_v29  ;;  %v1290_v17 = vld [vmem:[#allocation2 + $0x98] sm:$0xff] }
  0x8e   :  { %733 = vst.msk [vmem:[#allocation2 + $0xd8] sm:$0xff] %vm172_vm0, %v311_v31  ;;  %v313_v40 = vmax.f32 %v9500_v33, 0.0  ;;  %v314_v41 = vmax.f32 %v9503_v34, 0.0  ;;  %v284_v42 = vadd.f32 %v9293_v3, %v246_v36  ;;  %7966 = vmatmul.mubr.msk.bf16.gmra.mrb[4].mxu0 %vm172_vm0, %v9476_v20  ;;  %v248_v59 = vmul.f32 %v9291_v2, %v210_v39  ;;  %v1291_v62 = vld [vmem:[#allocation2 + $0xa0] sm:$0xff]  ;;  %v743_v25 = vld [vmem:[#allocation2 + $0x17] sm:$0xff] }
  0x8f   :  { %734 = vst.msk [vmem:[#allocation2 + $0xe0] sm:$0xff] %vm172_vm0, %v312_v37  ;;  %v315_v48 = vmax.f32 %v9509_v38, 0.0  ;;  %7969 = vmatprep.mubr.msk.bf16.mxu0 %vm172_vm0, %v9489_v23  ;;  %v285_v61 = vadd.f32 %v9293_v3, %v247_v46  ;;  %v327_v5 = vpack.c.bf16 %v304_v52, %v303_v44  ;;  %v9537_v35 = vpack.c.bf16 %v1285_v56, %v1284_v55  ;;  %v1289_v44 = vld [vmem:[#allocation2 + $0x90] sm:$0xff]  ;;  %v1292_v50 = vld [vmem:[#allocation2 + $0xa8] sm:$0xff]  ;;  %v744_v27 = vld [vmem:[#allocation2 + $0x1f] sm:$0xff] }
  0x90   :  { %735 = vst.msk [vmem:[#allocation2 + $0xe8] sm:$0xff] %vm172_vm0, %v313_v40  ;;  %736 = vst.msk [vmem:[#allocation2 + $0xf0] sm:$0xff] %vm172_vm0, %v314_v41  ;;  %v316_v58 = vmax.f32 %v284_v42, 0.0  ;;  %v286_v28 = vadd.f32 %v9293_v3, %v248_v59  ;;  %v9540_v10 = vpack.c.bf16 %v1287_v7, %v1286_v14  ;;  %v328_v32 = vpack.c.bf16 %v306_v60, %v305_v19  ;;  %v1293_v19 = vld [vmem:[#allocation2 + $0xb0] sm:$0xff]  ;;  %v2225_v46 = vld [vmem:[#allocation2 + $0x3f] sm:$0xff] }
  0x91   :  { %737 = vst.msk [vmem:[#allocation2 + $0xf8] sm:$0xff] %vm172_vm0, %v315_v48  ;;  %v317_v29 = vmax.f32 %v285_v61, 0.0  ;;  %v329_v52 = vpack.c.bf16 %v308_v15, %v307_v13  ;;  %v9557_v63 = vpack.c.bf16 %v1289_v44, %v1288_v43  ;;  %v9560_v12 = vpack.c.bf16 %v1291_v62, %v1290_v17  ;;  %v1294_v54 = vld [vmem:[#allocation2 + $0xb8] sm:$0xff]  ;;  %v1295_v60 = vld [vmem:[#allocation2 + $0xc0] sm:$0xff]  ;;  %v1750_v61 = vld [vmem:[#allocation2 + $0x29] sm:$0xff] }
  0x92   :  { %738 = vst.msk [vmem:[#allocation2 + $0x100] sm:$0xff] %vm172_vm0, %v316_v58  ;;  %v318_v16 = vmax.f32 %v286_v28, 0.0  ;;  %v330_v45 = vpack.c.bf16 %v310_v24, %v309_v11  ;;  %v331_v53 = vpack.c.bf16 %v312_v37, %v311_v31  ;;  %v9569_v13 = vpack.c.bf16 %v1293_v19, %v1292_v50  ;;  %v1296_v11 = vld [vmem:[#allocation2 + $0xc8] sm:$0xff]  ;;  %v2224_v42 = vld [vmem:[#allocation2 + $0x37] sm:$0xff]  ;;  %v2229_v19 = vld [vmem:[#allocation2 + $0x5f] sm:$0xff] }
  0x93   :  { %739 = vst.msk [vmem:[#allocation2 + $0x108] sm:$0xff] %vm172_vm0, %v317_v29  ;;  %v9572_v15 = vpack.c.bf16 %v1295_v60, %v1294_v54  ;;  %v332_v0 = vpack.c.bf16 %v314_v41, %v313_v40  ;;  %v333_v8 = vpack.c.bf16 %v316_v58, %v315_v48  ;;  %v9589_v34 = vpack.c.bf16 %v744_v27, %v743_v25  ;;  %v2222_v40 = vld [vmem:[#allocation2 + $0x27] sm:$0xff]  ;;  %v2223_v41 = vld [vmem:[#allocation2 + $0x2f] sm:$0xff]  ;;  %v9614_v43 = vld [vmem:[#allocation6 + $0xa] sm:$0x3] }
  0x94   :  { %7872 = vmatmul.mubr.msk.bf16.gmra.mrb[12].mxu1 %vm172_vm0, %v326_v51  ;;  %740 = vst.msk [vmem:[#allocation2 + $0x110] sm:$0xff] %vm172_vm0, %v318_v16  ;;  %v1297_v18 = vld [vmem:[#allocation2 + $0xd0] sm:$0xff]  ;;  %v334_v30 = vpack.c.bf16 %v318_v16, %v317_v29  ;;  %v1748_v51 = vld [vmem:[#allocation2 + $0x19] sm:$0xff]  ;;  %v1749_v55 = vld [vmem:[#allocation2 + $0x21] sm:$0xff]  ;;  %v9602_v56 = vpack.c.bf16 %v2223_v41, %v2222_v40  ;;  %v9606_v14 = vpack.c.bf16 %v2225_v46, %v2224_v42  ;;  %v1111_v16 = vsel %vm383_vm1, %v9351_v6, 0 }
  0x95   :  { %7875 = vmatprep.mubr.msk.bf16.mxu1 %vm172_vm0, %v327_v5  ;;  %11646 = vst [vmem:[#allocation23_spill] sm:$0xff] %v9572_v15  ;;  %v1298_v9 = vld [vmem:[#allocation2 + $0xd8] sm:$0xff]  ;;  %v9579_v22 = vpack.c.bf16 %v1297_v18, %v1296_v11  ;;  %v9604_v59 = vpack.c.bf16 %v1749_v55, %v1748_v51  ;;  %v790_v7 = vld [vmem:[#allocation2 + $0x8] sm:$0xff]  ;;  %v791_v28 = vld [vmem:[#allocation2 + $0x10] sm:$0xff]  ;;  %v2615_v51 = vsel %vm383_vm1, %v9438_v57, 0 }
  0x96   :  { %7970 = vmatmul.mubr.msk.bf16.gmra.mrb[8].mxu0 %vm172_vm0, %v9537_v35  ;;  %v1299_v21 = vld [vmem:[#allocation2 + $0xe0] sm:$0xff]  ;;  %11647 = vst [vmem:[#allocation24_spill] sm:$0xff] %v9602_v56  ;;  %v1751_v5 = vld [vmem:[#allocation2 + $0x31] sm:$0xff]  ;;  %11649 = vst [vmem:[#allocation26_spill] sm:$0xff] %v9606_v14  ;;  %v822_v17 = vpack.c.bf16 %v791_v28, %v790_v7 }
  0x97   :  { %7973 = vmatprep.mubr.msk.bf16.mxu0 %vm172_vm0, %v9540_v10  ;;  %v9582_v24 = vpack.c.bf16 %v1299_v21, %v1298_v9  ;;  %v1300_v31 = vld [vmem:[#allocation2 + $0xe8] sm:$0xff]  ;;  %v1301_v33 = vld [vmem:[#allocation2 + $0xf0] sm:$0xff]  ;;  %11648 = vst [vmem:[#allocation25_spill] sm:$0xff] %v9604_v59  ;;  %v9608_v29 = vpack.c.bf16 %v1751_v5, %v1750_v61  ;;  %v3714_v50 = vld [vmem:[#allocation3 + $0x108] sm:$0xff] }
  0x98   :  { %v1302_v36 = vld [vmem:[#allocation2 + $0xf8] sm:$0xff]  ;;  %v9591_v38 = vpack.c.bf16 %v1301_v33, %v1300_v31  ;;  %v2226_v44 = vld [vmem:[#allocation2 + $0x47] sm:$0xff]  ;;  %v2231_v42 = vld [vmem:[#allocation2 + $0x6f] sm:$0xff] }
  0x99   :  { %v1303_v37 = vld [vmem:[#allocation2 + $0x100] sm:$0xff]  ;;  %11650 = vst [vmem:[#allocation27_spill] sm:$0xff] %v9608_v29  ;;  %v2228_v62 = vld [vmem:[#allocation2 + $0x57] sm:$0xff]  ;;  %v3716_v60 = vld [vmem:[#allocation3 + $0x118] sm:$0xff] }
  0x9a   :  { %v9594_v39 = vpack.c.bf16 %v1303_v37, %v1302_v36  ;;  %v1304_v48 = vld [vmem:[#allocation2 + $0x108] sm:$0xff]  ;;  %v3715_v54 = vld [vmem:[#allocation3 + $0x110] sm:$0xff]  ;;  %v3748_v11 = vmul.f32 %v9291_v2, %v3716_v60  ;;  %v9635_v21 = vpack.c.bf16 %v2229_v19, %v2228_v62  ;;  %v9641_v31 = vld [vmem:[#allocation2 + $0x31] sm:$0xff] }
  0x9b   :  { %v1305_v58 = vld [vmem:[#allocation2 + $0x110] sm:$0xff]  ;;  %11655 = vst [vmem:[#allocation32_spill] sm:$0xff] %v9641_v31  ;;  %v2230_v41 = vld [vmem:[#allocation2 + $0x67] sm:$0xff]  ;;  %v3718_v61 = vld [vmem:[#allocation3 + $0x128] sm:$0xff] }
  0x9c   :  { %7876 = vmatmul.mubr.msk.bf16.gmra.mrb[16].mxu1 %vm172_vm0, %v328_v32  ;;  %v9612_v32 = vpack.c.bf16 %v1305_v58, %v1304_v48  ;;  %11653 = vst [vmem:[#allocation30_spill] sm:$0xff] %v9635_v21  ;;  %v3780_v27 = vadd.f32 %v9293_v3, %v3748_v11  ;;  %v2232_v48 = vld [vmem:[#allocation2 + $0x77] sm:$0xff]  ;;  %v2233_v5 = vld [vmem:[#allocation2 + $0x7f] sm:$0xff]  ;;  %v3750_v28 = vmul.f32 %v9291_v2, %v3718_v61 }
  0x9d   :  { %7879 = vmatprep.mubr.msk.bf16.mxu1 %vm172_vm0, %v329_v52  ;;  %v2227_v52 = vld [vmem:[#allocation2 + $0x4f] sm:$0xff]  ;;  %v9675_v19 = vpack.c.bf16 %v2233_v5, %v2232_v48  ;;  %v9686_v60 = vld [vmem:[#allocation2 + $0x39] sm:$0xff] }
  0x9e   :  { %7974 = vmatmul.mubr.msk.bf16.gmra.mrb[12].mxu0 %vm172_vm0, %v9557_v63  ;;  %11651 = vst [vmem:[#allocation28_spill] sm:$0xff] %v9612_v32  ;;  %v9629_v18 = vpack.c.bf16 %v2227_v52, %v2226_v44  ;;  %v3812_v40 = vmax.f32 %v3780_v27, 0.0  ;;  %v3717_v58 = vld [vmem:[#allocation3 + $0x120] sm:$0xff]  ;;  %v3720_v44 = vld [vmem:[#allocation3 + $0x138] sm:$0xff]  ;;  %11661 = vst [vmem:[#allocation38_spill] sm:$0xff] %v9686_v60 }
  0x9f   :  { %7977 = vmatprep.mubr.msk.bf16.mxu0 %vm172_vm0, %v9560_v12  ;;  %v3749_v7 = vmul.f32 %v9291_v2, %v3717_v58  ;;  %v3752_v52 = vmul.f32 %v9291_v2, %v3720_v44  ;;  %11660 = vst [vmem:[#allocation37_spill] sm:$0xff] %v9675_v19  ;;  %v2236_v27 = vld [vmem:[#allocation2 + $0x97] sm:$0xff]  ;;  %v3724_v58 = vld [vmem:[#allocation3 + $0x158] sm:$0xff]  ;;  %v2245_v31 = vld [vmem:[#allocation2 + $0xdf] sm:$0xff] }
  0xa0   :  { %11652 = vst [vmem:[#allocation29_spill] sm:$0xff] %v9629_v18  ;;  %v3756_v5 = vmul.f32 %v9291_v2, %v3724_v58  ;;  %v2241_v58 = vld [vmem:[#allocation2 + $0xbf] sm:$0xff] }
  0xa1   :  { %v3781_v62 = vadd.f32 %v9293_v3, %v3749_v7  ;;  %v3735_v60 = vld [vmem:[#allocation3 + $0x1b0] sm:$0xff]  ;;  %v3738_v59 = vld [vmem:[#allocation3 + $0x1c8] sm:$0xff] }
  0xa4   :  { %7880 = vmatmul.mubr.msk.bf16.gmra.mrb[20].mxu1 %vm172_vm0, %v330_v45  ;;  %v3713_v45 = vld [vmem:[#allocation3 + $0x100] sm:$0xff] }
  0xa5   :  { %7883 = vmatprep.mubr.msk.bf16.mxu1 %vm172_vm0, %v331_v53  ;;  %v3745_v6 = vmul.f32 %v9291_v2, %v3713_v45  ;;  %v3746_v53 = vmul.f32 %v9291_v2, %v3714_v50  ;;  %v9671_v45 = vadd.f32 %v9293_v3, %v3750_v28  ;;  %v9673_v50 = vld [vmem:[#allocation2 + $0x39] sm:$0xff] }
  0xa6   :  { %7978 = vmatmul.mubr.msk.bf16.gmra.mrb[16].mxu0 %vm172_vm0, %v9569_v13  ;;  %11659 = vst [vmem:[#allocation36_spill] sm:$0xff] %v9673_v50  ;;  %v2243_v50 = vld [vmem:[#allocation2 + $0xcf] sm:$0xff] }
  0xa7   :  { %7981 = vmatprep.mubr.msk.bf16.mxu0 %vm172_vm0, %v9572_v15  ;;  %v3778_v9 = vadd.f32 %v9293_v3, %v3746_v53  ;;  %v3813_v53 = vmax.f32 %v3781_v62, 0.0 }
  0xa9   :  { %v3810_v36 = vmax.f32 %v3778_v9, 0.0  ;;  %v2234_v9 = vld [vmem:[#allocation2 + $0x87] sm:$0xff]  ;;  %4231 = vst.msk [vmem:[#allocation2 + $0x38] sm:$0xff] %vm172_vm0, %v3813_v53 }
  0xab   :  { %4228 = vst.msk [vmem:[#allocation2 + $0x20] sm:$0xff] %vm172_vm0, %v3810_v36 }
  0xac   :  { %7884 = vmatmul.mubr.msk.bf16.gmra.mrb[24].mxu1 %vm172_vm0, %v332_v0  ;;  %v3747_v0 = vmul.f32 %v9291_v2, %v3715_v54  ;;  %v11546_v54 = vmax.f32 %v9671_v45, 0.0 }
  0xad   :  { %7887 = vmatprep.mubr.msk.bf16.mxu1 %vm172_vm0, %v333_v8  ;;  %v9632_v8 = vadd.f32 %v9293_v3, %v3745_v6  ;;  %v9683_v6 = vadd.f32 %v9293_v3, %v3752_v52  ;;  %v9727_v52 = vadd.f32 %v9293_v3, %v3756_v5 }
  0xae   :  { %7982 = vmatmul.mubr.msk.bf16.gmra.mrb[20].mxu0 %vm172_vm0, %v9579_v22  ;;  %v3779_v25 = vadd.f32 %v9293_v3, %v3747_v0 }
  0xaf   :  { %7985 = vmatprep.mubr.msk.bf16.mxu0 %vm172_vm0, %v9582_v24  ;;  %v11547_v33 = vmax.f32 %v9632_v8, 0.0  ;;  %v11540_v11 = vmax.f32 %v9683_v6, 0.0 }
  0xb0   :  { %v3811_v37 = vmax.f32 %v3779_v25, 0.0  ;;  %v2235_v25 = vld [vmem:[#allocation2 + $0x8f] sm:$0xff] }
  0xb1   :  { %v9648_v46 = vpack.c.bf16 %v3810_v36, %v11547_v33  ;;  %v9713_v7 = vpack.c.bf16 %v2235_v25, %v2234_v9  ;;  %v11544_v25 = vmax.f32 %v9727_v52, 0.0 }
  0xb2   :  { %v9655_v55 = vpack.c.bf16 %v3812_v40, %v3811_v37 }
  0xb3   :  { %11656 = vst [vmem:[#allocation33_spill] sm:$0xff] %v9648_v46  ;;  %11664 = vst [vmem:[#allocation41_spill] sm:$0xff] %v9713_v7 }
  0xb4   :  { %7888 = vmatmul.mubr.msk.bf16.gmra.mrb[28].mxu1 %vm172_vm0, %v334_v30  ;;  %v9639_v30 = vld [vmem:[#allocation2 + $0x29] sm:$0xff]  ;;  %11657 = vst [vmem:[#allocation34_spill] sm:$0xff] %v9655_v55  ;;  %v2249_v55 = vld [vmem:[#allocation2 + $0xff] sm:$0xff] }
  0xb5   :  { %7893 = vmatprep.mubr.msk.bf16.mxu1 %vm172_vm0, %v9589_v34  ;;  %11654 = vst [vmem:[#allocation31_spill] sm:$0xff] %v9639_v30  ;;  %4229 = vst.msk [vmem:[#allocation2 + $0x28] sm:$0xff] %vm172_vm0, %v3811_v37  ;;  %v3721_v37 = vld [vmem:[#allocation3 + $0x140] sm:$0xff] }
  0xb6   :  { %7986 = vmatmul.mubr.msk.bf16.gmra.mrb[24].mxu0 %vm172_vm0, %v9591_v38  ;;  %4230 = vst.msk [vmem:[#allocation2 + $0x30] sm:$0xff] %vm172_vm0, %v3812_v40  ;;  %v3722_v40 = vld [vmem:[#allocation3 + $0x148] sm:$0xff] }
  0xb7   :  { %7989 = vmatprep.mubr.msk.bf16.mxu0 %vm172_vm0, %v9594_v39  ;;  %v3754_v48 = vmul.f32 %v9291_v2, %v3722_v40  ;;  %v2239_v40 = vld [vmem:[#allocation2 + $0xaf] sm:$0xff] }
  0xbc   :  { %7894 = vmatmul.mubr.msk.bf16.vlgmr.msra.gmra.mrb[32].mxu1 %vm172_vm0, %v9602_v56 }
  0xbd   :  { %7897 = vmatprep.mubr.msk.bf16.mxu1 %vm172_vm0, %v9606_v14  ;;  %7926 = vmatpush3.bf16.msra.mxu1 %v1111_v16  ;;  %v3719_v16 = vld [vmem:[#allocation3 + $0x130] sm:$0xff] }
  0xbe   :  { %8926 = vmatprep.subr.msk.bf16.mxu1 %vm383_vm1, %v9614_v43  ;;  %7990 = vmatmul.mubr.msk.bf16.gmra.mrb[28].mxu0 %vm172_vm0, %v9612_v32  ;;  %v3751_v57 = vmul.f32 %v9291_v2, %v3719_v16  ;;  %v9719_v16 = vadd.f32 %v9293_v3, %v3754_v48  ;;  %v3725_v48 = vld [vmem:[#allocation3 + $0x160] sm:$0xff] }
  0xbf   :  { %7995 = vmatprep.mubr.msk.bf16.mxu0 %vm172_vm0, %v822_v17  ;;  %v9667_v17 = vpack.c.bf16 %v2231_v42, %v2230_v41  ;;  %v2237_v41 = vld [vmem:[#allocation2 + $0x9f] sm:$0xff]  ;;  %v3753_v42 = vmul.f32 %v9291_v2, %v3721_v37  ;;  %v2238_v37 = vld [vmem:[#allocation2 + $0xa7] sm:$0xff] }
  0xc0   :  { %v9721_v44 = vpack.c.bf16 %v2237_v41, %v2236_v27  ;;  %v2240_v41 = vld [vmem:[#allocation2 + $0xb7] sm:$0xff] }
  0xc1   :  { %11658 = vst [vmem:[#allocation35_spill] sm:$0xff] %v9667_v17  ;;  %v9716_v28 = vadd.f32 %v9293_v3, %v3753_v42 }
  0xc2   :  { %11665 = vst [vmem:[#allocation42_spill] sm:$0xff] %v9721_v44 }
  0xc3   :  { %v11542_v62 = vmax.f32 %v9716_v28, 0.0 }
  0xc4   :  { %7898 = vmatmul.mubr.msk.bf16.gmra.mrb[36].mxu1 %vm172_vm0, %v9629_v18 }
  0xc5   :  { %7901 = vmatprep.mubr.msk.bf16.mxu1 %vm172_vm0, %v9635_v21 }
  0xc6   :  { %7996 = vmatmul.mubr.msk.bf16.vlgmr.msra.gmra.mrb[0].mxu0 %vm172_vm0, %v9373_v26  ;;  %v9680_v26 = vadd.f32 %v9293_v3, %v3751_v57 }
  0xc7   :  { %8130 = vmatpush3.bf16.msra.mxu0 %v2615_v51  ;;  %7999 = vmatprep.mubr.msk.bf16.mxu0 %vm172_vm0, %v9414_v47  ;;  %v3723_v51 = vld [vmem:[#allocation3 + $0x150] sm:$0xff] }
  0xc8   :  { %8931 = vmatprep.subr.msk.bf16.mxu0 %vm383_vm1, %v9289_v1  ;;  %v11543_v0 = vmax.f32 %v9680_v26, 0.0  ;;  %v9694_v1 = vpack.c.bf16 %v11546_v54, %v3813_v53  ;;  %v3755_v61 = vmul.f32 %v9291_v2, %v3723_v51  ;;  %v11541_v53 = vmax.f32 %v9719_v16, 0.0  ;;  %v3726_v51 = vld [vmem:[#allocation3 + $0x168] sm:$0xff] }
  0xc9   :  { %v3758_v5 = vmul.f32 %v9291_v2, %v3726_v51  ;;  %v9765_v51 = vpack.c.bf16 %v2241_v58, %v2240_v41  ;;  %v3729_v58 = vld [vmem:[#allocation3 + $0x180] sm:$0xff] }
  0xca   :  { %11662 = vst [vmem:[#allocation39_spill] sm:$0xff] %v9694_v1  ;;  %v9703_v36 = vpack.c.bf16 %v11540_v11, %v11543_v0  ;;  %v9724_v57 = vadd.f32 %v9293_v3, %v3755_v61  ;;  %v9739_v27 = vpack.c.bf16 %v11541_v53, %v11542_v62  ;;  %v3757_v61 = vmul.f32 %v9291_v2, %v3725_v48  ;;  %v3727_v11 = vld [vmem:[#allocation3 + $0x170] sm:$0xff]  ;;  %v3728_v53 = vld [vmem:[#allocation3 + $0x178] sm:$0xff] }
  0xcb   :  { %v3759_v62 = vmul.f32 %v9291_v2, %v3727_v11  ;;  %v3760_v0 = vmul.f32 %v9291_v2, %v3728_v53  ;;  %v9763_v48 = vadd.f32 %v9293_v3, %v3758_v5  ;;  %11669 = vst [vmem:[#allocation46_spill] sm:$0xff] %v9765_v51  ;;  %v3730_v5 = vld [vmem:[#allocation3 + $0x188] sm:$0xff]  ;;  %v3761_v30 = vmul.f32 %v9291_v2, %v3729_v58  ;;  %v2247_v1 = vld [vmem:[#allocation2 + $0xef] sm:$0xff] }
  0xcc   :  { %7902 = vmatmul.mubr.msk.bf16.gmra.mrb[40].mxu1 %vm172_vm0, %v9667_v17  ;;  %11663 = vst [vmem:[#allocation40_spill] sm:$0xff] %v9703_v36  ;;  %v11545_v9 = vmax.f32 %v9724_v57, 0.0  ;;  %11666 = vst [vmem:[#allocation43_spill] sm:$0xff] %v9739_v27  ;;  %v3731_v27 = vld [vmem:[#allocation3 + $0x190] sm:$0xff] }
  0xcd   :  { %7905 = vmatprep.mubr.msk.bf16.mxu1 %vm172_vm0, %v9675_v19  ;;  %v9768_v54 = vadd.f32 %v9293_v3, %v3759_v62  ;;  %v9771_v11 = vadd.f32 %v9293_v3, %v3760_v0  ;;  %v11548_v33 = vmax.f32 %v9763_v48, 0.0  ;;  %v2244_v0 = vld [vmem:[#allocation2 + $0xd7] sm:$0xff] }
  0xce   :  { %8000 = vmatmul.mubr.msk.bf16.gmra.mrb[4].mxu0 %vm172_vm0, %v9419_v49  ;;  %v9747_v42 = vpack.c.bf16 %v11544_v25, %v11545_v9  ;;  %v9757_v25 = vpack.c.bf16 %v2239_v40, %v2238_v37  ;;  %v9760_v9 = vadd.f32 %v9293_v3, %v3757_v61  ;;  %v2242_v61 = vld [vmem:[#allocation2 + $0xc7] sm:$0xff] }
  0xcf   :  { %8003 = vmatprep.mubr.msk.bf16.mxu0 %vm172_vm0, %v9476_v20  ;;  %v11551_v37 = vmax.f32 %v9768_v54, 0.0  ;;  %v11550_v40 = vmax.f32 %v9771_v11, 0.0 }
  0xd0   :  { %11667 = vst [vmem:[#allocation44_spill] sm:$0xff] %v9747_v42  ;;  %11668 = vst [vmem:[#allocation45_spill] sm:$0xff] %v9757_v25  ;;  %v11549_v53 = vmax.f32 %v9760_v9, 0.0  ;;  %v3762_v42 = vmul.f32 %v9291_v2, %v3730_v5  ;;  %v9809_v5 = vpack.c.bf16 %v2245_v31, %v2244_v0  ;;  %v3734_v0 = vld [vmem:[#allocation3 + $0x1a8] sm:$0xff] }
  0xd1   :  { %v9791_v41 = vpack.c.bf16 %v11550_v40, %v11551_v37  ;;  %v9801_v40 = vpack.c.bf16 %v2243_v50, %v2242_v61  ;;  %v9804_v37 = vadd.f32 %v9293_v3, %v3761_v30  ;;  %v2246_v61 = vld [vmem:[#allocation2 + $0xe7] sm:$0xff]  ;;  %v3766_v29 = vmul.f32 %v9291_v2, %v3734_v0 }
  0xd2   :  { %v9783_v62 = vpack.c.bf16 %v11548_v33, %v11549_v53  ;;  %v3732_v33 = vld [vmem:[#allocation3 + $0x198] sm:$0xff]  ;;  %v3763_v53 = vmul.f32 %v9291_v2, %v3731_v27  ;;  %v9807_v58 = vadd.f32 %v9293_v3, %v3762_v42  ;;  %11673 = vst [vmem:[#allocation50_spill] sm:$0xff] %v9809_v5  ;;  %v2248_v42 = vld [vmem:[#allocation2 + $0xf7] sm:$0xff] }
  0xd3   :  { %11671 = vst [vmem:[#allocation48_spill] sm:$0xff] %v9791_v41  ;;  %11672 = vst [vmem:[#allocation49_spill] sm:$0xff] %v9801_v40  ;;  %v9853_v0 = vpack.c.bf16 %v2249_v55, %v2248_v42  ;;  %v3737_v42 = vld [vmem:[#allocation3 + $0x1c0] sm:$0xff] }
  0xd4   :  { %7906 = vmatmul.mubr.msk.bf16.gmra.mrb[44].mxu1 %vm172_vm0, %v9713_v7  ;;  %11670 = vst [vmem:[#allocation47_spill] sm:$0xff] %v9783_v62  ;;  %v3764_v62 = vmul.f32 %v9291_v2, %v3732_v33  ;;  %v9812_v41 = vadd.f32 %v9293_v3, %v3763_v53  ;;  %v11555_v33 = vmax.f32 %v9804_v37, 0.0  ;;  %v11554_v36 = vmax.f32 %v9807_v58, 0.0 }
  0xd5   :  { %7909 = vmatprep.mubr.msk.bf16.mxu1 %vm172_vm0, %v9721_v44  ;;  %11677 = vst [vmem:[#allocation54_spill] sm:$0xff] %v9853_v0 }
  0xd6   :  { %8004 = vmatmul.mubr.msk.bf16.gmra.mrb[8].mxu0 %vm172_vm0, %v9489_v23  ;;  %v9815_v27 = vadd.f32 %v9293_v3, %v3764_v62  ;;  %v11557_v50 = vmax.f32 %v9812_v41, 0.0  ;;  %v9827_v31 = vpack.c.bf16 %v11554_v36, %v11555_v33  ;;  %v3733_v62 = vld [vmem:[#allocation3 + $0x1a0] sm:$0xff]  ;;  %v3736_v36 = vld [vmem:[#allocation3 + $0x1b8] sm:$0xff]  ;;  %v3767_v33 = vmul.f32 %v9291_v2, %v3735_v60 }
  0xd7   :  { %8007 = vmatprep.mubr.msk.bf16.mxu0 %vm172_vm0, %v9537_v35  ;;  %v3765_v46 = vmul.f32 %v9291_v2, %v3733_v62  ;;  %v9851_v62 = vadd.f32 %v9293_v3, %v3766_v29  ;;  %v741_v29 = vld [vmem:[#allocation2 + $0x7] sm:$0xff] }
  0xd8   :  { %v11556_v30 = vmax.f32 %v9815_v27, 0.0  ;;  %11674 = vst [vmem:[#allocation51_spill] sm:$0xff] %v9827_v31  ;;  %v3768_v31 = vmul.f32 %v9291_v2, %v3736_v36 }
  0xd9   :  { %v11568_v32 = vmax.f32 %v9851_v62, 0.0 }
  0xda   :  { %v9835_v53 = vpack.c.bf16 %v11556_v30, %v11557_v50  ;;  %v9845_v30 = vpack.c.bf16 %v2247_v1, %v2246_v61  ;;  %v9848_v50 = vadd.f32 %v9293_v3, %v3765_v46  ;;  %v9859_v60 = vadd.f32 %v9293_v3, %v3768_v31  ;;  %v2250_v61 = vld [vmem:[#allocation2 + $0x107] sm:$0xff] }
  0xdc   :  { %7910 = vmatmul.mubr.msk.bf16.gmra.mrb[48].mxu1 %vm172_vm0, %v9757_v25  ;;  %11675 = vst [vmem:[#allocation52_spill] sm:$0xff] %v9835_v53  ;;  %11676 = vst [vmem:[#allocation53_spill] sm:$0xff] %v9845_v30  ;;  %v9856_v53 = vadd.f32 %v9293_v3, %v3767_v33  ;;  %v11569_v36 = vmax.f32 %v9848_v50, 0.0  ;;  %v11573_v46 = vmax.f32 %v9859_v60, 0.0  ;;  %v2251_v33 = vld [vmem:[#allocation2 + $0x10f] sm:$0xff] }
  0xdd   :  { %7913 = vmatprep.mubr.msk.bf16.mxu1 %vm172_vm0, %v9765_v51  ;;  %11678 = vst [vmem:[#allocation55_spill] sm:$0xff] %v9859_v60  ;;  %v3739_v51 = vld [vmem:[#allocation3 + $0x1d0] sm:$0xff] }
  0xde   :  { %8008 = vmatmul.mubr.msk.bf16.gmra.mrb[12].mxu0 %vm172_vm0, %v9540_v10  ;;  %v11574_v1 = vmax.f32 %v9856_v53, 0.0  ;;  %v9871_v55 = vpack.c.bf16 %v11568_v32, %v11569_v36  ;;  %v3740_v32 = vld [vmem:[#allocation3 + $0x1d8] sm:$0xff] }
  0xdf   :  { %8011 = vmatprep.mubr.msk.bf16.mxu0 %vm172_vm0, %v9557_v63  ;;  %v2838_v36 = vld [vmem:[#allocation2 + $0x109] sm:$0xff]  ;;  %v3772_v60 = vmul.f32 %v9291_v2, %v3740_v32 }
  0xe0   :  { %11679 = vst [vmem:[#allocation56_spill] sm:$0xff] %v9871_v55  ;;  %v9879_v31 = vpack.c.bf16 %v11573_v46, %v11574_v1  ;;  %v2839_v55 = vld [vmem:[#allocation2 + $0x111] sm:$0xff]  ;;  %v9889_v46 = vpack.c.bf16 %v2251_v33, %v2250_v61  ;;  %v3744_v33 = vld [vmem:[#allocation3 + $0x1f8] sm:$0xff] }
  0xe2   :  { %11680 = vst [vmem:[#allocation57_spill] sm:$0xff] %v9879_v31  ;;  %11681 = vst [vmem:[#allocation58_spill] sm:$0xff] %v9889_v46 }
  0xe4   :  { %7914 = vmatmul.mubr.msk.bf16.gmra.mrb[52].mxu1 %vm172_vm0, %v9801_v40  ;;  %v3770_v40 = vmul.f32 %v9291_v2, %v3738_v59 }
  0xe5   :  { %7917 = vmatprep.mubr.msk.bf16.mxu1 %vm172_vm0, %v9809_v5  ;;  %v3769_v5 = vmul.f32 %v9291_v2, %v3737_v42 }
  0xe6   :  { %8012 = vmatmul.mubr.msk.bf16.gmra.mrb[16].mxu0 %vm172_vm0, %v9560_v12  ;;  %v9895_v59 = vadd.f32 %v9293_v3, %v3770_v40 }
  0xe7   :  { %8015 = vmatprep.mubr.msk.bf16.mxu0 %vm172_vm0, %v9569_v13  ;;  %v9892_v42 = vadd.f32 %v9293_v3, %v3769_v5 }
  0xe8   :  { %v11576_v32 = vmax.f32 %v9895_v59, 0.0 }
  0xec   :  { %7918 = vmatmul.mubr.msk.bf16.gmra.mrb[56].mxu1 %vm172_vm0, %v9845_v30  ;;  %v742_v30 = vld [vmem:[#allocation2 + $0xf] sm:$0xff] }
  0xed   :  { %7921 = vmatprep.mubr.msk.bf16.mxu1 %vm172_vm0, %v9853_v0  ;;  %v3771_v0 = vmul.f32 %v9291_v2, %v3739_v51  ;;  %v773_v1 = vpack.c.bf16 %v742_v30, %v741_v29  ;;  %v11577_v2 = vmax.f32 %v9892_v42, 0.0  ;;  %v9905_v51 = vpack.c.bf16 %v2839_v55, %v2838_v36  ;;  %v3741_v30 = vld [vmem:[#allocation3 + $0x1e0] sm:$0xff]  ;;  %v3743_v55 = vld [vmem:[#allocation3 + $0x1f0] sm:$0xff] }
  0xee   :  { %8016 = vmatmul.mubr.msk.bf16.gmra.mrb[20].mxu0 %vm172_vm0, %v9572_v15  ;;  %v9901_v15 = vadd.f32 %v9293_v3, %v3772_v60  ;;  %v8959_v60 = vld [vmem:[#allocation8] ss:$0 sm:$0xff] }
  0xef   :  { %8019 = vmatprep.mubr.msk.bf16.mxu0 %vm172_vm0, %v9579_v22  ;;  %v9898_v31 = vadd.f32 %v9293_v3, %v3771_v0  ;;  %11682 = vst [vmem:[#allocation59_spill] sm:$0xff] %v9905_v51  ;;  %v9915_v40 = vpack.c.bf16 %v11576_v32, %v11577_v2  ;;  %v3742_v0 = vld [vmem:[#allocation3 + $0x1e8] sm:$0xff]  ;;  %v3773_v36 = vmul.f32 %v8959_v60, %v3741_v30  ;;  %v11685_v30 = vmax.f32 %v9632_v8, 0.0 }
  0xf0   :  { %v11579_v5 = vmax.f32 %v9901_v15, 0.0  ;;  %v3774_v29 = vmul.f32 %v8959_v60, %v3742_v0  ;;  %v9926_v32 = vld [vmem:[#allocation2 + $0x11] sm:$0xff]  ;;  %v3775_v2 = vmul.f32 %v8959_v60, %v3743_v55  ;;  %v1847_v51 = vsel %vm383_vm1, %v9614_v43, 0 }
  0xf1   :  { %v11580_v61 = vmax.f32 %v9898_v31, 0.0  ;;  %11684 = vst [vmem:[#allocation61_spill] sm:$0xff] %v9926_v32  ;;  %4227 = vst.msk [vmem:[#allocation2 + $0x18] sm:$0xff] %vm172_vm0, %v11685_v30  ;;  %v9941_v55 = vld [vmem:[#allocation2 + $0x117] sm:$0xff]  ;;  %v11690_v30 = vmax.f32 %v9683_v6, 0.0 }
  0xf2   :  { %11686 = vst [vmem:[#allocation62_spill] sm:$0xff] %v9941_v55  ;;  %v10007_v6 = vld [vmem:[#allocation2 + $0x59] sm:$0xff]  ;;  %v10067_v55 = vld [vmem:[#allocation2 + $0x91] sm:$0xff] }
  0xf3   :  { %v9922_v3 = vpack.c.bf16 %v11579_v5, %v11580_v61 }
  0xf4   :  { %7922 = vmatmul.mubr.msk.bf16.gmra.mrb[60].mxu1 %vm172_vm0, %v9889_v46  ;;  %v8960_v46 = vld [vmem:[#allocation9] ss:$0 sm:$0xff] }
  0xf5   :  { %7927 = vmatprep.mubr.msk.bf16.mxu1 %vm172_vm0, %v773_v1  ;;  %11683 = vst [vmem:[#allocation60_spill] sm:$0xff] %v9922_v3  ;;  %v3776_v1 = vmul.f32 %v8959_v60, %v3744_v33  ;;  %v9930_v5 = vadd.f32 %v8960_v46, %v3773_v36  ;;  %v9932_v61 = vadd.f32 %v8960_v46, %v3774_v29  ;;  %v9945_v36 = vld [vmem:[#allocation6 + $0x4] sm:$0x3] }
  0xf6   :  { %8020 = vmatmul.mubr.msk.bf16.gmra.mrb[24].mxu0 %vm172_vm0, %v9582_v24  ;;  %v9937_v0 = vadd.f32 %v8960_v46, %v3775_v2  ;;  %v9973_v2 = vld [vmem:[#allocation2 + $0x49] sm:$0xff] }
  0xf7   :  { %8023 = vmatprep.mubr.msk.bf16.mxu0 %vm172_vm0, %v9591_v38  ;;  %v3808_v3 = vadd.f32 %v8960_v46, %v3776_v1  ;;  %v11584_v60 = vmax.f32 %v9930_v5, 0.0  ;;  %v11583_v33 = vmax.f32 %v9932_v61, 0.0  ;;  %v9971_v46 = vld [vmem:[#allocation2 + $0x41] sm:$0xff]  ;;  %v9983_v1 = vld [vmem:[#allocation2 + $0x51] sm:$0xff] }
  0xf8   :  { %v11582_v29 = vmax.f32 %v9937_v0, 0.0 }
  0xf9   :  { %v3840_v32 = vmax.f32 %v3808_v3, 0.0  ;;  %v9954_v8 = vpack.c.bf16 %v11583_v33, %v11584_v60  ;;  %v11688_v3 = vmax.f32 %v9671_v45, 0.0  ;;  %v9994_v45 = vld [vmem:[#allocation6 + $0x6] sm:$0x3]  ;;  %v10043_v60 = vld [vmem:[#allocation2 + $0x81] sm:$0xff] }
  0xfa   :  { %v10025_v33 = vld [vmem:[#allocation2 + $0x71] sm:$0xff] }
  0xfb   :  { %v9960_v43 = vpack.c.bf16 %v3840_v32, %v11582_v29  ;;  %4258 = vst.msk [vmem:[#allocation2 + $0x110] sm:$0xff] %vm172_vm0, %v3840_v32  ;;  %v11689_v32 = vmax.f32 %v9680_v26, 0.0  ;;  %v10001_v26 = vld [vmem:[#allocation2 + $0x59] sm:$0xff]  ;;  %v10023_v29 = vld [vmem:[#allocation2 + $0x69] sm:$0xff] }
  0xfc   :  { %7928 = vmatmul.mubr.msk.bf16.vlgmr.msra.gmra.mrb[32].mxu1 %vm172_vm0, %v9589_v34  ;;  %v9967_v34 = vld [vmem:[#allocation2 + $0x49] sm:$0xff] }
  0xfd   :  { %7931 = vmatprep.mubr.msk.bf16.mxu1 %vm172_vm0, %v9602_v56  ;;  %8028 = vmatpush3.bf16.msra.mxu1 %v1847_v51  ;;  %11687 = vst [vmem:[#allocation63_spill] sm:$0xff] %v9967_v34  ;;  %v9975_v51 = vld [vmem:[#allocation2 + $0x41] sm:$0xff]  ;;  %v10061_v34 = vld [vmem:[#allocation2 + $0x91] sm:$0xff] }
  0xfe   :  { %8927 = vmatprep.subr.msk.bf16.mxu1 %vm383_vm1, %v9945_v36  ;;  %8024 = vmatmul.mubr.msk.bf16.gmra.mrb[28].mxu0 %vm172_vm0, %v9594_v39  ;;  %4232 = vst.msk [vmem:[#allocation2 + $0x40] sm:$0xff] %vm172_vm0, %v11688_v3  ;;  %4233 = vst.msk [vmem:[#allocation2 + $0x48] sm:$0xff] %vm172_vm0, %v11689_v32  ;;  %v10005_v3 = vld [vmem:[#allocation2 + $0x61] sm:$0xff]  ;;  %v11714_v56 = vld [vmem:[#allocation53_spill] sm:$0xff] }
  0xff   :  { %8131 = vmatprep.mubr.msk.bf16.mxu0 %vm172_vm0, %v9414_v47  ;;  %v9987_v47 = vld [vmem:[#allocation2 + $0x51] sm:$0xff]  ;;  %v10009_v32 = vld [vmem:[#allocation2 + $0x61] sm:$0xff] }
 0x100   :  { %4234 = vst.msk [vmem:[#allocation2 + $0x50] sm:$0xff] %vm172_vm0, %v11690_v30  ;;  %v10029_v30 = vld [vmem:[#allocation2 + $0x71] sm:$0xff] }
 0x104   :  { %7932 = vmatmul.mubr.msk.bf16.gmra.mrb[36].mxu1 %vm172_vm0, %v9606_v14  ;;  %v10185_v14 = vld [vmem:[#allocation2 + $0xf1] sm:$0xff] }
 0x105   :  { %7935 = vmatprep.mubr.msk.bf16.mxu1 %vm172_vm0, %v9629_v18  ;;  %v10183_v18 = vld [vmem:[#allocation2 + $0xe9] sm:$0xff] }
 0x106   :  { %8132 = vmatmul.mubr.msk.bf16.vlgmr.msra.gmra.mrb[0].mxu0 %vm172_vm0, %v9419_v49  ;;  %v11691_v49 = vmax.f32 %v9716_v28, 0.0  ;;  %v11693_v28 = vmax.f32 %v9724_v57, 0.0  ;;  %v10047_v57 = vld [vmem:[#allocation2 + $0x79] sm:$0xff] }
 0x107   :  { %8198 = vmatpush3.bf16.msra.mxu0 %v9299_v4  ;;  %8135 = vmatprep.mubr.msk.bf16.mxu0 %vm172_vm0, %v9476_v20  ;;  %v11692_v4 = vmax.f32 %v9719_v16, 0.0  ;;  %v10019_v20 = vld [vmem:[#allocation2 + $0x69] sm:$0xff]  ;;  %v11694_v16 = vmax.f32 %v9727_v52, 0.0  ;;  %v10085_v52 = vld [vmem:[#allocation2 + $0x99] sm:$0xff] }
 0x108   :  { %8932 = vmatprep.subr.msk.bf16.mxu0 %vm383_vm1, %v9994_v45  ;;  %4235 = vst.msk [vmem:[#allocation2 + $0x58] sm:$0xff] %vm172_vm0, %v11691_v49  ;;  %4237 = vst.msk [vmem:[#allocation2 + $0x68] sm:$0xff] %vm172_vm0, %v11693_v28  ;;  %v10037_v49 = vld [vmem:[#allocation2 + $0x79] sm:$0xff]  ;;  %v10049_v28 = vld [vmem:[#allocation2 + $0x81] sm:$0xff] }
 0x109   :  { %4236 = vst.msk [vmem:[#allocation2 + $0x60] sm:$0xff] %vm172_vm0, %v11692_v4  ;;  %4238 = vst.msk [vmem:[#allocation2 + $0x70] sm:$0xff] %vm172_vm0, %v11694_v16  ;;  %v11695_v16 = vmax.f32 %v9760_v9, 0.0  ;;  %v10059_v4 = vld [vmem:[#allocation2 + $0x89] sm:$0xff]  ;;  %v11697_v9 = vmax.f32 %v9768_v54, 0.0  ;;  %v10087_v54 = vld [vmem:[#allocation2 + $0xa1] sm:$0xff] }
 0x10b   :  { %4239 = vst.msk [vmem:[#allocation2 + $0x78] sm:$0xff] %vm172_vm0, %v11695_v16  ;;  %v10099_v16 = vld [vmem:[#allocation2 + $0xa9] sm:$0xff] }
 0x10c   :  { %7936 = vmatmul.mubr.msk.bf16.gmra.mrb[40].mxu1 %vm172_vm0, %v9635_v21  ;;  %v10161_v21 = vld [vmem:[#allocation2 + $0xd9] sm:$0xff] }
 0x10d   :  { %7939 = vmatprep.mubr.msk.bf16.mxu1 %vm172_vm0, %v9667_v17  ;;  %v10147_v17 = vld [vmem:[#allocation2 + $0xd1] sm:$0xff] }
 0x10e   :  { %8136 = vmatmul.mubr.msk.bf16.gmra.mrb[4].mxu0 %vm172_vm0, %v9489_v23  ;;  %v11696_v23 = vmax.f32 %v9763_v48, 0.0  ;;  %v11698_v48 = vmax.f32 %v9771_v11, 0.0  ;;  %v11699_v11 = vmax.f32 %v9804_v37, 0.0  ;;  %v10109_v37 = vld [vmem:[#allocation2 + $0xb1] sm:$0xff] }
 0x10f   :  { %8139 = vmatprep.mubr.msk.bf16.mxu0 %vm172_vm0, %v9537_v35  ;;  %v10065_v35 = vld [vmem:[#allocation2 + $0x89] sm:$0xff] }
 0x110   :  { %4240 = vst.msk [vmem:[#allocation2 + $0x80] sm:$0xff] %vm172_vm0, %v11696_v23  ;;  %4241 = vst.msk [vmem:[#allocation2 + $0x88] sm:$0xff] %vm172_vm0, %v11697_v9  ;;  %v10081_v23 = vld [vmem:[#allocation2 + $0x99] sm:$0xff]  ;;  %v10089_v9 = vld [vmem:[#allocation2 + $0xa1] sm:$0xff] }
 0x111   :  { %4242 = vst.msk [vmem:[#allocation2 + $0x90] sm:$0xff] %vm172_vm0, %v11698_v48  ;;  %4243 = vst.msk [vmem:[#allocation2 + $0x98] sm:$0xff] %vm172_vm0, %v11699_v11  ;;  %v11700_v48 = vmax.f32 %v9807_v58, 0.0  ;;  %v11701_v11 = vmax.f32 %v9812_v41, 0.0  ;;  %v11702_v58 = vmax.f32 %v9815_v27, 0.0  ;;  %v10127_v41 = vld [vmem:[#allocation2 + $0xb9] sm:$0xff] }
 0x112   :  { %v11706_v27 = vld [vmem:[#allocation49_spill] sm:$0xff] }
 0x113   :  { %4244 = vst.msk [vmem:[#allocation2 + $0xa0] sm:$0xff] %vm172_vm0, %v11700_v48  ;;  %v10117_v48 = vld [vmem:[#allocation2 + $0xb9] sm:$0xff] }
 0x114   :  { %7940 = vmatmul.mubr.msk.bf16.gmra.mrb[44].mxu1 %vm172_vm0, %v9675_v19  ;;  %v10145_v19 = vld [vmem:[#allocation2 + $0xc9] sm:$0xff] }
 0x115   :  { %7943 = vmatprep.mubr.msk.bf16.mxu1 %vm172_vm0, %v9713_v7  ;;  %v10105_v7 = vld [vmem:[#allocation2 + $0xb1] sm:$0xff] }
 0x116   :  { %8140 = vmatmul.mubr.msk.bf16.gmra.mrb[8].mxu0 %vm172_vm0, %v9540_v10  ;;  %v10139_v10 = vld [vmem:[#allocation2 + $0xc9] sm:$0xff] }
 0x117   :  { %8143 = vmatprep.mubr.msk.bf16.mxu0 %vm172_vm0, %v9557_v63  ;;  %v10103_v63 = vld [vmem:[#allocation2 + $0xa9] sm:$0xff] }
 0x118   :  { %4245 = vst.msk [vmem:[#allocation2 + $0xa8] sm:$0xff] %vm172_vm0, %v11701_v11  ;;  %4246 = vst.msk [vmem:[#allocation2 + $0xb0] sm:$0xff] %vm172_vm0, %v11702_v58  ;;  %v10129_v11 = vld [vmem:[#allocation2 + $0xc1] sm:$0xff]  ;;  %v11703_v58 = vmax.f32 %v9848_v50, 0.0  ;;  %v11707_v50 = vmax.f32 %v9856_v53, 0.0 }
 0x119   :  { %v10167_v53 = vld [vmem:[#allocation2 + $0xe1] sm:$0xff] }
 0x11a   :  { %4247 = vst.msk [vmem:[#allocation2 + $0xb8] sm:$0xff] %vm172_vm0, %v11703_v58 }
 0x11c   :  { %7944 = vmatmul.mubr.msk.bf16.gmra.mrb[48].mxu1 %vm172_vm0, %v9721_v44  ;;  %v10123_v44 = vld [vmem:[#allocation2 + $0xc1] sm:$0xff] }
 0x11d   :  { %7947 = vmatprep.mubr.msk.bf16.mxu1 %vm172_vm0, %v9757_v25  ;;  %v10141_v25 = vld [vmem:[#allocation2 + $0xd1] sm:$0xff]  ;;  %4249 = vst.msk [vmem:[#allocation2 + $0xc8] sm:$0xff] %vm172_vm0, %v11707_v50  ;;  %v10169_v50 = vld [vmem:[#allocation2 + $0xe1] sm:$0xff] }
 0x11e   :  { %8144 = vmatmul.mubr.msk.bf16.gmra.mrb[12].mxu0 %vm172_vm0, %v9560_v12  ;;  %v11704_v12 = vmax.f32 %v9851_v62, 0.0  ;;  %v11708_v62 = vld [vmem:[#allocation55_spill] sm:$0xff] }
 0x11f   :  { %8147 = vmatprep.mubr.msk.bf16.mxu0 %vm172_vm0, %v9569_v13  ;;  %v11705_v13 = vld [vmem:[#allocation46_spill] sm:$0xff]  ;;  %v11709_v58 = vmax.f32 %v11708_v62, 0.0  ;;  %v11711_v62 = vmax.f32 %v9892_v42, 0.0  ;;  %v10189_v42 = vld [vmem:[#allocation2 + $0xf1] sm:$0xff] }
 0x120   :  { %4248 = vst.msk [vmem:[#allocation2 + $0xc0] sm:$0xff] %vm172_vm0, %v11704_v12  ;;  %v11710_v12 = vld [vmem:[#allocation23_spill] sm:$0xff] }
 0x121   :  { %4250 = vst.msk [vmem:[#allocation2 + $0xd0] sm:$0xff] %vm172_vm0, %v11709_v58  ;;  %v11720_v58 = vmax.f32 %v9937_v0, 0.0  ;;  %v2059_v0 = vsel %vm383_vm1, %v9945_v36, 0  ;;  %v1783_v36 = vpack.c.bf16 %v9983_v1, %v9973_v2 }
 0x124   :  { %7948 = vmatmul.mubr.msk.bf16.gmra.mrb[52].mxu1 %vm172_vm0, %v11705_v13  ;;  %v10179_v13 = vld [vmem:[#allocation2 + $0xe9] sm:$0xff] }
 0x125   :  { %7951 = vmatprep.mubr.msk.bf16.mxu1 %vm172_vm0, %v11706_v27  ;;  %v10165_v27 = vld [vmem:[#allocation2 + $0xd9] sm:$0xff] }
 0x126   :  { %8148 = vmatmul.mubr.msk.bf16.gmra.mrb[16].mxu0 %vm172_vm0, %v11710_v12  ;;  %4251 = vst.msk [vmem:[#allocation2 + $0xd8] sm:$0xff] %vm172_vm0, %v11711_v62  ;;  %v11712_v12 = vmax.f32 %v9895_v59, 0.0  ;;  %v11715_v62 = vmax.f32 %v9898_v31, 0.0  ;;  %v11716_v59 = vmax.f32 %v9901_v15, 0.0  ;;  %v10207_v31 = vld [vmem:[#allocation2 + $0xf9] sm:$0xff] }
 0x127   :  { %8151 = vmatprep.mubr.msk.bf16.mxu0 %vm172_vm0, %v9579_v22  ;;  %v11713_v22 = vld [vmem:[#allocation50_spill] sm:$0xff]  ;;  %11717 = vst [vmem:[#allocation55_spill] sm:$0xff] %v10207_v31  ;;  %v10234_v31 = vld [vmem:[#allocation6 + $0xc] sm:$0x3] }
 0x128   :  { %4252 = vst.msk [vmem:[#allocation2 + $0xe0] sm:$0xff] %vm172_vm0, %v11712_v12  ;;  %4253 = vst.msk [vmem:[#allocation2 + $0xe8] sm:$0xff] %vm172_vm0, %v11715_v62  ;;  %v10197_v12 = vld [vmem:[#allocation2 + $0xf9] sm:$0xff]  ;;  %v10209_v62 = vld [vmem:[#allocation2 + $0x101] sm:$0xff] }
 0x129   :  { %4254 = vst.msk [vmem:[#allocation2 + $0xf0] sm:$0xff] %vm172_vm0, %v11716_v59  ;;  %v11718_v59 = vmax.f32 %v9930_v5, 0.0  ;;  %v11723_v5 = vld [vmem:[#allocation28_spill] sm:$0xff]  ;;  %v11724_v15 = vld [vmem:[#allocation38_spill] sm:$0xff] }
 0x12b   :  { %4255 = vst.msk [vmem:[#allocation2 + $0xf8] sm:$0xff] %vm172_vm0, %v11718_v59  ;;  %v2546_v59 = vld [vmem:[#allocation2 + $0x118] sm:$0xff] }
 0x12c   :  { %7952 = vmatmul.mubr.msk.bf16.gmra.mrb[56].mxu1 %vm172_vm0, %v11713_v22  ;;  %v10203_v22 = vld [vmem:[#allocation2 + $0x101] sm:$0xff] }
 0x12d   :  { %7955 = vmatprep.mubr.msk.bf16.mxu1 %vm172_vm0, %v11714_v56  ;;  %4257 = vst.msk [vmem:[#allocation2 + $0x108] sm:$0xff] %vm172_vm0, %v11720_v58  ;;  %v11722_v56 = vld [vmem:[#allocation25_spill] sm:$0xff] }
 0x12e   :  { %8152 = vmatmul.mubr.msk.bf16.gmra.mrb[20].mxu0 %vm172_vm0, %v9582_v24  ;;  %v11719_v24 = vmax.f32 %v9932_v61, 0.0  ;;  %v2547_v61 = vld [vmem:[#allocation2 + $0x120] sm:$0xff] }
 0x12f   :  { %8155 = vmatprep.mubr.msk.bf16.mxu0 %vm172_vm0, %v9591_v38  ;;  %v11721_v38 = vld [vmem:[#allocation54_spill] sm:$0xff]  ;;  %v2563_v58 = vpack.c.bf16 %v2547_v61, %v2546_v59  ;;  %v4459_v59 = vsel %vm383_vm1, %v9994_v45, 0  ;;  %v10255_v61 = vld [vmem:[#allocation6] sm:$0x3] }
 0x130   :  { %4256 = vst.msk [vmem:[#allocation2 + $0x100] sm:$0xff] %vm172_vm0, %v11719_v24  ;;  %v1782_v24 = vpack.c.bf16 %v9971_v46, %v11724_v15  ;;  %v11729_v45 = vld [vmem:[#allocation40_spill] sm:$0xff] }
 0x134   :  { %7956 = vmatmul.mubr.msk.bf16.gmra.mrb[60].mxu1 %vm172_vm0, %v11721_v38  ;;  %v11725_v38 = vld [vmem:[#allocation27_spill] sm:$0xff] }
 0x135   :  { %8029 = vmatprep.mubr.msk.bf16.mxu1 %vm172_vm0, %v11722_v56 }
 0x136   :  { %8156 = vmatmul.mubr.msk.bf16.gmra.mrb[24].mxu0 %vm172_vm0, %v9594_v39  ;;  %v11726_v39 = vld [vmem:[#allocation33_spill] sm:$0xff] }
 0x137   :  { %8159 = vmatprep.mubr.msk.bf16.mxu0 %vm172_vm0, %v11723_v5  ;;  %v10248_v5 = vpack.c.bf16 %v10005_v3, %v10001_v26  ;;  %v10263_v26 = vpack.c.bf16 %v10025_v33, %v10019_v20  ;;  %v10267_v3 = vpack.c.bf16 %v10043_v60, %v10037_v49  ;;  %v11730_v33 = vld [vmem:[#allocation43_spill] sm:$0xff]  ;;  %v10281_v60 = vpack.c.bf16 %v10061_v34, %v10059_v4  ;;  %v11731_v34 = vld [vmem:[#allocation44_spill] sm:$0xff] }
 0x13c   :  { %8030 = vmatmul.mubr.msk.bf16.vlgmr.msra.gmra.mrb[64].mxu1 %vm172_vm0, %v11725_v38 }
 0x13d   :  { %8033 = vmatprep.mubr.msk.bf16.mxu1 %vm172_vm0, %v1782_v24  ;;  %8062 = vmatpush3.bf16.msra.mxu1 %v2059_v0  ;;  %v11727_v24 = vld [vmem:[#allocation34_spill] sm:$0xff]  ;;  %v11728_v0 = vld [vmem:[#allocation39_spill] sm:$0xff] }
 0x13e   :  { %8928 = vmatprep.subr.msk.bf16.mxu1 %vm383_vm1, %v10234_v31  ;;  %8160 = vmatmul.mubr.msk.bf16.gmra.mrb[28].mxu0 %vm172_vm0, %v2563_v58 }
 0x13f   :  { %8199 = vmatprep.mubr.msk.bf16.mxu0 %vm172_vm0, %v11726_v39 }
 0x144   :  { %8034 = vmatmul.mubr.msk.bf16.gmra.mrb[68].mxu1 %vm172_vm0, %v1783_v36 }
 0x145   :  { %8037 = vmatprep.mubr.msk.bf16.mxu1 %vm172_vm0, %v10248_v5 }
 0x146   :  { %8200 = vmatmul.mubr.msk.bf16.vlgmr.msra.gmra.mrb[32].mxu0 %vm172_vm0, %v11727_v24 }
 0x147   :  { %8232 = vmatpush3.bf16.msra.mxu0 %v4459_v59  ;;  %8203 = vmatprep.mubr.msk.bf16.mxu0 %vm172_vm0, %v11728_v0  ;;  %v10285_v59 = vpack.c.bf16 %v10087_v54, %v10081_v23  ;;  %v11732_v23 = vld [vmem:[#allocation47_spill] sm:$0xff] }
 0x148   :  { %8933 = vmatprep.subr.msk.bf16.mxu0 %vm383_vm1, %v10255_v61 }
 0x14c   :  { %8038 = vmatmul.mubr.msk.bf16.gmra.mrb[72].mxu1 %vm172_vm0, %v10263_v26 }
 0x14d   :  { %8041 = vmatprep.mubr.msk.bf16.mxu1 %vm172_vm0, %v10267_v3 }
 0x14e   :  { %8204 = vmatmul.mubr.msk.bf16.gmra.mrb[36].mxu0 %vm172_vm0, %v11729_v45 }
 0x14f   :  { %v7861_v58 = vpop.f32.mrb[0].mxu1  ;;  %8207 = vmatprep.mubr.msk.bf16.mxu0 %vm172_vm0, %v11730_v33 }
 0x150   :  { %v7391_v20 = vpack.c.bf16 %v7861_v58, %v7861_v58  ;;  %v421_v49 = vpop.f32.mrb[1].mxu1  ;;  %v10301_v58 = vpack.c.bf16 %v10105_v7, %v10099_v16  ;;  %v11733_v7 = vld [vmem:[#allocation48_spill] sm:$0xff]  ;;  %v11734_v16 = vld [vmem:[#allocation51_spill] sm:$0xff] }
 0x151   :  { %v7389_v39 = vpack.c.bf16 %v421_v49, %v421_v49  ;;  %v7862_v36 = vpop.f32.mrb[2].mxu1 }
 0x152   :  { %679 = vst.msk [vmem:[#allocation15 + $0x8] sm:$0xf] %vm676_vm2, %v7391_v20  ;;  %v7392_v24 = vpack.c.bf16 %v7862_v36, %v7862_v36  ;;  %v424_v0 = vpop.f32.mrb[3].mxu1 }
 0x153   :  { %677 = vst.msk [vmem:[#allocation15] sm:$0xf] %vm676_vm2, %v7389_v39  ;;  %v7390_v45 = vpack.c.bf16 %v424_v0, %v424_v0  ;;  %v10305_v39 = vpack.c.bf16 %v10123_v44, %v10117_v48 }
 0x154   :  { %8042 = vmatmul.mubr.msk.bf16.gmra.mrb[76].mxu1 %vm172_vm0, %v10281_v60  ;;  %680 = vst.msk [vmem:[#allocation15 + $0xc] sm:$0xf] %vm676_vm2, %v7392_v24 }
 0x155   :  { %678 = vst.msk [vmem:[#allocation15 + $0x4] sm:$0xf] %vm676_vm2, %v7390_v45  ;;  %8045 = vmatprep.mubr.msk.bf16.mxu1 %vm172_vm0, %v10285_v59  ;;  %v10321_v45 = vpack.c.bf16 %v10141_v25, %v10139_v10  ;;  %v11735_v25 = vld [vmem:[#allocation52_spill] sm:$0xff] }
 0x156   :  { %8208 = vmatmul.mubr.msk.bf16.gmra.mrb[40].mxu0 %vm172_vm0, %v11731_v34  ;;  %v11736_v10 = vld [vmem:[#allocation56_spill] sm:$0xff] }
 0x157   :  { %v7865_v4 = vpop.f32.mrb[4].mxu1  ;;  %8211 = vmatprep.mubr.msk.bf16.mxu0 %vm172_vm0, %v11732_v23 }
 0x158   :  { %v7395_v54 = vpack.c.bf16 %v7865_v4, %v7865_v4  ;;  %v437_v33 = vpop.f32.mrb[5].mxu1 }
 0x159   :  { %v7393_v20 = vpack.c.bf16 %v437_v33, %v437_v33  ;;  %v7866_v49 = vpop.f32.mrb[6].mxu1 }
 0x15a   :  { %683 = vst.msk [vmem:[#allocation15 + $0x18] sm:$0xf] %vm676_vm2, %v7395_v54  ;;  %v7396_v36 = vpack.c.bf16 %v7866_v49, %v7866_v49  ;;  %v440_v24 = vpop.f32.mrb[7].mxu1  ;;  %v10325_v54 = vpack.c.bf16 %v10167_v53, %v10161_v21 }
 0x15b   :  { %681 = vst.msk [vmem:[#allocation15 + $0x10] sm:$0xf] %vm676_vm2, %v7393_v20  ;;  %v7394_v0 = vpack.c.bf16 %v440_v24, %v440_v24 }
 0x15c   :  { %8046 = vmatmul.mubr.msk.bf16.gmra.mrb[80].mxu1 %vm172_vm0, %v10301_v58  ;;  %684 = vst.msk [vmem:[#allocation15 + $0x1c] sm:$0xf] %vm676_vm2, %v7396_v36  ;;  %v10341_v36 = vpack.c.bf16 %v10185_v14, %v10179_v13  ;;  %v840_v14 = vld [vmem:[#allocation2 + $0x9] sm:$0xff]  ;;  %v11737_v13 = vld [vmem:[#allocation57_spill] sm:$0xff] }
 0x15d   :  { %682 = vst.msk [vmem:[#allocation15 + $0x14] sm:$0xf] %vm676_vm2, %v7394_v0  ;;  %8049 = vmatprep.mubr.msk.bf16.mxu1 %vm172_vm0, %v10305_v39 }
 0x15e   :  { %8212 = vmatmul.mubr.msk.bf16.gmra.mrb[44].mxu0 %vm172_vm0, %v11733_v7 }
 0x15f   :  { %v7869_v44 = vpop.f32.mrb[8].mxu1  ;;  %8215 = vmatprep.mubr.msk.bf16.mxu0 %vm172_vm0, %v11734_v16 }
 0x160   :  { %v7399_v48 = vpack.c.bf16 %v7869_v44, %v7869_v44  ;;  %v453_v34 = vpop.f32.mrb[9].mxu1  ;;  %v10345_v44 = vpack.c.bf16 %v10203_v22, %v10197_v12 }
 0x161   :  { %v7397_v4 = vpack.c.bf16 %v453_v34, %v453_v34  ;;  %v7870_v23 = vpop.f32.mrb[10].mxu1 }
 0x162   :  { %687 = vst.msk [vmem:[#allocation15 + $0x28] sm:$0xf] %vm676_vm2, %v7399_v48  ;;  %v7400_v33 = vpack.c.bf16 %v7870_v23, %v7870_v23  ;;  %v456_v20 = vpop.f32.mrb[11].mxu1 }
 0x163   :  { %685 = vst.msk [vmem:[#allocation15 + $0x20] sm:$0xf] %vm676_vm2, %v7397_v4  ;;  %v7398_v49 = vpack.c.bf16 %v456_v20, %v456_v20  ;;  %v11738_v20 = vld [vmem:[#allocation61_spill] sm:$0xff] }
 0x164   :  { %8050 = vmatmul.mubr.msk.bf16.gmra.mrb[84].mxu1 %vm172_vm0, %v10321_v45  ;;  %688 = vst.msk [vmem:[#allocation15 + $0x2c] sm:$0xf] %vm676_vm2, %v7400_v33 }
 0x165   :  { %686 = vst.msk [vmem:[#allocation15 + $0x24] sm:$0xf] %vm676_vm2, %v7398_v49  ;;  %8053 = vmatprep.mubr.msk.bf16.mxu1 %vm172_vm0, %v10325_v54  ;;  %v872_v49 = vpack.c.bf16 %v11738_v20, %v840_v14  ;;  %v4262_v14 = vld [vmem:[#allocation2 + $0x1f] sm:$0xff]  ;;  %v4263_v20 = vld [vmem:[#allocation2 + $0x27] sm:$0xff] }
 0x166   :  { %8216 = vmatmul.mubr.msk.bf16.gmra.mrb[48].mxu0 %vm172_vm0, %v11735_v25 }
 0x167   :  { %v7873_v21 = vpop.f32.mrb[12].mxu1  ;;  %8219 = vmatprep.mubr.msk.bf16.mxu0 %vm172_vm0, %v11736_v10 }
 0x168   :  { %v7403_v53 = vpack.c.bf16 %v7873_v21, %v7873_v21  ;;  %v469_v24 = vpop.f32.mrb[13].mxu1 }
 0x169   :  { %v7401_v0 = vpack.c.bf16 %v469_v24, %v469_v24  ;;  %v7874_v7 = vpop.f32.mrb[14].mxu1 }
 0x16a   :  { %691 = vst.msk [vmem:[#allocation15 + $0x38] sm:$0xf] %vm676_vm2, %v7403_v53  ;;  %v7404_v16 = vpack.c.bf16 %v7874_v7, %v7874_v7  ;;  %v472_v48 = vpop.f32.mrb[15].mxu1  ;;  %v11739_v53 = vld [vmem:[#allocation59_spill] sm:$0xff] }
 0x16b   :  { %689 = vst.msk [vmem:[#allocation15 + $0x30] sm:$0xf] %vm676_vm2, %v7401_v0  ;;  %v7402_v34 = vpack.c.bf16 %v472_v48, %v472_v48 }
 0x16c   :  { %8054 = vmatmul.mubr.msk.bf16.gmra.mrb[88].mxu1 %vm172_vm0, %v10341_v36  ;;  %692 = vst.msk [vmem:[#allocation15 + $0x3c] sm:$0xf] %vm676_vm2, %v7404_v16 }
 0x16d   :  { %690 = vst.msk [vmem:[#allocation15 + $0x34] sm:$0xf] %vm676_vm2, %v7402_v34  ;;  %8057 = vmatprep.mubr.msk.bf16.mxu1 %vm172_vm0, %v10345_v44  ;;  %v4261_v34 = vld [vmem:[#allocation2 + $0x17] sm:$0xff] }
 0x16e   :  { %8220 = vmatmul.mubr.msk.bf16.gmra.mrb[52].mxu0 %vm172_vm0, %v11737_v13 }
 0x16f   :  { %v7877_v22 = vpop.f32.mrb[16].mxu1  ;;  %8223 = vmatprep.mubr.msk.bf16.mxu0 %vm172_vm0, %v9915_v40  ;;  %v11740_v40 = vld [vmem:[#allocation60_spill] sm:$0xff] }
 0x170   :  { %v7407_v12 = vpack.c.bf16 %v7877_v22, %v7877_v22  ;;  %v485_v4 = vpop.f32.mrb[17].mxu1 }
 0x171   :  { %v7405_v23 = vpack.c.bf16 %v485_v4, %v485_v4  ;;  %v7878_v33 = vpop.f32.mrb[18].mxu1 }
 0x172   :  { %695 = vst.msk [vmem:[#allocation15 + $0x48] sm:$0xf] %vm676_vm2, %v7407_v12  ;;  %v7408_v25 = vpack.c.bf16 %v7878_v33, %v7878_v33  ;;  %v488_v21 = vpop.f32.mrb[19].mxu1  ;;  %v2321_v12 = vsel %vm383_vm1, %v10234_v31, 0  ;;  %v875_v33 = vpack.c.bf16 %v9975_v51, %v11724_v15 }
 0x173   :  { %693 = vst.msk [vmem:[#allocation15 + $0x40] sm:$0xf] %vm676_vm2, %v7405_v23  ;;  %v7406_v10 = vpack.c.bf16 %v488_v21, %v488_v21  ;;  %v10375_v23 = vld [vmem:[#allocation6 + $0x10] sm:$0x3] }
 0x174   :  { %8058 = vmatmul.mubr.msk.bf16.gmra.mrb[92].mxu1 %vm172_vm0, %v11739_v53  ;;  %696 = vst.msk [vmem:[#allocation15 + $0x4c] sm:$0xf] %vm676_vm2, %v7408_v25 }
 0x175   :  { %694 = vst.msk [vmem:[#allocation15 + $0x44] sm:$0xf] %vm676_vm2, %v7406_v10  ;;  %8063 = vmatprep.mubr.msk.bf16.mxu1 %vm172_vm0, %v872_v49  ;;  %v4264_v49 = vld [vmem:[#allocation2 + $0x2f] sm:$0xff]  ;;  %v876_v10 = vpack.c.bf16 %v9987_v47, %v9973_v2  ;;  %v4626_v2 = vsel %vm383_vm1, %v10255_v61, 0  ;;  %v10407_v47 = vld [vmem:[#allocation6 + $0xa] sm:$0x3] }
 0x176   :  { %8224 = vmatmul.mubr.msk.bf16.gmra.mrb[56].mxu0 %vm172_vm0, %v11740_v40  ;;  %v4265_v40 = vld [vmem:[#allocation2 + $0x37] sm:$0xff] }
 0x177   :  { %v7881_v24 = vpop.f32.mrb[20].mxu1  ;;  %8227 = vmatprep.mubr.msk.bf16.mxu0 %vm172_vm0, %v9954_v8  ;;  %v10380_v8 = vpack.c.bf16 %v4262_v14, %v4261_v34  ;;  %v4267_v34 = vld [vmem:[#allocation2 + $0x47] sm:$0xff]  ;;  %v4268_v14 = vld [vmem:[#allocation2 + $0x4f] sm:$0xff] }
 0x178   :  { %v7411_v0 = vpack.c.bf16 %v7881_v24, %v7881_v24  ;;  %v501_v7 = vpop.f32.mrb[21].mxu1  ;;  %v4266_v24 = vld [vmem:[#allocation2 + $0x3f] sm:$0xff] }
 0x179   :  { %v7409_v16 = vpack.c.bf16 %v501_v7, %v501_v7  ;;  %v7882_v48 = vpop.f32.mrb[22].mxu1  ;;  %v10396_v7 = vpack.c.bf16 %v4264_v49, %v4263_v20  ;;  %v10401_v51 = vpack.c.bf16 %v4266_v24, %v4265_v40  ;;  %v11741_v49 = vpack.c.bf16 %v10009_v32, %v10007_v6  ;;  %v109_v6 = vld [vmem:[#allocation11 + $0x10] sm:$0xff]  ;;  %v4271_v32 = vld [vmem:[#allocation2 + $0x67] sm:$0xff] }
 0x17a   :  { %699 = vst.msk [vmem:[#allocation15 + $0x58] sm:$0xf] %vm676_vm2, %v7411_v0  ;;  %v7412_v13 = vpack.c.bf16 %v7882_v48, %v7882_v48  ;;  %v504_v22 = vpop.f32.mrb[23].mxu1  ;;  %v4272_v40 = vld [vmem:[#allocation2 + $0x6f] sm:$0xff]  ;;  %v4273_v24 = vld [vmem:[#allocation2 + $0x77] sm:$0xff] }
 0x17b   :  { %697 = vst.msk [vmem:[#allocation15 + $0x50] sm:$0xf] %vm676_vm2, %v7409_v16  ;;  %v7410_v4 = vpack.c.bf16 %v504_v22, %v504_v22 }
 0x17c   :  { %8064 = vmatmul.mubr.msk.bf16.vlgmr.msra.gmra.mrb[64].mxu1 %vm172_vm0, %v11722_v56  ;;  %700 = vst.msk [vmem:[#allocation15 + $0x5c] sm:$0xf] %vm676_vm2, %v7412_v13 }
 0x17d   :  { %698 = vst.msk [vmem:[#allocation15 + $0x54] sm:$0xf] %vm676_vm2, %v7410_v4  ;;  %8067 = vmatprep.mubr.msk.bf16.mxu1 %vm172_vm0, %v11725_v38  ;;  %8096 = vmatpush3.bf16.msra.mxu1 %v2321_v12  ;;  %v4269_v12 = vld [vmem:[#allocation2 + $0x57] sm:$0xff]  ;;  %v4270_v4 = vld [vmem:[#allocation2 + $0x5f] sm:$0xff] }
 0x17e   :  { %8930 = vmatprep.subr.msk.bf16.mxu1 %vm383_vm1, %v10375_v23  ;;  %8228 = vmatmul.mubr.msk.bf16.gmra.mrb[60].mxu0 %vm172_vm0, %v9960_v43 }
 0x17f   :  { %v7885_v31 = vpop.f32.mrb[24].mxu1  ;;  %8233 = vmatprep.mubr.msk.bf16.mxu0 %vm172_vm0, %v10380_v8 }
 0x180   :  { %v7415_v56 = vpack.c.bf16 %v7885_v31, %v7885_v31  ;;  %v517_v25 = vpop.f32.mrb[25].mxu1 }
 0x181   :  { %v7413_v21 = vpack.c.bf16 %v517_v25, %v517_v25  ;;  %v7886_v38 = vpop.f32.mrb[26].mxu1  ;;  %v10424_v25 = vpack.c.bf16 %v4270_v4, %v4269_v12  ;;  %v114_v12 = vld [vmem:[#allocation11 + $0x38] sm:$0xff]  ;;  %v11746_v4 = vpack.c.bf16 %v10109_v37, %v10103_v63  ;;  %v11747_v63 = vpack.c.bf16 %v10129_v11, %v10127_v41  ;;  %v4283_v41 = vld [vmem:[#allocation2 + $0xc7] sm:$0xff]  ;;  %v4284_v11 = vld [vmem:[#allocation2 + $0xcf] sm:$0xff] }
 0x182   :  { %703 = vst.msk [vmem:[#allocation15 + $0x68] sm:$0xf] %vm676_vm2, %v7415_v56  ;;  %v7416_v43 = vpack.c.bf16 %v7886_v38, %v7886_v38  ;;  %v520_v0 = vpop.f32.mrb[27].mxu1  ;;  %v107_v38 = vld [vmem:[#allocation11] sm:$0xff] }
 0x183   :  { %701 = vst.msk [vmem:[#allocation15 + $0x60] sm:$0xf] %vm676_vm2, %v7413_v21  ;;  %v7414_v16 = vpack.c.bf16 %v520_v0, %v520_v0  ;;  %v11742_v21 = vpack.c.bf16 %v10029_v30, %v10023_v29  ;;  %v108_v29 = vld [vmem:[#allocation11 + $0x8] sm:$0xff]  ;;  %v10435_v30 = vpack.c.bf16 %v4272_v40, %v4271_v32  ;;  %v11743_v0 = vpack.c.bf16 %v10049_v28, %v10047_v57  ;;  %v119_v32 = vld [vmem:[#allocation11 + $0x60] sm:$0xff] }
 0x184   :  { %8068 = vmatmul.mubr.msk.bf16.gmra.mrb[68].mxu1 %vm172_vm0, %v875_v33  ;;  %704 = vst.msk [vmem:[#allocation15 + $0x6c] sm:$0xf] %vm676_vm2, %v7416_v43  ;;  %v10416_v33 = vpack.c.bf16 %v4268_v14, %v4267_v34  ;;  %v4274_v43 = vld [vmem:[#allocation2 + $0x7f] sm:$0xff]  ;;  %v112_v34 = vld [vmem:[#allocation11 + $0x28] sm:$0xff]  ;;  %v4277_v14 = vld [vmem:[#allocation2 + $0x97] sm:$0xff] }
 0x185   :  { %702 = vst.msk [vmem:[#allocation15 + $0x64] sm:$0xf] %vm676_vm2, %v7414_v16  ;;  %8071 = vmatprep.mubr.msk.bf16.mxu1 %vm172_vm0, %v876_v10  ;;  %v9160_v10 = vmov 0   ;;  %v10441_v16 = vpack.c.bf16 %v4274_v43, %v4273_v24  ;;  %v4275_v57 = vld [vmem:[#allocation2 + $0x87] sm:$0xff]  ;;  %v4276_v28 = vld [vmem:[#allocation2 + $0x8f] sm:$0xff]  ;;  %v4285_v24 = vld [vmem:[#allocation2 + $0xd7] sm:$0xff] }
 0x186   :  { %8234 = vmatmul.mubr.msk.bf16.vlgmr.msra.gmra.mrb[64].mxu0 %vm172_vm0, %v10396_v7  ;;  %8957 = vset.pattern.permute.xlu0 %v9160_v10  ;;  %v120_v40 = vld [vmem:[#allocation11 + $0x68] sm:$0xff]  ;;  %v4286_v43 = vld [vmem:[#allocation2 + $0xdf] sm:$0xff] }
 0x187   :  { %v7889_v15 = vpop.f32.mrb[28].mxu1  ;;  %8266 = vmatpush3.bf16.msra.mxu0 %v4626_v2  ;;  %8237 = vmatprep.mubr.msk.bf16.mxu0 %vm172_vm0, %v10401_v51  ;;  %v110_v2 = vld [vmem:[#allocation11 + $0x18] sm:$0xff] }
 0x188   :  { %v7419_v48 = vpack.c.bf16 %v7889_v15, %v7889_v15  ;;  %v533_v13 = vpop.f32.mrb[29].mxu1  ;;  %8936 = vmatprep.subr.msk.bf16.mxu0 %vm383_vm1, %v10407_v47  ;;  %8958 = vset.pattern.permute.xlu1 %v9160_v10  ;;  %v11744_v15 = vpack.c.bf16 %v10067_v55, %v10065_v35  ;;  %v11745_v55 = vpack.c.bf16 %v10089_v9, %v10085_v52  ;;  %v4279_v52 = vld [vmem:[#allocation2 + $0xa7] sm:$0xff]  ;;  %v4280_v9 = vld [vmem:[#allocation2 + $0xaf] sm:$0xff]  ;;  %v118_v10 = vld [vmem:[#allocation11 + $0x58] sm:$0xff] }
 0x189   :  { %v7417_v22 = vpack.c.bf16 %v533_v13, %v533_v13  ;;  %v7890_v61 = vpop.f32.mrb[30].mxu1  ;;  %3106 = vperm.xlu0 %8957, %v107_v38   ;;  %3116 = vperm.xlu1 %8958, %v109_v6   ;;  %v4278_v13 = vld [vmem:[#allocation2 + $0x9f] sm:$0xff]  ;;  %v10467_v38 = vpack.c.bf16 %v4280_v9, %v4279_v52  ;;  %v11748_v6 = vpack.c.bf16 %v10147_v17, %v10145_v19  ;;  %v4407_v52 = vld [vmem:[#allocation2 + $0x10f] sm:$0xff]  ;;  %v4259_v9 = vld [vmem:[#allocation2 + $0x7] sm:$0xff] }
 0x18a   :  { %707 = vst.msk [vmem:[#allocation15 + $0x78] sm:$0xf] %vm676_vm2, %v7419_v48  ;;  %v7420_v31 = vpack.c.bf16 %v7890_v61, %v7890_v61  ;;  %v536_v56 = vpop.f32.mrb[31].mxu1  ;;  %v111_v48 = vld [vmem:[#allocation11 + $0x20] sm:$0xff]  ;;  %v10451_v61 = vpack.c.bf16 %v4276_v28, %v4275_v57  ;;  %v10457_v35 = vpack.c.bf16 %v4278_v13, %v4277_v14  ;;  %v11749_v17 = vpack.c.bf16 %v10169_v50, %v10165_v27  ;;  %v4288_v50 = vld [vmem:[#allocation2 + $0xef] sm:$0xff]  ;;  %v4289_v57 = vld [vmem:[#allocation2 + $0xf7] sm:$0xff] }
 0x18b   :  { %705 = vst.msk [vmem:[#allocation15 + $0x70] sm:$0xf] %vm676_vm2, %v7417_v22  ;;  %v7418_v20 = vpack.c.bf16 %v536_v56, %v536_v56  ;;  %v113_v22 = vld [vmem:[#allocation11 + $0x30] sm:$0xff]  ;;  %v116_v56 = vld [vmem:[#allocation11 + $0x48] sm:$0xff]  ;;  %v10489_v19 = vpack.c.bf16 %v4286_v43, %v4285_v24  ;;  %v4290_v28 = vld [vmem:[#allocation2 + $0xff] sm:$0xff] }
 0x18c   :  { %8072 = vmatmul.mubr.msk.bf16.gmra.mrb[72].mxu1 %vm172_vm0, %v11741_v49  ;;  %708 = vst.msk [vmem:[#allocation15 + $0x7c] sm:$0xf] %vm676_vm2, %v7420_v31  ;;  %v115_v31 = vld [vmem:[#allocation11 + $0x40] sm:$0xff]  ;;  %v125_v14 = vld [vmem:[#allocation11 + $0x90] sm:$0xff]  ;;  %v134_v43 = vld [vmem:[#allocation11 + $0xd8] sm:$0xff] }
 0x18d   :  { %706 = vst.msk [vmem:[#allocation15 + $0x74] sm:$0xf] %vm676_vm2, %v7418_v20  ;;  %8075 = vmatprep.mubr.msk.bf16.mxu1 %vm172_vm0, %v11742_v21  ;;  %3111 = vperm.xlu0 %8957, %v108_v29   ;;  %v4281_v20 = vld [vmem:[#allocation2 + $0xb7] sm:$0xff]  ;;  %v4282_v49 = vld [vmem:[#allocation2 + $0xbf] sm:$0xff]  ;;  %v4287_v27 = vld [vmem:[#allocation2 + $0xe7] sm:$0xff] }
 0x18e   :  { %8238 = vmatmul.mubr.msk.bf16.gmra.mrb[68].mxu0 %vm172_vm0, %v10416_v33  ;;  %3121 = vperm.xlu1 %8958, %v110_v2   ;;  %v117_v21 = vld [vmem:[#allocation11 + $0x50] sm:$0xff]  ;;  %v10473_v37 = vpack.c.bf16 %v4282_v49, %v4281_v20  ;;  %v122_v2 = vld [vmem:[#allocation11 + $0x78] sm:$0xff]  ;;  %v10499_v13 = vpack.c.bf16 %v4288_v50, %v4287_v27  ;;  %v2909_v20 = vsel %vm383_vm1, %v10375_v23, 0  ;;  %v132_v23 = vld [vmem:[#allocation11 + $0xc8] sm:$0xff] }
 0x18f   :  { %8241 = vmatprep.mubr.msk.bf16.mxu0 %vm172_vm0, %v10424_v25  ;;  %v121_v29 = vld [vmem:[#allocation11 + $0x70] sm:$0xff]  ;;  %v11756_v24 = vld [vmem:[#allocation30_spill] sm:$0xff] }
 0x190   :  { %v129_v49 = vld [vmem:[#allocation11 + $0xb0] sm:$0xff]  ;;  %v138_v50 = vld [vmem:[#allocation11 + $0xf8] sm:$0xff] }
 0x191   :  { %3126 = vperm.xlu0 %8957, %v111_v48   ;;  %v123_v48 = vld [vmem:[#allocation11 + $0x80] sm:$0xff]  ;;  %v11758_v27 = vld [vmem:[#allocation37_spill] sm:$0xff] }
 0x192   :  { %3131 = vperm.xlu1 %8958, %v112_v34   ;;  %v124_v34 = vld [vmem:[#allocation11 + $0x88] sm:$0xff] }
 0x194   :  { %8076 = vmatmul.mubr.msk.bf16.gmra.mrb[76].mxu1 %vm172_vm0, %v11743_v0  ;;  %v10483_v0 = vpack.c.bf16 %v4284_v11, %v4283_v41  ;;  %v11755_v41 = vld [vmem:[#allocation29_spill] sm:$0xff]  ;;  %v131_v11 = vld [vmem:[#allocation11 + $0xc0] sm:$0xff] }
 0x195   :  { %8079 = vmatprep.mubr.msk.bf16.mxu1 %vm172_vm0, %v11744_v15  ;;  %3136 = vperm.xlu0 %8957, %v113_v22   ;;  %v11750_v15 = vpack.c.bf16 %v10189_v42, %v10183_v18  ;;  %v11751_v18 = vld [vmem:[#allocation55_spill] sm:$0xff]  ;;  %v10505_v22 = vpack.c.bf16 %v4290_v28, %v4289_v57  ;;  %v142_v57 = vld [vmem:[#allocation11 + $0x110] sm:$0xff]  ;;  %v11760_v28 = vld [vmem:[#allocation42_spill] sm:$0xff] }
 0x196   :  { %8242 = vmatmul.mubr.msk.bf16.gmra.mrb[72].mxu0 %vm172_vm0, %v10435_v30  ;;  %3141 = vperm.xlu1 %8958, %v114_v12   ;;  %v11752_v42 = vpack.c.bf16 %v10209_v62, %v11751_v18  ;;  %v11753_v12 = vld [vmem:[#allocation24_spill] sm:$0xff]  ;;  %v11761_v18 = vld [vmem:[#allocation45_spill] sm:$0xff] }
 0x197   :  { %8245 = vmatprep.mubr.msk.bf16.mxu0 %vm172_vm0, %v10441_v16  ;;  %v128_v62 = vld [vmem:[#allocation11 + $0xa8] sm:$0xff] }
 0x199   :  { %3146 = vperm.xlu0 %8957, %v115_v31   ;;  %v4406_v31 = vld [vmem:[#allocation2 + $0x107] sm:$0xff] }
 0x19a   :  { %3151 = vperm.xlu1 %8958, %v116_v56   ;;  %v4260_v56 = vld [vmem:[#allocation2 + $0xf] sm:$0xff] }
 0x19c   :  { %8080 = vmatmul.mubr.msk.bf16.gmra.mrb[80].mxu1 %vm172_vm0, %v11745_v55  ;;  %v126_v55 = vld [vmem:[#allocation11 + $0x98] sm:$0xff] }
 0x19d   :  { %8083 = vmatprep.mubr.msk.bf16.mxu1 %vm172_vm0, %v11746_v4  ;;  %3156 = vperm.xlu0 %8957, %v117_v21   ;;  %v127_v4 = vld [vmem:[#allocation11 + $0xa0] sm:$0xff]  ;;  %v4408_v21 = vpack.c.bf16 %v4407_v52, %v4406_v31 }
 0x19e   :  { %8246 = vmatmul.mubr.msk.bf16.gmra.mrb[76].mxu0 %vm172_vm0, %v10451_v61  ;;  %3161 = vperm.xlu1 %8958, %v118_v10   ;;  %v11754_v10 = vld [vmem:[#allocation26_spill] sm:$0xff] }
 0x19f   :  { %8249 = vmatprep.mubr.msk.bf16.mxu0 %vm172_vm0, %v10457_v35  ;;  %v11762_v52 = vld [vmem:[#allocation46_spill] sm:$0xff] }
 0x1a1   :  { %3166 = vperm.xlu0 %8957, %v119_v32   ;;  %v130_v32 = vld [vmem:[#allocation11 + $0xb8] sm:$0xff] }
 0x1a2   :  { %3171 = vperm.xlu1 %8958, %v120_v40   ;;  %v133_v40 = vld [vmem:[#allocation11 + $0xd0] sm:$0xff] }
 0x1a4   :  { %8084 = vmatmul.mubr.msk.bf16.gmra.mrb[84].mxu1 %vm172_vm0, %v11747_v63  ;;  %v10515_v63 = vld [vmem:[#allocation6 + $0x8] sm:$0x3] }
 0x1a5   :  { %8087 = vmatprep.mubr.msk.bf16.mxu1 %vm172_vm0, %v11748_v6  ;;  %3176 = vperm.xlu0 %8957, %v121_v29   ;;  %v4291_v6 = vpack.c.bf16 %v4260_v56, %v4259_v9  ;;  %v5360_v29 = vsel %vm383_vm1, %v10407_v47, 0  ;;  %v137_v47 = vld [vmem:[#allocation11 + $0xf0] sm:$0xff] }
 0x1a6   :  { %8250 = vmatmul.mubr.msk.bf16.gmra.mrb[80].mxu0 %vm172_vm0, %v10467_v38  ;;  %3181 = vperm.xlu1 %8958, %v122_v2   ;;  %v10531_v2 = vld [vmem:[#allocation6 + $0x4] sm:$0x3]  ;;  %v11763_v9 = vld [vmem:[#allocation49_spill] sm:$0xff] }
 0x1a7   :  { %8253 = vmatprep.mubr.msk.bf16.mxu0 %vm172_vm0, %v10473_v37  ;;  %v150_v56 = vld [vmem:[#allocation11 + $0x150] sm:$0xff] }
 0x1a9   :  { %3186 = vperm.xlu0 %8957, %v123_v48   ;;  %v136_v48 = vld [vmem:[#allocation11 + $0xe8] sm:$0xff] }
 0x1aa   :  { %3191 = vperm.xlu1 %8958, %v124_v34   ;;  %v11759_v34 = vld [vmem:[#allocation41_spill] sm:$0xff] }
 0x1ac   :  { %8088 = vmatmul.mubr.msk.bf16.gmra.mrb[88].mxu1 %vm172_vm0, %v11749_v17  ;;  %v11757_v17 = vld [vmem:[#allocation35_spill] sm:$0xff] }
 0x1ad   :  { %8091 = vmatprep.mubr.msk.bf16.mxu1 %vm172_vm0, %v11750_v15  ;;  %3196 = vperm.xlu0 %8957, %v125_v14   ;;  %v135_v15 = vld [vmem:[#allocation11 + $0xe0] sm:$0xff]  ;;  %v143_v14 = vld [vmem:[#allocation11 + $0x118] sm:$0xff] }
 0x1ae   :  { %8254 = vmatmul.mubr.msk.bf16.gmra.mrb[84].mxu0 %vm172_vm0, %v10483_v0  ;;  %3201 = vperm.xlu1 %8958, %v126_v55  }
 0x1af   :  { %8257 = vmatprep.mubr.msk.bf16.mxu0 %vm172_vm0, %v10489_v19 }
 0x1b1   :  { %3206 = vperm.xlu0 %8957, %v127_v4   ;;  %v147_v4 = vld [vmem:[#allocation11 + $0x138] sm:$0xff] }
 0x1b2   :  { %3211 = vperm.xlu1 %8958, %v128_v62   ;;  %v148_v62 = vld [vmem:[#allocation11 + $0x140] sm:$0xff] }
 0x1b4   :  { %8092 = vmatmul.mubr.msk.bf16.gmra.mrb[92].mxu1 %vm172_vm0, %v11752_v42  ;;  %v144_v42 = vld [vmem:[#allocation11 + $0x120] sm:$0xff] }
 0x1b5   :  { %8097 = vmatprep.mubr.msk.bf16.mxu1 %vm172_vm0, %v11753_v12  ;;  %3216 = vperm.xlu0 %8957, %v129_v49  }
 0x1b6   :  { %8258 = vmatmul.mubr.msk.bf16.gmra.mrb[88].mxu0 %vm172_vm0, %v10499_v13  ;;  %3221 = vperm.xlu1 %8958, %v130_v32   ;;  %v152_v32 = vld [vmem:[#allocation11 + $0x160] sm:$0xff] }
 0x1b7   :  { %8261 = vmatprep.mubr.msk.bf16.mxu0 %vm172_vm0, %v10505_v22 }
 0x1b9   :  { %3226 = vperm.xlu0 %8957, %v131_v11   ;;  %v154_v11 = vld [vmem:[#allocation11 + $0x170] sm:$0xff] }
 0x1ba   :  { %3231 = vperm.xlu1 %8958, %v132_v23  }
 0x1bc   :  { %8098 = vmatmul.mubr.msk.bf16.vlgmr.msra.gmra.mrb[32].mxu1 %vm172_vm0, %v11754_v10 }
 0x1bd   :  { %8101 = vmatprep.mubr.msk.bf16.mxu1 %vm172_vm0, %v11755_v41  ;;  %8164 = vmatpush3.bf16.msra.mxu1 %v2909_v20  ;;  %v11765_v41 = vld [vmem:[#allocation53_spill] sm:$0xff] }
 0x1be   :  { %8934 = vmatprep.subr.msk.bf16.mxu1 %vm383_vm1, %v10515_v63  ;;  %8262 = vmatmul.mubr.msk.bf16.gmra.mrb[92].mxu0 %vm172_vm0, %v4408_v21  ;;  %v151_v21 = vld [vmem:[#allocation11 + $0x158] sm:$0xff] }
 0x1bf   :  { %8267 = vmatprep.mubr.msk.bf16.mxu0 %vm172_vm0, %v4291_v6  ;;  %3236 = vperm.xlu0 %8957, %v133_v40   ;;  %v11764_v6 = vld [vmem:[#allocation50_spill] sm:$0xff] }
 0x1c0   :  { %3241 = vperm.xlu1 %8958, %v134_v43  }
 0x1c3   :  { %3246 = vperm.xlu0 %8957, %v135_v15   ;;  %v11767_v15 = vld [vmem:[#allocation58_spill] sm:$0xff] }
 0x1c4   :  { %8102 = vmatmul.mubr.msk.bf16.gmra.mrb[36].mxu1 %vm172_vm0, %v11756_v24  ;;  %3251 = vperm.xlu1 %8958, %v136_v48   ;;  %v155_v24 = vld [vmem:[#allocation11 + $0x178] sm:$0xff]  ;;  %v157_v48 = vld [vmem:[#allocation11 + $0x188] sm:$0xff] }
 0x1c5   :  { %8105 = vmatprep.mubr.msk.bf16.mxu1 %vm172_vm0, %v11757_v17  ;;  %v156_v17 = vld [vmem:[#allocation11 + $0x180] sm:$0xff] }
 0x1c6   :  { %8268 = vmatmul.mubr.msk.bf16.vlgmr.msra.gmra.mrb[64].mxu0 %vm172_vm0, %v10380_v8  ;;  %v140_v8 = vld [vmem:[#allocation11 + $0x100] sm:$0xff] }
 0x1c7   :  { %8368 = vmatpush3.bf16.msra.mxu0 %v5360_v29  ;;  %8271 = vmatprep.mubr.msk.bf16.mxu0 %vm172_vm0, %v10396_v7  ;;  %v141_v7 = vld [vmem:[#allocation11 + $0x108] sm:$0xff]  ;;  %v11766_v29 = vld [vmem:[#allocation54_spill] sm:$0xff] }
 0x1c8   :  { %8937 = vmatprep.subr.msk.bf16.mxu0 %vm383_vm1, %v10531_v2  ;;  %3256 = vperm.xlu0 %8957, %v137_v47   ;;  %v11768_v47 = vld [vmem:[#allocation62_spill] sm:$0xff] }
 0x1c9   :  { %3261 = vperm.xlu1 %8958, %v138_v50   ;;  %v158_v50 = vld [vmem:[#allocation11 + $0x190] sm:$0xff] }
 0x1cc   :  { %8106 = vmatmul.mubr.msk.bf16.gmra.mrb[40].mxu1 %vm172_vm0, %v11758_v27  ;;  %3330 = vperm.xlu0 %8957, %v140_v8   ;;  %v11770_v8 = vld [vmem:[#allocation32_spill] sm:$0xff] }
 0x1cd   :  { %8109 = vmatprep.mubr.msk.bf16.mxu1 %vm172_vm0, %v11759_v34  ;;  %3335 = vperm.xlu1 %8958, %v141_v7   ;;  %v11769_v34 = vld [vmem:[#allocation31_spill] sm:$0xff] }
 0x1ce   :  { %8272 = vmatmul.mubr.msk.bf16.gmra.mrb[68].mxu0 %vm172_vm0, %v10401_v51  ;;  %v145_v51 = vld [vmem:[#allocation11 + $0x128] sm:$0xff]  ;;  %v2842_v7 = vpack.c.bf16 %v11770_v8, %v11769_v34  ;;  %v5572_v8 = vsel %vm383_vm1, %v10531_v2, 0  ;;  %v5271_v2 = vld [vmem:[#allocation2 + $0x61] sm:$0xff] }
 0x1cf   :  { %8275 = vmatprep.mubr.msk.bf16.mxu0 %vm172_vm0, %v10416_v33  ;;  %v146_v33 = vld [vmem:[#allocation11 + $0x130] sm:$0xff] }
 0x1d0   :  { %3340 = vperm.xlu0 %8957, %v142_v57  }
 0x1d1   :  { %3345 = vperm.xlu1 %8958, %v143_v14   ;;  %v159_v14 = vld [vmem:[#allocation11 + $0x198] sm:$0xff] }
 0x1d4   :  { %8110 = vmatmul.mubr.msk.bf16.gmra.mrb[44].mxu1 %vm172_vm0, %v11760_v28  ;;  %3350 = vperm.xlu0 %8957, %v144_v42  }
 0x1d5   :  { %8113 = vmatprep.mubr.msk.bf16.mxu1 %vm172_vm0, %v11761_v18  ;;  %3355 = vperm.xlu1 %8958, %v145_v51   ;;  %v11771_v51 = vld [vmem:[#allocation36_spill] sm:$0xff] }
 0x1d6   :  { %8276 = vmatmul.mubr.msk.bf16.gmra.mrb[72].mxu0 %vm172_vm0, %v10424_v25 }
 0x1d7   :  { %8279 = vmatprep.mubr.msk.bf16.mxu0 %vm172_vm0, %v10435_v30  ;;  %v149_v30 = vld [vmem:[#allocation11 + $0x148] sm:$0xff] }
 0x1d8   :  { %3360 = vperm.xlu0 %8957, %v146_v33   ;;  %v2843_v33 = vpack.c.bf16 %v9971_v46, %v11771_v51  ;;  %v5270_v51 = vld [vmem:[#allocation2 + $0x59] sm:$0xff] }
 0x1d9   :  { %v10555_v55 = vpop.f32.mrb[0].mxu0  ;;  %3365 = vperm.xlu1 %8958, %v147_v4   ;;  %v162_v4 = vld [vmem:[#allocation11 + $0x1b0] sm:$0xff] }
 0x1da   :  { %v10557_v12 = vpop.f32.mrb[1].mxu0 }
 0x1db   :  { %v10559_v31 = vpop.f32.mrb[2].mxu0 }
 0x1dc   :  { %8114 = vmatmul.mubr.msk.bf16.gmra.mrb[48].mxu1 %vm172_vm0, %v11762_v52  ;;  %v10563_v25 = vpop.f32.mrb[3].mxu0  ;;  %3370 = vperm.xlu0 %8957, %v148_v62   ;;  %v11772_v52 = vld [vmem:[#allocation63_spill] sm:$0xff] }
 0x1dd   :  { %8117 = vmatprep.mubr.msk.bf16.mxu1 %vm172_vm0, %v11763_v9  ;;  %3375 = vperm.xlu1 %8958, %v149_v30   ;;  %v2844_v62 = vpack.c.bf16 %v9983_v1, %v11772_v52  ;;  %v5262_v9 = vld [vmem:[#allocation2 + $0x19] sm:$0xff]  ;;  %v5263_v30 = vld [vmem:[#allocation2 + $0x21] sm:$0xff] }
 0x1de   :  { %8280 = vmatmul.mubr.msk.bf16.gmra.mrb[76].mxu0 %vm172_vm0, %v10441_v16  ;;  %v10635_v46 = vpack.c.bf16 %v5263_v30, %v5262_v9  ;;  %v164_v1 = vld [vmem:[#allocation11 + $0x1c0] sm:$0xff]  ;;  %v171_v52 = vld [vmem:[#allocation11 + $0x1f8] sm:$0xff]  ;;  %v10682_v9 = vpack.c.bf16 %v5271_v2, %v5270_v51 }
 0x1df   :  { %8283 = vmatprep.mubr.msk.bf16.mxu0 %vm172_vm0, %v10451_v61  ;;  %v153_v61 = vld [vmem:[#allocation11 + $0x168] sm:$0xff] }
 0x1e0   :  { %3380 = vperm.xlu0 %8957, %v150_v56  }
 0x1e1   :  { %v10571_v20 = vpop.f32.mrb[4].mxu0  ;;  %3385 = vperm.xlu1 %8958, %v151_v21   ;;  %v4887_v21 = vsel %vm383_vm1, %v10515_v63, 0  ;;  %v165_v63 = vld [vmem:[#allocation11 + $0x1c8] sm:$0xff] }
 0x1e2   :  { %v10573_v49 = vpop.f32.mrb[5].mxu0 }
 0x1e3   :  { %v10575_v10 = vpop.f32.mrb[6].mxu0 }
 0x1e4   :  { %8118 = vmatmul.mubr.msk.bf16.gmra.mrb[52].mxu1 %vm172_vm0, %v11764_v6  ;;  %v10579_v16 = vpop.f32.mrb[7].mxu0  ;;  %3390 = vperm.xlu0 %8957, %v152_v32   ;;  %v10630_v6 = vld [vmem:[#allocation6 + $0x2] sm:$0x3] }
 0x1e5   :  { %8121 = vmatprep.mubr.msk.bf16.mxu1 %vm172_vm0, %v11765_v41  ;;  %3395 = vperm.xlu1 %8958, %v153_v61   ;;  %v5264_v61 = vld [vmem:[#allocation2 + $0x29] sm:$0xff] }
 0x1e6   :  { %8284 = vmatmul.mubr.msk.bf16.gmra.mrb[80].mxu0 %vm172_vm0, %v10457_v35 }
 0x1e7   :  { %8287 = vmatprep.mubr.msk.bf16.mxu0 %vm172_vm0, %v10467_v38  ;;  %v2253_v38 = vld [vmem:[#allocation2 + $0x11f] sm:$0xff] }
 0x1e8   :  { %3400 = vperm.xlu0 %8957, %v154_v11   ;;  %v2269_v27 = vpack.c.bf16 %v2253_v38, %v11768_v47  ;;  %v5265_v11 = vld [vmem:[#allocation2 + $0x31] sm:$0xff]  ;;  %v167_v47 = vld [vmem:[#allocation11 + $0x1d8] sm:$0xff] }
 0x1e9   :  { %v10587_v23 = vpop.f32.mrb[8].mxu0  ;;  %3405 = vperm.xlu1 %8958, %v155_v24   ;;  %v166_v24 = vld [vmem:[#allocation11 + $0x1d0] sm:$0xff] }
 0x1ea   :  { %v10589_v40 = vpop.f32.mrb[9].mxu0 }
 0x1eb   :  { %v10591_v43 = vpop.f32.mrb[10].mxu0 }
 0x1ec   :  { %8122 = vmatmul.mubr.msk.bf16.gmra.mrb[56].mxu1 %vm172_vm0, %v11766_v29  ;;  %v10595_v35 = vpop.f32.mrb[11].mxu0  ;;  %3410 = vperm.xlu0 %8957, %v156_v17   ;;  %v5266_v29 = vld [vmem:[#allocation2 + $0x39] sm:$0xff]  ;;  %v5267_v17 = vld [vmem:[#allocation2 + $0x41] sm:$0xff] }
 0x1ed   :  { %8125 = vmatprep.mubr.msk.bf16.mxu1 %vm172_vm0, %v11767_v15  ;;  %3415 = vperm.xlu1 %8958, %v157_v48   ;;  %v10650_v48 = vpack.c.bf16 %v5265_v11, %v5264_v61 }
 0x1ee   :  { %8288 = vmatmul.mubr.msk.bf16.gmra.mrb[84].mxu0 %vm172_vm0, %v10473_v37  ;;  %v160_v37 = vld [vmem:[#allocation11 + $0x1a0] sm:$0xff] }
 0x1ef   :  { %8291 = vmatprep.mubr.msk.bf16.mxu0 %vm172_vm0, %v10483_v0  ;;  %v161_v0 = vld [vmem:[#allocation11 + $0x1a8] sm:$0xff] }
 0x1f0   :  { %3420 = vperm.xlu0 %8957, %v158_v50   ;;  %v168_v50 = vld [vmem:[#allocation11 + $0x1e0] sm:$0xff] }
 0x1f1   :  { %v10606_v57 = vpop.f32.mrb[12].mxu0  ;;  %3425 = vperm.xlu1 %8958, %v159_v14   ;;  %v5268_v14 = vld [vmem:[#allocation2 + $0x49] sm:$0xff] }
 0x1f2   :  { %v10608_v28 = vpop.f32.mrb[13].mxu0 }
 0x1f3   :  { %v10610_v18 = vpop.f32.mrb[14].mxu0 }
 0x1f4   :  { %8126 = vmatmul.mubr.msk.bf16.gmra.mrb[60].mxu1 %vm172_vm0, %v2269_v27  ;;  %v10613_v42 = vpop.f32.mrb[15].mxu0  ;;  %3430 = vperm.xlu0 %8957, %v160_v37   ;;  %v10656_v27 = vpack.c.bf16 %v5267_v17, %v5266_v29  ;;  %v169_v37 = vld [vmem:[#allocation11 + $0x1e8] sm:$0xff] }
 0x1f5   :  { %8165 = vmatprep.mubr.msk.bf16.mxu1 %vm172_vm0, %v2842_v7  ;;  %3435 = vperm.xlu1 %8958, %v161_v0   ;;  %v10664_v7 = vld [vmem:[#allocation6 + $0xc] sm:$0x3]  ;;  %v5276_v17 = vld [vmem:[#allocation2 + $0x89] sm:$0xff] }
 0x1f6   :  { %8292 = vmatmul.mubr.msk.bf16.gmra.mrb[88].mxu0 %vm172_vm0, %v10489_v19  ;;  %v170_v0 = vld [vmem:[#allocation11 + $0x1f0] sm:$0xff] }
 0x1f7   :  { %8295 = vmatprep.mubr.msk.bf16.mxu0 %vm172_vm0, %v10499_v13  ;;  %v163_v13 = vld [vmem:[#allocation11 + $0x1b8] sm:$0xff] }
 0x1f8   :  { %3440 = vperm.xlu0 %8957, %v162_v4  }
 0x1f9   :  { %v10624_v56 = vpop.f32.mrb[16].mxu0  ;;  %3445 = vperm.xlu1 %8958, %v163_v13   ;;  %v5273_v13 = vld [vmem:[#allocation2 + $0x71] sm:$0xff] }
 0x1fa   :  { %v10628_v19 = vpop.f32.mrb[17].mxu0 }
 0x1fb   :  { %v10632_v32 = vpop.f32.mrb[18].mxu0 }
 0x1fc   :  { %8166 = vmatmul.mubr.msk.bf16.vlgmr.msra.gmra.mrb[64].mxu1 %vm172_vm0, %v2843_v33  ;;  %v10637_v41 = vpop.f32.mrb[19].mxu0  ;;  %3450 = vperm.xlu0 %8957, %v164_v1   ;;  %v5274_v1 = vld [vmem:[#allocation2 + $0x79] sm:$0xff] }
 0x1fd   :  { %11773 = vst [vmem:[#allocation23_spill] sm:$0xff] %v10637_v41  ;;  %8169 = vmatprep.mubr.msk.bf16.mxu1 %vm172_vm0, %v2844_v62  ;;  %8300 = vmatpush3.bf16.msra.mxu1 %v4887_v21  ;;  %v5272_v21 = vld [vmem:[#allocation2 + $0x69] sm:$0xff] }
 0x1fe   :  { %8935 = vmatprep.subr.msk.bf16.mxu1 %vm383_vm1, %v10630_v6  ;;  %8296 = vmatmul.mubr.msk.bf16.gmra.mrb[92].mxu0 %vm172_vm0, %v10505_v22  ;;  %v10696_v11 = vpack.c.bf16 %v5273_v13, %v5272_v21  ;;  %v5281_v13 = vld [vmem:[#allocation2 + $0xb1] sm:$0xff] }
 0x1ff   :  { %8369 = vmatprep.mubr.msk.bf16.mxu0 %vm172_vm0, %v10635_v46  ;;  %3455 = vperm.xlu1 %8958, %v165_v63   ;;  %v5275_v63 = vld [vmem:[#allocation2 + $0x81] sm:$0xff] }
 0x200   :  { %3460 = vperm.xlu0 %8957, %v166_v24  }
 0x201   :  { %v10646_v15 = vpop.f32.mrb[20].mxu0 }
 0x202   :  { %11774 = vst [vmem:[#allocation25_spill] sm:$0xff] %v10646_v15  ;;  %v10648_v38 = vpop.f32.mrb[21].mxu0 }
 0x203   :  { %11775 = vst [vmem:[#allocation28_spill] sm:$0xff] %v10648_v38  ;;  %v10652_v22 = vpop.f32.mrb[22].mxu0  ;;  %3465 = vperm.xlu1 %8958, %v167_v47   ;;  %v5277_v47 = vld [vmem:[#allocation2 + $0x91] sm:$0xff] }
 0x204   :  { %11776 = vst [vmem:[#allocation38_spill] sm:$0xff] %v10652_v22  ;;  %8170 = vmatmul.mubr.msk.bf16.gmra.mrb[68].mxu1 %vm172_vm0, %v10248_v5  ;;  %v10658_v34 = vpop.f32.mrb[23].mxu0  ;;  %3470 = vperm.xlu0 %8957, %v168_v50   ;;  %v5269_v5 = vld [vmem:[#allocation2 + $0x51] sm:$0xff]  ;;  %v5278_v50 = vld [vmem:[#allocation2 + $0x99] sm:$0xff] }
 0x205   :  { %11777 = vst [vmem:[#allocation27_spill] sm:$0xff] %v10658_v34  ;;  %8173 = vmatprep.mubr.msk.bf16.mxu1 %vm172_vm0, %v10263_v26  ;;  %v10676_v4 = vpack.c.bf16 %v5269_v5, %v5268_v14  ;;  %v4818_v34 = vld [vmem:[#allocation2 + $0x100] sm:$0xff]  ;;  %v4820_v22 = vld [vmem:[#allocation2 + $0x110] sm:$0xff] }
 0x206   :  { %8370 = vmatmul.mubr.msk.bf16.vlgmr.msra.gmra.mrb[96].mxu0 %vm172_vm0, %v10650_v48  ;;  %v4309_v38 = vld [vmem:[#allocation2 + $0x10] sm:$0xff] }
 0x207   :  { %8402 = vmatpush3.bf16.msra.mxu0 %v5572_v8  ;;  %8373 = vmatprep.mubr.msk.bf16.mxu0 %vm172_vm0, %v10656_v27  ;;  %v5279_v8 = vld [vmem:[#allocation2 + $0xa1] sm:$0xff] }
 0x208   :  { %8938 = vmatprep.subr.msk.bf16.mxu0 %vm383_vm1, %v10664_v7  ;;  %3475 = vperm.xlu1 %8958, %v169_v37   ;;  %v10712_v37 = vpack.c.bf16 %v5277_v47, %v5276_v17 }
 0x209   :  { %v10672_v26 = vpop.f32.mrb[24].mxu0  ;;  %3480 = vperm.xlu0 %8957, %v170_v0  }
 0x20a   :  { %11778 = vst [vmem:[#allocation33_spill] sm:$0xff] %v10672_v26  ;;  %v10674_v33 = vpop.f32.mrb[25].mxu0  ;;  %v4817_v26 = vld [vmem:[#allocation2 + $0xf8] sm:$0xff] }
 0x20b   :  { %11779 = vst [vmem:[#allocation34_spill] sm:$0xff] %v10674_v33  ;;  %v10678_v62 = vpop.f32.mrb[26].mxu0  ;;  %v4816_v33 = vld [vmem:[#allocation2 + $0xf0] sm:$0xff] }
 0x20c   :  { %11780 = vst [vmem:[#allocation39_spill] sm:$0xff] %v10678_v62  ;;  %8174 = vmatmul.mubr.msk.bf16.gmra.mrb[72].mxu1 %vm172_vm0, %v10267_v3  ;;  %v10684_v30 = vpop.f32.mrb[27].mxu0  ;;  %3485 = vperm.xlu1 %8958, %v171_v52  }
 0x20d   :  { %11781 = vst [vmem:[#allocation40_spill] sm:$0xff] %v10684_v30  ;;  %8177 = vmatprep.mubr.msk.bf16.mxu1 %vm172_vm0, %v10281_v60  ;;  %v10702_v60 = vpack.c.bf16 %v5275_v63, %v5274_v1  ;;  %v5282_v1 = vld [vmem:[#allocation2 + $0xb9] sm:$0xff]  ;;  %v5283_v63 = vld [vmem:[#allocation2 + $0xc1] sm:$0xff] }
 0x20e   :  { %8374 = vmatmul.mubr.msk.bf16.gmra.mrb[100].mxu0 %vm172_vm0, %v10676_v4 }
 0x20f   :  { %8377 = vmatprep.mubr.msk.bf16.mxu0 %vm172_vm0, %v10682_v9 }
 0x211   :  { %v10692_v61 = vpop.f32.mrb[28].mxu0 }
 0x212   :  { %11782 = vst [vmem:[#allocation43_spill] sm:$0xff] %v10692_v61  ;;  %v10694_v3 = vpop.f32.mrb[29].mxu0 }
 0x213   :  { %11783 = vst [vmem:[#allocation44_spill] sm:$0xff] %v10694_v3  ;;  %v10698_v24 = vpop.f32.mrb[30].mxu0  ;;  %v10783_v3 = vld [vmem:[#allocation6 + $0xe] sm:$0x3] }
 0x214   :  { %11784 = vst [vmem:[#allocation47_spill] sm:$0xff] %v10698_v24  ;;  %8178 = vmatmul.mubr.msk.bf16.gmra.mrb[76].mxu1 %vm172_vm0, %v10285_v59  ;;  %v10704_v29 = vpop.f32.mrb[31].mxu0 }
 0x215   :  { %11785 = vst [vmem:[#allocation48_spill] sm:$0xff] %v10704_v29  ;;  %8181 = vmatprep.mubr.msk.bf16.mxu1 %vm172_vm0, %v10301_v58  ;;  %v10716_v58 = vpack.c.bf16 %v5279_v8, %v5278_v50 }
 0x216   :  { %8378 = vmatmul.mubr.msk.bf16.gmra.mrb[104].mxu0 %vm172_vm0, %v10696_v11 }
 0x217   :  { %8381 = vmatprep.mubr.msk.bf16.mxu0 %vm172_vm0, %v10702_v60 }
 0x219   :  { %v8201_v14 = vpop.f32.mrb[32].mxu0 }
 0x21a   :  { %v7455_v5 = vpack.c.bf16 %v8201_v14, %v8201_v14  ;;  %v3939_v59 = vpop.f32.mrb[33].mxu0 }
 0x21b   :  { %v7453_v0 = vpack.c.bf16 %v3939_v59, %v3939_v59  ;;  %v8202_v51 = vpop.f32.mrb[34].mxu0 }
 0x21c   :  { %8182 = vmatmul.mubr.msk.bf16.gmra.mrb[80].mxu1 %vm172_vm0, %v10305_v39  ;;  %4197 = vst.msk [vmem:[#allocation15 + $0x88] sm:$0xf] %vm676_vm2, %v7455_v5  ;;  %v7456_v2 = vpack.c.bf16 %v8202_v51, %v8202_v51  ;;  %v3942_v52 = vpop.f32.mrb[35].mxu0  ;;  %v5280_v39 = vld [vmem:[#allocation2 + $0xa9] sm:$0xff]  ;;  %v10732_v5 = vpack.c.bf16 %v5283_v63, %v5282_v1 }
 0x21d   :  { %8185 = vmatprep.mubr.msk.bf16.mxu1 %vm172_vm0, %v10321_v45  ;;  %4195 = vst.msk [vmem:[#allocation15 + $0x80] sm:$0xf] %vm676_vm2, %v7453_v0  ;;  %v7454_v21 = vpack.c.bf16 %v3942_v52, %v3942_v52  ;;  %v10728_v50 = vpack.c.bf16 %v5281_v13, %v5280_v39  ;;  %v5286_v52 = vld [vmem:[#allocation2 + $0xd9] sm:$0xff] }
 0x21e   :  { %4198 = vst.msk [vmem:[#allocation15 + $0x8c] sm:$0xf] %vm676_vm2, %v7456_v2  ;;  %8382 = vmatmul.mubr.msk.bf16.gmra.mrb[108].mxu0 %vm172_vm0, %v10712_v37  ;;  %v5285_v2 = vld [vmem:[#allocation2 + $0xd1] sm:$0xff] }
 0x21f   :  { %4196 = vst.msk [vmem:[#allocation15 + $0x84] sm:$0xf] %vm676_vm2, %v7454_v21  ;;  %8385 = vmatprep.mubr.msk.bf16.mxu0 %vm172_vm0, %v10716_v58  ;;  %v5287_v21 = vld [vmem:[#allocation2 + $0xe1] sm:$0xff] }
 0x221   :  { %v8205_v17 = vpop.f32.mrb[36].mxu0 }
 0x222   :  { %v7459_v47 = vpack.c.bf16 %v8205_v17, %v8205_v17  ;;  %v3955_v45 = vpop.f32.mrb[37].mxu0 }
 0x223   :  { %v7457_v8 = vpack.c.bf16 %v3955_v45, %v3955_v45  ;;  %v8206_v14 = vpop.f32.mrb[38].mxu0 }
 0x224   :  { %8186 = vmatmul.mubr.msk.bf16.gmra.mrb[84].mxu1 %vm172_vm0, %v10325_v54  ;;  %4201 = vst.msk [vmem:[#allocation15 + $0x98] sm:$0xf] %vm676_vm2, %v7459_v47  ;;  %v7460_v59 = vpack.c.bf16 %v8206_v14, %v8206_v14  ;;  %v3958_v0 = vpop.f32.mrb[39].mxu0  ;;  %v5284_v54 = vld [vmem:[#allocation2 + $0xc9] sm:$0xff]  ;;  %v10748_v47 = vpack.c.bf16 %v5287_v21, %v5286_v52  ;;  %v2840_v14 = vld [vmem:[#allocation2 + $0x119] sm:$0xff] }
 0x225   :  { %8189 = vmatprep.mubr.msk.bf16.mxu1 %vm172_vm0, %v10341_v36  ;;  %4199 = vst.msk [vmem:[#allocation15 + $0x90] sm:$0xf] %vm676_vm2, %v7457_v8  ;;  %v7458_v51 = vpack.c.bf16 %v3958_v0, %v3958_v0  ;;  %v10744_v1 = vpack.c.bf16 %v5285_v2, %v5284_v54  ;;  %v4790_v54 = vld [vmem:[#allocation2 + $0x20] sm:$0xff]  ;;  %v5288_v2 = vld [vmem:[#allocation2 + $0xe9] sm:$0xff] }
 0x226   :  { %4202 = vst.msk [vmem:[#allocation15 + $0x9c] sm:$0xf] %vm676_vm2, %v7460_v59  ;;  %8386 = vmatmul.mubr.msk.bf16.gmra.mrb[112].mxu0 %vm172_vm0, %v10728_v50  ;;  %v2841_v59 = vld [vmem:[#allocation2 + $0x121] sm:$0xff]  ;;  %v5290_v21 = vld [vmem:[#allocation2 + $0xf9] sm:$0xff] }
 0x227   :  { %4200 = vst.msk [vmem:[#allocation15 + $0x94] sm:$0xf] %vm676_vm2, %v7458_v51  ;;  %8389 = vmatprep.mubr.msk.bf16.mxu0 %vm172_vm0, %v10732_v5  ;;  %v4789_v51 = vld [vmem:[#allocation2 + $0x18] sm:$0xff] }
 0x228   :  { %v10760_v52 = vpack.c.bf16 %v4790_v54, %v4789_v51  ;;  %v4791_v51 = vld [vmem:[#allocation2 + $0x28] sm:$0xff]  ;;  %v4792_v54 = vld [vmem:[#allocation2 + $0x30] sm:$0xff] }
 0x229   :  { %v8209_v39 = vpop.f32.mrb[40].mxu0 }
 0x22a   :  { %v7463_v13 = vpack.c.bf16 %v8209_v39, %v8209_v39  ;;  %v3971_v36 = vpop.f32.mrb[41].mxu0  ;;  %v5291_v39 = vld [vmem:[#allocation2 + $0x101] sm:$0xff] }
 0x22b   :  { %v7461_v63 = vpack.c.bf16 %v3971_v36, %v3971_v36  ;;  %v8210_v17 = vpop.f32.mrb[42].mxu0 }
 0x22c   :  { %8190 = vmatmul.mubr.msk.bf16.gmra.mrb[88].mxu1 %vm172_vm0, %v10345_v44  ;;  %4205 = vst.msk [vmem:[#allocation15 + $0xa8] sm:$0xf] %vm676_vm2, %v7463_v13  ;;  %v7464_v45 = vpack.c.bf16 %v8210_v17, %v8210_v17  ;;  %v3974_v8 = vpop.f32.mrb[43].mxu0  ;;  %v2857_v44 = vpack.c.bf16 %v2841_v59, %v2840_v14 }
 0x22d   :  { %8193 = vmatprep.mubr.msk.bf16.mxu1 %vm172_vm0, %v11739_v53  ;;  %4203 = vst.msk [vmem:[#allocation15 + $0xa0] sm:$0xf] %vm676_vm2, %v7461_v63  ;;  %v7462_v0 = vpack.c.bf16 %v3974_v8, %v3974_v8  ;;  %v5289_v53 = vld [vmem:[#allocation2 + $0xf1] sm:$0xff] }
 0x22e   :  { %4206 = vst.msk [vmem:[#allocation15 + $0xac] sm:$0xf] %vm676_vm2, %v7464_v45  ;;  %8390 = vmatmul.mubr.msk.bf16.gmra.mrb[116].mxu0 %vm172_vm0, %v10744_v1  ;;  %v10762_v17 = vpack.c.bf16 %v5289_v53, %v5288_v2  ;;  %v4793_v2 = vld [vmem:[#allocation2 + $0x38] sm:$0xff]  ;;  %v4794_v53 = vld [vmem:[#allocation2 + $0x40] sm:$0xff] }
 0x22f   :  { %4204 = vst.msk [vmem:[#allocation15 + $0xa4] sm:$0xf] %vm676_vm2, %v7462_v0  ;;  %8393 = vmatprep.mubr.msk.bf16.mxu0 %vm172_vm0, %v10748_v47  ;;  %v10765_v0 = vpack.c.bf16 %v5291_v39, %v5290_v21  ;;  %v5292_v21 = vld [vmem:[#allocation2 + $0x109] sm:$0xff]  ;;  %v5293_v39 = vld [vmem:[#allocation2 + $0x111] sm:$0xff] }
 0x230   :  { %v5309_v24 = vpack.c.bf16 %v5293_v39, %v5292_v21  ;;  %v4797_v39 = vld [vmem:[#allocation2 + $0x58] sm:$0xff] }
 0x231   :  { %v8213_v13 = vpop.f32.mrb[44].mxu0 }
 0x232   :  { %v7467_v36 = vpack.c.bf16 %v8213_v13, %v8213_v13  ;;  %v3987_v63 = vpop.f32.mrb[45].mxu0 }
 0x233   :  { %v7465_v45 = vpack.c.bf16 %v3987_v63, %v3987_v63  ;;  %v8214_v8 = vpop.f32.mrb[46].mxu0  ;;  %v4357_v63 = vld [vmem:[#allocation2 + $0x9] sm:$0xff] }
 0x234   :  { %8194 = vmatmul.mubr.msk.bf16.gmra.mrb[92].mxu1 %vm172_vm0, %v2857_v44  ;;  %4209 = vst.msk [vmem:[#allocation15 + $0xb8] sm:$0xf] %vm676_vm2, %v7467_v36  ;;  %v7468_v14 = vpack.c.bf16 %v8214_v8, %v8214_v8  ;;  %v3990_v59 = vpop.f32.mrb[47].mxu0  ;;  %v10777_v44 = vpack.c.bf16 %v4792_v54, %v4791_v51  ;;  %v10779_v36 = vpack.c.bf16 %v4794_v53, %v4793_v2  ;;  %v4795_v53 = vld [vmem:[#allocation2 + $0x48] sm:$0xff] }
 0x235   :  { %8301 = vmatprep.mubr.msk.bf16.mxu1 %vm172_vm0, %v10760_v52  ;;  %4207 = vst.msk [vmem:[#allocation15 + $0xb0] sm:$0xf] %vm676_vm2, %v7465_v45  ;;  %v7466_v13 = vpack.c.bf16 %v3990_v59, %v3990_v59  ;;  %v4358_v45 = vld [vmem:[#allocation2 + $0x11] sm:$0xff] }
 0x236   :  { %4210 = vst.msk [vmem:[#allocation15 + $0xbc] sm:$0xf] %vm676_vm2, %v7468_v14  ;;  %8394 = vmatmul.mubr.msk.bf16.gmra.mrb[120].mxu0 %vm172_vm0, %v10762_v17  ;;  %11786 = vst [vmem:[#allocation51_spill] sm:$0xff] %v10777_v44  ;;  %v5099_v14 = vsel %vm383_vm1, %v10630_v6, 0  ;;  %v4389_v51 = vpack.c.bf16 %v4358_v45, %v4357_v63  ;;  %v4796_v6 = vld [vmem:[#allocation2 + $0x50] sm:$0xff] }
 0x237   :  { %4208 = vst.msk [vmem:[#allocation15 + $0xb4] sm:$0xf] %vm676_vm2, %v7466_v13  ;;  %8397 = vmatprep.mubr.msk.bf16.mxu0 %vm172_vm0, %v10765_v0  ;;  %11787 = vst [vmem:[#allocation52_spill] sm:$0xff] %v10779_v36 }
 0x239   :  { %v8217_v8 = vpop.f32.mrb[48].mxu0 }
 0x23a   :  { %v7471_v59 = vpack.c.bf16 %v8217_v8, %v8217_v8  ;;  %v4003_v29 = vpop.f32.mrb[49].mxu0 }
 0x23b   :  { %v7469_v13 = vpack.c.bf16 %v4003_v29, %v4003_v29  ;;  %v8218_v61 = vpop.f32.mrb[50].mxu0  ;;  %v4798_v29 = vld [vmem:[#allocation2 + $0x60] sm:$0xff] }
 0x23c   :  { %8302 = vmatmul.mubr.msk.bf16.vlgmr.msra.gmra.mrb[96].mxu1 %vm172_vm0, %v10777_v44  ;;  %4213 = vst.msk [vmem:[#allocation15 + $0xc8] sm:$0xf] %vm676_vm2, %v7471_v59  ;;  %v7472_v54 = vpack.c.bf16 %v8218_v61, %v8218_v61  ;;  %v4006_v2 = vpop.f32.mrb[51].mxu0  ;;  %v10797_v61 = vpack.c.bf16 %v4796_v6, %v4795_v53  ;;  %v10799_v63 = vpack.c.bf16 %v4798_v29, %v4797_v39  ;;  %v4800_v53 = vld [vmem:[#allocation2 + $0x70] sm:$0xff]  ;;  %v4802_v39 = vld [vmem:[#allocation2 + $0x80] sm:$0xff] }
 0x23d   :  { %8305 = vmatprep.mubr.msk.bf16.mxu1 %vm172_vm0, %v10779_v36  ;;  %8334 = vmatpush3.bf16.msra.mxu1 %v5099_v14  ;;  %4211 = vst.msk [vmem:[#allocation15 + $0xc0] sm:$0xf] %vm676_vm2, %v7469_v13  ;;  %v7470_v21 = vpack.c.bf16 %v4006_v2, %v4006_v2  ;;  %v5833_v2 = vsel %vm383_vm1, %v10664_v7, 0  ;;  %v10809_v29 = vld [vmem:[#allocation6 + $0x10] sm:$0x3] }
 0x23e   :  { %8939 = vmatprep.subr.msk.bf16.mxu1 %vm383_vm1, %v10783_v3  ;;  %4214 = vst.msk [vmem:[#allocation15 + $0xcc] sm:$0xf] %vm676_vm2, %v7472_v54  ;;  %8398 = vmatmul.mubr.msk.bf16.gmra.mrb[124].mxu0 %vm172_vm0, %v5309_v24  ;;  %11788 = vst [vmem:[#allocation56_spill] sm:$0xff] %v10797_v61 }
 0x23f   :  { %4212 = vst.msk [vmem:[#allocation15 + $0xc4] sm:$0xf] %vm676_vm2, %v7470_v21  ;;  %8403 = vmatprep.mubr.msk.bf16.mxu0 %vm172_vm0, %v4389_v51  ;;  %11789 = vst [vmem:[#allocation57_spill] sm:$0xff] %v10799_v63  ;;  %v4799_v51 = vld [vmem:[#allocation2 + $0x68] sm:$0xff]  ;;  %v4801_v21 = vld [vmem:[#allocation2 + $0x78] sm:$0xff] }
 0x240   :  { %v10817_v7 = vpack.c.bf16 %v4800_v53, %v4799_v51  ;;  %v4804_v51 = vld [vmem:[#allocation2 + $0x90] sm:$0xff]  ;;  %v10830_v53 = vpop.permute.xlu1 %3116 }
 0x241   :  { %v8221_v45 = vpop.f32.mrb[52].mxu0  ;;  %11792 = vst [vmem:[#allocation60_spill] sm:$0xff] %v10830_v53 }
 0x242   :  { %v7475_v8 = vpack.c.bf16 %v8221_v45, %v8221_v45  ;;  %v4019_v14 = vpop.f32.mrb[53].mxu0  ;;  %11790 = vst [vmem:[#allocation61_spill] sm:$0xff] %v10817_v7  ;;  %v10819_v45 = vpack.c.bf16 %v4802_v39, %v4801_v21  ;;  %v4805_v21 = vld [vmem:[#allocation2 + $0x98] sm:$0xff]  ;;  %v4806_v39 = vld [vmem:[#allocation2 + $0xa0] sm:$0xff] }
 0x243   :  { %v7473_v59 = vpack.c.bf16 %v4019_v14, %v4019_v14  ;;  %v8222_v13 = vpop.f32.mrb[54].mxu0 }
 0x244   :  { %8306 = vmatmul.mubr.msk.bf16.gmra.mrb[100].mxu1 %vm172_vm0, %v10797_v61  ;;  %4217 = vst.msk [vmem:[#allocation15 + $0xd8] sm:$0xf] %vm676_vm2, %v7475_v8  ;;  %v7476_v54 = vpack.c.bf16 %v8222_v13, %v8222_v13  ;;  %v4022_v24 = vpop.f32.mrb[55].mxu0  ;;  %v10823_v13 = vpop.permute.xlu0 %3106 }
 0x245   :  { %8309 = vmatprep.mubr.msk.bf16.mxu1 %vm172_vm0, %v10799_v63  ;;  %4215 = vst.msk [vmem:[#allocation15 + $0xd0] sm:$0xf] %vm676_vm2, %v7473_v59  ;;  %v7474_v6 = vpack.c.bf16 %v4022_v24, %v4022_v24  ;;  %11791 = vst [vmem:[#allocation59_spill] sm:$0xff] %v10823_v13  ;;  %v10845_v30 = vpop.permute.xlu1 %3121 }
 0x246   :  { %4218 = vst.msk [vmem:[#allocation15 + $0xdc] sm:$0xf] %vm676_vm2, %v7476_v54  ;;  %8404 = vmatmul.mubr.msk.bf16.vlgmr.msra.gmra.mrb[96].mxu0 %vm172_vm0, %v10635_v46  ;;  %11794 = vst [vmem:[#allocation24_spill] sm:$0xff] %v10845_v30 }
 0x247   :  { %4216 = vst.msk [vmem:[#allocation15 + $0xd4] sm:$0xf] %vm676_vm2, %v7474_v6  ;;  %8436 = vmatpush3.bf16.msra.mxu0 %v5833_v2  ;;  %8407 = vmatprep.mubr.msk.bf16.mxu0 %vm172_vm0, %v10650_v48  ;;  %v4803_v2 = vld [vmem:[#allocation2 + $0x88] sm:$0xff] }
 0x248   :  { %8940 = vmatprep.subr.msk.bf16.mxu0 %vm383_vm1, %v10809_v29 }
 0x249   :  { %v8225_v8 = vpop.f32.mrb[56].mxu0 }
 0x24a   :  { %v7479_v14 = vpack.c.bf16 %v8225_v8, %v8225_v8  ;;  %v4035_v59 = vpop.f32.mrb[57].mxu0  ;;  %v10839_v8 = vpack.c.bf16 %v4804_v51, %v4803_v2  ;;  %v4807_v2 = vld [vmem:[#allocation2 + $0xa8] sm:$0xff]  ;;  %v4808_v51 = vld [vmem:[#allocation2 + $0xb0] sm:$0xff] }
 0x24b   :  { %v7477_v54 = vpack.c.bf16 %v4035_v59, %v4035_v59  ;;  %v8226_v46 = vpop.f32.mrb[58].mxu0  ;;  %v10843_v59 = vpop.permute.xlu0 %3111 }
 0x24c   :  { %8310 = vmatmul.mubr.msk.bf16.gmra.mrb[104].mxu1 %vm172_vm0, %v10817_v7  ;;  %4221 = vst.msk [vmem:[#allocation15 + $0xe8] sm:$0xf] %vm676_vm2, %v7479_v14  ;;  %v7480_v48 = vpack.c.bf16 %v8226_v46, %v8226_v46  ;;  %v4038_v24 = vpop.f32.mrb[59].mxu0  ;;  %v10841_v14 = vpack.c.bf16 %v4806_v39, %v4805_v21  ;;  %11793 = vst [vmem:[#allocation55_spill] sm:$0xff] %v10843_v59  ;;  %v4809_v21 = vld [vmem:[#allocation2 + $0xb8] sm:$0xff]  ;;  %v4810_v39 = vld [vmem:[#allocation2 + $0xc0] sm:$0xff] }
 0x24d   :  { %8313 = vmatprep.mubr.msk.bf16.mxu1 %vm172_vm0, %v10819_v45  ;;  %4219 = vst.msk [vmem:[#allocation15 + $0xe0] sm:$0xf] %vm676_vm2, %v7477_v54  ;;  %v7478_v6 = vpack.c.bf16 %v4038_v24, %v4038_v24 }
 0x24e   :  { %4222 = vst.msk [vmem:[#allocation15 + $0xec] sm:$0xf] %vm676_vm2, %v7480_v48  ;;  %8408 = vmatmul.mubr.msk.bf16.gmra.mrb[100].mxu0 %vm172_vm0, %v10656_v27 }
 0x24f   :  { %4220 = vst.msk [vmem:[#allocation15 + $0xe4] sm:$0xf] %vm676_vm2, %v7478_v6  ;;  %8411 = vmatprep.mubr.msk.bf16.mxu0 %vm172_vm0, %v10676_v4 }
 0x251   :  { %v8229_v54 = vpop.f32.mrb[60].mxu0 }
 0x252   :  { %v7483_v46 = vpack.c.bf16 %v8229_v54, %v8229_v54  ;;  %v4051_v24 = vpop.f32.mrb[61].mxu0  ;;  %v10856_v54 = vpop.permute.xlu0 %3126 }
 0x253   :  { %v7481_v48 = vpack.c.bf16 %v4051_v24, %v4051_v24  ;;  %v8230_v62 = vpop.f32.mrb[62].mxu0  ;;  %11795 = vst [vmem:[#allocation26_spill] sm:$0xff] %v10856_v54  ;;  %v10865_v24 = vpop.permute.xlu1 %3131 }
 0x254   :  { %8314 = vmatmul.mubr.msk.bf16.gmra.mrb[108].mxu1 %vm172_vm0, %v10839_v8  ;;  %4225 = vst.msk [vmem:[#allocation15 + $0xf8] sm:$0xf] %vm676_vm2, %v7483_v46  ;;  %v7484_v27 = vpack.c.bf16 %v8230_v62, %v8230_v62  ;;  %v4054_v4 = vpop.f32.mrb[63].mxu0  ;;  %v10861_v62 = vpack.c.bf16 %v4808_v51, %v4807_v2  ;;  %v10863_v46 = vpack.c.bf16 %v4810_v39, %v4809_v21  ;;  %11796 = vst [vmem:[#allocation29_spill] sm:$0xff] %v10865_v24  ;;  %v4815_v39 = vld [vmem:[#allocation2 + $0xe8] sm:$0xff] }
 0x255   :  { %8317 = vmatprep.mubr.msk.bf16.mxu1 %vm172_vm0, %v10841_v14  ;;  %4223 = vst.msk [vmem:[#allocation15 + $0xf0] sm:$0xf] %vm676_vm2, %v7481_v48  ;;  %v7482_v6 = vpack.c.bf16 %v4054_v4, %v4054_v4  ;;  %v4812_v48 = vld [vmem:[#allocation2 + $0xd0] sm:$0xff]  ;;  %v4813_v4 = vld [vmem:[#allocation2 + $0xd8] sm:$0xff] }
 0x256   :  { %4226 = vst.msk [vmem:[#allocation15 + $0xfc] sm:$0xf] %vm676_vm2, %v7484_v27  ;;  %8412 = vmatmul.mubr.msk.bf16.gmra.mrb[104].mxu0 %vm172_vm0, %v10682_v9  ;;  %v4811_v9 = vld [vmem:[#allocation2 + $0xc8] sm:$0xff]  ;;  %v10871_v27 = vpop.permute.xlu0 %3136 }
 0x257   :  { %4224 = vst.msk [vmem:[#allocation15 + $0xf4] sm:$0xf] %vm676_vm2, %v7482_v6  ;;  %8415 = vmatprep.mubr.msk.bf16.mxu0 %vm172_vm0, %v10696_v11  ;;  %11797 = vst [vmem:[#allocation30_spill] sm:$0xff] %v10871_v27  ;;  %v4814_v6 = vld [vmem:[#allocation2 + $0xe0] sm:$0xff]  ;;  %v10875_v11 = vpop.permute.xlu1 %3141  ;;  %v10879_v2 = vpack.c.bf16 %v4812_v48, %v4811_v9  ;;  %v10897_v9 = vpack.c.bf16 %v4818_v34, %v4817_v26 }
 0x258   :  { %11798 = vst [vmem:[#allocation35_spill] sm:$0xff] %v10875_v11  ;;  %v10881_v51 = vpack.c.bf16 %v4814_v6, %v4813_v4  ;;  %v4819_v6 = vld [vmem:[#allocation2 + $0x108] sm:$0xff] }
 0x259   :  { %v4836_v34 = vpack.c.bf16 %v4820_v22, %v4819_v6 }
 0x25a   :  { %v10883_v21 = vpop.permute.xlu0 %3146 }
 0x25b   :  { %11799 = vst [vmem:[#allocation37_spill] sm:$0xff] %v10883_v21 }
 0x25c   :  { %8318 = vmatmul.mubr.msk.bf16.gmra.mrb[112].mxu1 %vm172_vm0, %v10861_v62 }
 0x25d   :  { %8321 = vmatprep.mubr.msk.bf16.mxu1 %vm172_vm0, %v10863_v46 }
 0x25e   :  { %8416 = vmatmul.mubr.msk.bf16.gmra.mrb[108].mxu0 %vm172_vm0, %v10702_v60  ;;  %v10889_v60 = vpop.permute.xlu1 %3151  ;;  %v10899_v48 = vpop.permute.xlu0 %3156 }
 0x25f   :  { %8419 = vmatprep.mubr.msk.bf16.mxu0 %vm172_vm0, %v10712_v37  ;;  %11800 = vst [vmem:[#allocation41_spill] sm:$0xff] %v10889_v60  ;;  %v10895_v37 = vpack.c.bf16 %v4816_v33, %v4815_v39  ;;  %11801 = vst [vmem:[#allocation42_spill] sm:$0xff] %v10899_v48 }
 0x262   :  { %v10901_v4 = vpop.permute.xlu1 %3161  ;;  %v10909_v33 = vpop.permute.xlu0 %3166 }
 0x263   :  { %11802 = vst [vmem:[#allocation45_spill] sm:$0xff] %v10901_v4  ;;  %11803 = vst [vmem:[#allocation46_spill] sm:$0xff] %v10909_v33 }
 0x264   :  { %8322 = vmatmul.mubr.msk.bf16.gmra.mrb[116].mxu1 %vm172_vm0, %v10879_v2 }
 0x265   :  { %8325 = vmatprep.mubr.msk.bf16.mxu1 %vm172_vm0, %v10881_v51 }
 0x266   :  { %8420 = vmatmul.mubr.msk.bf16.gmra.mrb[112].mxu0 %vm172_vm0, %v10716_v58  ;;  %v4308_v58 = vld [vmem:[#allocation2 + $0x8] sm:$0xff]  ;;  %v10917_v39 = vpop.permute.xlu0 %3176 }
 0x267   :  { %8423 = vmatprep.mubr.msk.bf16.mxu0 %vm172_vm0, %v10728_v50  ;;  %v4340_v26 = vpack.c.bf16 %v4309_v38, %v4308_v58  ;;  %v10913_v50 = vpop.permute.xlu1 %3171  ;;  %11805 = vst [vmem:[#allocation50_spill] sm:$0xff] %v10917_v39  ;;  %v6126_v38 = vsel %vm383_vm1, %v10783_v3, 0  ;;  %v5738_v58 = vld [vmem:[#allocation2 + $0x3f] sm:$0xff]  ;;  %v5739_v3 = vld [vmem:[#allocation2 + $0x47] sm:$0xff] }
 0x268   :  { %11804 = vst [vmem:[#allocation49_spill] sm:$0xff] %v10913_v50 }
 0x26a   :  { %v10927_v22 = vpop.permute.xlu0 %3186 }
 0x26b   :  { %v10921_v15 = vpop.permute.xlu1 %3181  ;;  %11807 = vst [vmem:[#allocation54_spill] sm:$0xff] %v10927_v22 }
 0x26c   :  { %8326 = vmatmul.mubr.msk.bf16.gmra.mrb[120].mxu1 %vm172_vm0, %v10895_v37  ;;  %11806 = vst [vmem:[#allocation53_spill] sm:$0xff] %v10921_v15 }
 0x26d   :  { %8329 = vmatprep.mubr.msk.bf16.mxu1 %vm172_vm0, %v10897_v9 }
 0x26e   :  { %8424 = vmatmul.mubr.msk.bf16.gmra.mrb[116].mxu0 %vm172_vm0, %v10732_v5  ;;  %v5735_v5 = vld [vmem:[#allocation2 + $0x27] sm:$0xff] }
 0x26f   :  { %8427 = vmatprep.mubr.msk.bf16.mxu0 %vm172_vm0, %v10744_v1  ;;  %v5736_v1 = vld [vmem:[#allocation2 + $0x2f] sm:$0xff] }
 0x270   :  { %v5767_v6 = vpack.c.bf16 %v5736_v1, %v5735_v5  ;;  %v6419_v1 = vsel %vm383_vm1, %v10809_v29, 0 }
 0x274   :  { %8330 = vmatmul.mubr.msk.bf16.gmra.mrb[124].mxu1 %vm172_vm0, %v4836_v34  ;;  %v5740_v34 = vld [vmem:[#allocation2 + $0x4f] sm:$0xff] }
 0x275   :  { %8335 = vmatprep.mubr.msk.bf16.mxu1 %vm172_vm0, %v4340_v26  ;;  %v10938_v26 = vpop.permute.xlu0 %3196  ;;  %v5769_v5 = vpack.c.bf16 %v5740_v34, %v5739_v3 }
 0x276   :  { %8428 = vmatmul.mubr.msk.bf16.gmra.mrb[120].mxu0 %vm172_vm0, %v10748_v47  ;;  %v10933_v47 = vpop.permute.xlu1 %3191  ;;  %11809 = vst [vmem:[#allocation62_spill] sm:$0xff] %v10938_v26 }
 0x277   :  { %8431 = vmatprep.mubr.msk.bf16.mxu0 %vm172_vm0, %v10762_v17  ;;  %11808 = vst [vmem:[#allocation58_spill] sm:$0xff] %v10933_v47  ;;  %v5737_v17 = vld [vmem:[#allocation2 + $0x37] sm:$0xff] }
 0x278   :  { %v5768_v41 = vpack.c.bf16 %v5738_v58, %v5737_v17  ;;  %v5743_v17 = vld [vmem:[#allocation2 + $0x67] sm:$0xff]  ;;  %v5744_v58 = vld [vmem:[#allocation2 + $0x6f] sm:$0xff] }
 0x279   :  { %v5771_v29 = vpack.c.bf16 %v5744_v58, %v5743_v17  ;;  %v5747_v58 = vld [vmem:[#allocation2 + $0x87] sm:$0xff] }
 0x27c   :  { %8336 = vmatmul.mubr.msk.bf16.vlgmr.msra.gmra.mrb[96].mxu1 %vm172_vm0, %v10760_v52  ;;  %v10940_v52 = vpop.permute.xlu1 %3201 }
 0x27d   :  { %8339 = vmatprep.mubr.msk.bf16.mxu1 %vm172_vm0, %v10777_v44  ;;  %8470 = vmatpush3.bf16.msra.mxu1 %v6126_v38  ;;  %11810 = vst [vmem:[#allocation31_spill] sm:$0xff] %v10940_v52  ;;  %v5741_v38 = vld [vmem:[#allocation2 + $0x57] sm:$0xff] }
 0x27e   :  { %8432 = vmatmul.mubr.msk.bf16.gmra.mrb[124].mxu0 %vm172_vm0, %v10765_v0  ;;  %v10949_v0 = vpop.permute.xlu0 %3206 }
 0x27f   :  { %8437 = vmatprep.mubr.msk.bf16.mxu0 %vm172_vm0, %v5767_v6  ;;  %11811 = vst [vmem:[#allocation32_spill] sm:$0xff] %v10949_v0  ;;  %v5742_v6 = vld [vmem:[#allocation2 + $0x5f] sm:$0xff] }
 0x280   :  { %v10952_v44 = vpop.permute.xlu1 %3211  ;;  %v5770_v3 = vpack.c.bf16 %v5742_v6, %v5741_v38  ;;  %v5745_v38 = vld [vmem:[#allocation2 + $0x77] sm:$0xff]  ;;  %v5746_v6 = vld [vmem:[#allocation2 + $0x7f] sm:$0xff] }
 0x281   :  { %11812 = vst [vmem:[#allocation36_spill] sm:$0xff] %v10952_v44 }
 0x284   :  { %8340 = vmatmul.mubr.msk.bf16.gmra.mrb[100].mxu1 %vm172_vm0, %v10779_v36  ;;  %v5748_v36 = vld [vmem:[#allocation2 + $0x8f] sm:$0xff] }
 0x285   :  { %8343 = vmatprep.mubr.msk.bf16.mxu1 %vm172_vm0, %v10797_v61 }
 0x286   :  { %8438 = vmatmul.mubr.msk.bf16.vlgmr.msra.gmra.mrb[64].mxu0 %vm172_vm0, %v5768_v41  ;;  %v10958_v41 = vpop.permute.xlu0 %3216 }
 0x287   :  { %8504 = vmatpush3.bf16.msra.mxu0 %v6419_v1  ;;  %8441 = vmatprep.mubr.msk.bf16.mxu0 %vm172_vm0, %v5769_v5  ;;  %11813 = vst [vmem:[#allocation63_spill] sm:$0xff] %v10958_v41  ;;  %v10961_v5 = vpop.permute.xlu1 %3221 }
 0x288   :  { %11814 = vst [vmem:[#allocation64_spill] sm:$0xff] %v10961_v5 }
 0x28c   :  { %8344 = vmatmul.mubr.msk.bf16.gmra.mrb[104].mxu1 %vm172_vm0, %v10799_v63 }
 0x28d   :  { %8347 = vmatprep.mubr.msk.bf16.mxu1 %vm172_vm0, %v10817_v7 }
 0x28e   :  { %8442 = vmatmul.mubr.msk.bf16.gmra.mrb[68].mxu0 %vm172_vm0, %v5770_v3 }
 0x28f   :  { %v8099_v34 = vpop.f32.mrb[32].mxu1  ;;  %8445 = vmatprep.mubr.msk.bf16.mxu0 %vm172_vm0, %v5771_v29  ;;  %v10974_v29 = vpop.permute.xlu0 %3226 }
 0x290   :  { %v3266_v1 = vmul.f32 %v8099_v34, %v10830_v53  ;;  %v2357_v61 = vpop.f32.mrb[33].mxu1  ;;  %v5772_v53 = vpack.c.bf16 %v5746_v6, %v5745_v38  ;;  %11815 = vst [vmem:[#allocation65_spill] sm:$0xff] %v10974_v29  ;;  %v5750_v38 = vld [vmem:[#allocation2 + $0x9f] sm:$0xff] }
 0x291   :  { %v3264_v63 = vmul.f32 %v10823_v13, %v2357_v61  ;;  %v8100_v17 = vpop.f32.mrb[34].mxu1  ;;  %v5773_v61 = vpack.c.bf16 %v5748_v36, %v5747_v58 }
 0x292   :  { %v10967_v7 = vadd.f32 %v10555_v55, %v3266_v1  ;;  %v3267_v3 = vmul.f32 %v8100_v17, %v10845_v30  ;;  %v2360_v44 = vpop.f32.mrb[35].mxu1  ;;  %v5752_v17 = vld [vmem:[#allocation2 + $0xaf] sm:$0xff]  ;;  %v11834_v30 = vld [vmem:[#allocation38_spill] sm:$0xff] }
 0x293   :  { %v10971_v5 = vadd.f32 %v3264_v63, %v10557_v12  ;;  %v3265_v34 = vmul.f32 %v10843_v59, %v2360_v44  ;;  %v10986_v12 = vpop.permute.xlu1 %3231  ;;  %v10992_v58 = vpop.permute.xlu0 %3236 }
 0x294   :  { %v10977_v0 = vadd.f32 %v10559_v31, %v3267_v3  ;;  %8348 = vmatmul.mubr.msk.bf16.gmra.mrb[108].mxu1 %vm172_vm0, %v10819_v45  ;;  %11816 = vst [vmem:[#allocation66_spill] sm:$0xff] %v10986_v12  ;;  %v5749_v31 = vld [vmem:[#allocation2 + $0x97] sm:$0xff]  ;;  %11817 = vst [vmem:[#allocation67_spill] sm:$0xff] %v10992_v58 }
 0x295   :  { %v10982_v55 = vadd.f32 %v3265_v34, %v10563_v25  ;;  %8351 = vmatprep.mubr.msk.bf16.mxu1 %vm172_vm0, %v10839_v8  ;;  %v5751_v25 = vld [vmem:[#allocation2 + $0xa7] sm:$0xff] }
 0x296   :  { %8446 = vmatmul.mubr.msk.bf16.gmra.mrb[72].mxu0 %vm172_vm0, %v5772_v53 }
 0x297   :  { %v8103_v44 = vpop.f32.mrb[36].mxu1  ;;  %8449 = vmatprep.mubr.msk.bf16.mxu0 %vm172_vm0, %v5773_v61  ;;  %v11002_v59 = vpop.permute.xlu1 %3241 }
 0x298   :  { %v3270_v63 = vmul.f32 %v8103_v44, %v10871_v27  ;;  %v2373_v1 = vpop.f32.mrb[37].mxu1  ;;  %v5774_v27 = vpack.c.bf16 %v5750_v38, %v5749_v31  ;;  %11818 = vst [vmem:[#allocation68_spill] sm:$0xff] %v11002_v59 }
 0x299   :  { %v3268_v36 = vmul.f32 %v10856_v54, %v2373_v1  ;;  %v8104_v6 = vpop.f32.mrb[38].mxu1  ;;  %v5775_v54 = vpack.c.bf16 %v5752_v17, %v5751_v25  ;;  %v5756_v17 = vld [vmem:[#allocation2 + $0xcf] sm:$0xff] }
 0x29a   :  { %v10995_v3 = vadd.f32 %v10571_v20, %v3270_v63  ;;  %v3271_v53 = vmul.f32 %v8104_v6, %v10875_v11  ;;  %v2376_v34 = vpop.f32.mrb[39].mxu1  ;;  %v11015_v63 = vpop.permute.xlu0 %3246 }
 0x29b   :  { %v10999_v44 = vadd.f32 %v3268_v36, %v10573_v49  ;;  %v3269_v61 = vmul.f32 %v10865_v24, %v2376_v34  ;;  %11819 = vst [vmem:[#allocation69_spill] sm:$0xff] %v11015_v63  ;;  %v5754_v36 = vld [vmem:[#allocation2 + $0xbf] sm:$0xff] }
 0x29c   :  { %v11005_v1 = vadd.f32 %v10575_v10, %v3271_v53  ;;  %8352 = vmatmul.mubr.msk.bf16.gmra.mrb[112].mxu1 %vm172_vm0, %v10841_v14  ;;  %v5753_v10 = vld [vmem:[#allocation2 + $0xb7] sm:$0xff]  ;;  %v11020_v53 = vpop.permute.xlu1 %3251 }
 0x29d   :  { %v11010_v20 = vadd.f32 %v3269_v61, %v10579_v16  ;;  %8355 = vmatprep.mubr.msk.bf16.mxu1 %vm172_vm0, %v10861_v62  ;;  %v5755_v16 = vld [vmem:[#allocation2 + $0xc7] sm:$0xff]  ;;  %11820 = vst [vmem:[#allocation70_spill] sm:$0xff] %v11020_v53 }
 0x29e   :  { %8450 = vmatmul.mubr.msk.bf16.gmra.mrb[76].mxu0 %vm172_vm0, %v5774_v27 }
 0x29f   :  { %v8107_v49 = vpop.f32.mrb[40].mxu1  ;;  %8453 = vmatprep.mubr.msk.bf16.mxu0 %vm172_vm0, %v5775_v54 }
 0x2a0   :  { %v3274_v31 = vmul.f32 %v8107_v49, %v10899_v48  ;;  %v2389_v38 = vpop.f32.mrb[41].mxu1  ;;  %v5776_v48 = vpack.c.bf16 %v5754_v36, %v5753_v10  ;;  %v5757_v36 = vld [vmem:[#allocation2 + $0xd7] sm:$0xff] }
 0x2a1   :  { %v3272_v6 = vmul.f32 %v10883_v21, %v2389_v38  ;;  %v8108_v25 = vpop.f32.mrb[42].mxu1  ;;  %v5777_v38 = vpack.c.bf16 %v5756_v17, %v5755_v16  ;;  %v5759_v16 = vld [vmem:[#allocation2 + $0xe7] sm:$0xff]  ;;  %v5760_v17 = vld [vmem:[#allocation2 + $0xef] sm:$0xff] }
 0x2a2   :  { %v11023_v34 = vadd.f32 %v10587_v23, %v3274_v31  ;;  %v3275_v27 = vmul.f32 %v8108_v25, %v10901_v4  ;;  %v2392_v61 = vpop.f32.mrb[43].mxu1  ;;  %v11040_v23 = vpop.permute.xlu0 %3256  ;;  %v11832_v4 = vld [vmem:[#allocation28_spill] sm:$0xff] }
 0x2a3   :  { %v11027_v49 = vadd.f32 %v3272_v6, %v10589_v40  ;;  %v3273_v54 = vmul.f32 %v10889_v60, %v2392_v61  ;;  %11821 = vst [vmem:[#allocation71_spill] sm:$0xff] %v11040_v23  ;;  %v11043_v31 = vpop.permute.xlu1 %3261  ;;  %v5758_v6 = vld [vmem:[#allocation2 + $0xdf] sm:$0xff] }
 0x2a4   :  { %v11031_v24 = vadd.f32 %v10591_v43, %v3275_v27  ;;  %8356 = vmatmul.mubr.msk.bf16.gmra.mrb[116].mxu1 %vm172_vm0, %v10863_v46  ;;  %11822 = vst [vmem:[#allocation72_spill] sm:$0xff] %v11043_v31 }
 0x2a5   :  { %v11036_v21 = vadd.f32 %v3273_v54, %v10595_v35  ;;  %8359 = vmatprep.mubr.msk.bf16.mxu1 %vm172_vm0, %v10879_v2 }
 0x2a6   :  { %8454 = vmatmul.mubr.msk.bf16.gmra.mrb[80].mxu0 %vm172_vm0, %v5776_v48 }
 0x2a7   :  { %v8111_v40 = vpop.f32.mrb[44].mxu1  ;;  %8457 = vmatprep.mubr.msk.bf16.mxu0 %vm172_vm0, %v5777_v38  ;;  %v11056_v38 = vpop.permute.xlu0 %3330 }
 0x2a8   :  { %v3278_v43 = vmul.f32 %v8111_v40, %v10917_v39  ;;  %v2405_v10 = vpop.f32.mrb[45].mxu1  ;;  %v5778_v39 = vpack.c.bf16 %v5758_v6, %v5757_v36  ;;  %11823 = vst [vmem:[#allocation73_spill] sm:$0xff] %v11056_v38 }
 0x2a9   :  { %v3276_v35 = vmul.f32 %v10909_v33, %v2405_v10  ;;  %v8112_v25 = vpop.f32.mrb[46].mxu1  ;;  %v5779_v10 = vpack.c.bf16 %v5760_v17, %v5759_v16  ;;  %v5764_v17 = vld [vmem:[#allocation2 + $0x10f] sm:$0xff] }
 0x2aa   :  { %v11049_v27 = vadd.f32 %v10606_v57, %v3278_v43  ;;  %v3279_v48 = vmul.f32 %v8112_v25, %v10921_v15  ;;  %v2408_v61 = vpop.f32.mrb[47].mxu1 }
 0x2ab   :  { %v11053_v54 = vadd.f32 %v3276_v35, %v10608_v28  ;;  %v3277_v40 = vmul.f32 %v10913_v50, %v2408_v61  ;;  %v11068_v28 = vpop.permute.xlu1 %3335  ;;  %v5762_v35 = vld [vmem:[#allocation2 + $0xff] sm:$0xff] }
 0x2ac   :  { %v11059_v60 = vadd.f32 %v10610_v18, %v3279_v48  ;;  %8360 = vmatmul.mubr.msk.bf16.gmra.mrb[120].mxu1 %vm172_vm0, %v10881_v51  ;;  %v5761_v18 = vld [vmem:[#allocation2 + $0xf7] sm:$0xff]  ;;  %v11074_v48 = vpop.permute.xlu0 %3340 }
 0x2ad   :  { %v11064_v57 = vadd.f32 %v3277_v40, %v10613_v42  ;;  %8363 = vmatprep.mubr.msk.bf16.mxu1 %vm172_vm0, %v10895_v37  ;;  %v5763_v42 = vld [vmem:[#allocation2 + $0x107] sm:$0xff]  ;;  %11824 = vst [vmem:[#allocation74_spill] sm:$0xff] %v11074_v48 }
 0x2ae   :  { %8458 = vmatmul.mubr.msk.bf16.gmra.mrb[84].mxu0 %vm172_vm0, %v5778_v39 }
 0x2af   :  { %v8115_v43 = vpop.f32.mrb[48].mxu1  ;;  %8461 = vmatprep.mubr.msk.bf16.mxu0 %vm172_vm0, %v5779_v10  ;;  %v11084_v50 = vpop.permute.xlu1 %3345 }
 0x2b0   :  { %v3282_v36 = vmul.f32 %v8115_v43, %v10938_v26  ;;  %v2421_v6 = vpop.f32.mrb[49].mxu1  ;;  %v5780_v26 = vpack.c.bf16 %v5762_v35, %v5761_v18 }
 0x2b1   :  { %v3280_v25 = vmul.f32 %v10927_v22, %v2421_v6  ;;  %v8116_v16 = vpop.f32.mrb[50].mxu1  ;;  %v5781_v22 = vpack.c.bf16 %v5764_v17, %v5763_v42 }
 0x2b2   :  { %v11077_v61 = vadd.f32 %v10624_v56, %v3282_v36  ;;  %v3283_v39 = vmul.f32 %v8116_v16, %v10940_v52  ;;  %v2424_v40 = vpop.f32.mrb[51].mxu1  ;;  %v11826_v56 = vld [vmem:[#allocation23_spill] sm:$0xff] }
 0x2b3   :  { %v11081_v43 = vadd.f32 %v3280_v25, %v10628_v19  ;;  %v3281_v10 = vmul.f32 %v10933_v47, %v2424_v40  ;;  %v11828_v16 = vld [vmem:[#allocation51_spill] sm:$0xff]  ;;  %v11097_v25 = vpop.permute.xlu0 %3350  ;;  %v11829_v40 = vld [vmem:[#allocation32_spill] sm:$0xff]  ;;  %v11102_v47 = vpop.permute.xlu1 %3355 }
 0x2b4   :  { %v11087_v6 = vadd.f32 %v10632_v32, %v3283_v39  ;;  %8364 = vmatmul.mubr.msk.bf16.gmra.mrb[124].mxu1 %vm172_vm0, %v10897_v9  ;;  %v5765_v32 = vld [vmem:[#allocation2 + $0x117] sm:$0xff]  ;;  %v5766_v39 = vld [vmem:[#allocation2 + $0x11f] sm:$0xff] }
 0x2b5   :  { %v11092_v36 = vadd.f32 %v3281_v10, %v11826_v56  ;;  %8471 = vmatprep.mubr.msk.bf16.mxu1 %vm172_vm0, %v11828_v16  ;;  %v6321_v10 = vld [vmem:[#allocation2 + $0x29] sm:$0xff]  ;;  %v6322_v56 = vld [vmem:[#allocation2 + $0x31] sm:$0xff]  ;;  %v5782_v11 = vpack.c.bf16 %v5766_v39, %v5765_v32  ;;  %v6323_v32 = vld [vmem:[#allocation2 + $0x39] sm:$0xff] }
 0x2b6   :  { %11825 = vst [vmem:[#allocation75_spill] sm:$0xff] %v11087_v6  ;;  %8462 = vmatmul.mubr.msk.bf16.gmra.mrb[88].mxu0 %vm172_vm0, %v5780_v26  ;;  %v11830_v16 = vld [vmem:[#allocation25_spill] sm:$0xff]  ;;  %v11831_v26 = vld [vmem:[#allocation64_spill] sm:$0xff]  ;;  %v6324_v39 = vld [vmem:[#allocation2 + $0x41] sm:$0xff] }
 0x2b7   :  { %11827 = vst [vmem:[#allocation23_spill] sm:$0xff] %v11092_v36  ;;  %v8119_v19 = vpop.f32.mrb[52].mxu1  ;;  %8465 = vmatprep.mubr.msk.bf16.mxu0 %vm172_vm0, %v5781_v22  ;;  %v11836_v36 = vld [vmem:[#allocation27_spill] sm:$0xff] }
 0x2b8   :  { %v3286_v18 = vmul.f32 %v8119_v19, %v10958_v41  ;;  %v2437_v35 = vpop.f32.mrb[53].mxu1  ;;  %v11833_v41 = vld [vmem:[#allocation36_spill] sm:$0xff] }
 0x2b9   :  { %v3284_v42 = vmul.f32 %v11829_v40, %v2437_v35  ;;  %v8120_v17 = vpop.f32.mrb[54].mxu1  ;;  %v11835_v35 = vld [vmem:[#allocation52_spill] sm:$0xff]  ;;  %v6353_v40 = vpack.c.bf16 %v6322_v56, %v6321_v10 }
 0x2ba   :  { %v11105_v52 = vadd.f32 %v11830_v16, %v3286_v18  ;;  %v3287_v15 = vmul.f32 %v8120_v17, %v11831_v26  ;;  %v2440_v33 = vpop.f32.mrb[55].mxu1  ;;  %v11838_v18 = vld [vmem:[#allocation56_spill] sm:$0xff]  ;;  %v11122_v17 = vpop.permute.xlu0 %3360  ;;  %v11839_v16 = vld [vmem:[#allocation33_spill] sm:$0xff]  ;;  %v11841_v26 = vld [vmem:[#allocation39_spill] sm:$0xff] }
 0x2bb   :  { %v11109_v19 = vadd.f32 %v3284_v42, %v11832_v4  ;;  %v3285_v22 = vmul.f32 %v11833_v41, %v2440_v33  ;;  %v11125_v33 = vpop.permute.xlu1 %3365  ;;  %v6325_v10 = vld [vmem:[#allocation2 + $0x49] sm:$0xff]  ;;  %v6326_v56 = vld [vmem:[#allocation2 + $0x51] sm:$0xff] }
 0x2bc   :  { %v11113_v13 = vadd.f32 %v11834_v30, %v3287_v15  ;;  %8472 = vmatmul.mubr.msk.bf16.vlgmr.msra.gmra.mrb[96].mxu1 %vm172_vm0, %v11835_v35 }
 0x2bd   :  { %v11118_v6 = vadd.f32 %v3285_v22, %v11836_v36  ;;  %8475 = vmatprep.mubr.msk.bf16.mxu1 %vm172_vm0, %v11838_v18  ;;  %v11840_v18 = vld [vmem:[#allocation34_spill] sm:$0xff] }
 0x2be   :  { %8466 = vmatmul.mubr.msk.bf16.gmra.mrb[92].mxu0 %vm172_vm0, %v5782_v11 }
 0x2bf   :  { %11837 = vst [vmem:[#allocation51_spill] sm:$0xff] %v11118_v6  ;;  %v8123_v4 = vpop.f32.mrb[56].mxu1  ;;  %8505 = vmatprep.mubr.msk.bf16.mxu0 %vm172_vm0, %v6353_v40  ;;  %v11138_v40 = vpop.permute.xlu0 %3370 }
 0x2c0   :  { %v3290_v15 = vmul.f32 %v8123_v4, %v10992_v58  ;;  %v2453_v30 = vpop.f32.mrb[57].mxu1  ;;  %v6354_v58 = vpack.c.bf16 %v6324_v39, %v6323_v32 }
 0x2c1   :  { %v3288_v36 = vmul.f32 %v10974_v29, %v2453_v30  ;;  %v8124_v42 = vpop.f32.mrb[58].mxu1  ;;  %v11843_v30 = vld [vmem:[#allocation57_spill] sm:$0xff]  ;;  %v6355_v29 = vpack.c.bf16 %v6326_v56, %v6325_v10 }
 0x2c2   :  { %v11131_v22 = vadd.f32 %v11839_v16, %v3290_v15  ;;  %v3291_v11 = vmul.f32 %v8124_v42, %v11002_v59  ;;  %v2456_v35 = vpop.f32.mrb[59].mxu1  ;;  %v11844_v15 = vld [vmem:[#allocation40_spill] sm:$0xff]  ;;  %v11846_v42 = vld [vmem:[#allocation61_spill] sm:$0xff] }
 0x2c3   :  { %v11135_v41 = vadd.f32 %v3288_v36, %v11840_v18  ;;  %v3289_v4 = vmul.f32 %v10986_v12, %v2456_v35  ;;  %v11150_v36 = vpop.permute.xlu1 %3375  ;;  %v6329_v18 = vld [vmem:[#allocation2 + $0x69] sm:$0xff] }
 0x2c4   :  { %v11141_v6 = vadd.f32 %v11841_v26, %v3291_v11  ;;  %8476 = vmatmul.mubr.msk.bf16.gmra.mrb[100].mxu1 %vm172_vm0, %v11843_v30  ;;  %v6327_v26 = vld [vmem:[#allocation2 + $0x59] sm:$0xff]  ;;  %v6328_v11 = vld [vmem:[#allocation2 + $0x61] sm:$0xff]  ;;  %v11156_v30 = vpop.permute.xlu0 %3380  ;;  %v11848_v59 = vld [vmem:[#allocation44_spill] sm:$0xff] }
 0x2c5   :  { %v11146_v16 = vadd.f32 %v3289_v4, %v11844_v15  ;;  %8479 = vmatprep.mubr.msk.bf16.mxu1 %vm172_vm0, %v11846_v42  ;;  %v6330_v4 = vld [vmem:[#allocation2 + $0x71] sm:$0xff]  ;;  %v11847_v15 = vld [vmem:[#allocation43_spill] sm:$0xff] }
 0x2c6   :  { %11842 = vst [vmem:[#allocation25_spill] sm:$0xff] %v11141_v6  ;;  %8506 = vmatmul.mubr.msk.bf16.vlgmr.msra.gmra.mrb[96].mxu0 %vm172_vm0, %v6354_v58  ;;  %v6357_v6 = vpack.c.bf16 %v6330_v4, %v6329_v18  ;;  %v6333_v4 = vld [vmem:[#allocation2 + $0x89] sm:$0xff] }
 0x2c7   :  { %11845 = vst [vmem:[#allocation28_spill] sm:$0xff] %v11146_v16  ;;  %v8127_v32 = vpop.f32.mrb[60].mxu1  ;;  %8509 = vmatprep.mubr.msk.bf16.mxu0 %vm172_vm0, %v6355_v29  ;;  %v11166_v16 = vpop.permute.xlu1 %3385 }
 0x2c8   :  { %v3294_v39 = vmul.f32 %v8127_v32, %v11040_v23  ;;  %v2469_v35 = vpop.f32.mrb[61].mxu1  ;;  %v6356_v23 = vpack.c.bf16 %v6328_v11, %v6327_v26 }
 0x2c9   :  { %v3292_v10 = vmul.f32 %v11015_v63, %v2469_v35  ;;  %v8128_v56 = vpop.f32.mrb[62].mxu1  ;;  %v11849_v35 = vld [vmem:[#allocation47_spill] sm:$0xff] }
 0x2ca   :  { %v11159_v42 = vadd.f32 %v11847_v15, %v3294_v39  ;;  %v3295_v58 = vmul.f32 %v8128_v56, %v11043_v31  ;;  %v2472_v12 = vpop.f32.mrb[63].mxu1  ;;  %v11850_v39 = vld [vmem:[#allocation48_spill] sm:$0xff]  ;;  %v6332_v56 = vld [vmem:[#allocation2 + $0x81] sm:$0xff] }
 0x2cb   :  { %v11163_v32 = vadd.f32 %v3292_v10, %v11848_v59  ;;  %v3293_v29 = vmul.f32 %v11020_v53, %v2472_v12  ;;  %v11179_v12 = vpop.permute.xlu0 %3390  ;;  %v6331_v10 = vld [vmem:[#allocation2 + $0x79] sm:$0xff] }
 0x2cc   :  { %v11169_v63 = vadd.f32 %v11849_v35, %v3295_v58  ;;  %8480 = vmatmul.mubr.msk.bf16.gmra.mrb[104].mxu1 %vm172_vm0, %v10819_v45  ;;  %v6334_v58 = vld [vmem:[#allocation2 + $0x91] sm:$0xff]  ;;  %v6358_v53 = vpack.c.bf16 %v6332_v56, %v6331_v10  ;;  %v6336_v56 = vld [vmem:[#allocation2 + $0xa1] sm:$0xff] }
 0x2cd   :  { %v11174_v15 = vadd.f32 %v3293_v29, %v11850_v39  ;;  %8483 = vmatprep.mubr.msk.bf16.mxu1 %vm172_vm0, %v10839_v8  ;;  %v11184_v29 = vpop.permute.xlu1 %3395 }
 0x2ce   :  { %8510 = vmatmul.mubr.msk.bf16.gmra.mrb[100].mxu0 %vm172_vm0, %v6356_v23 }
 0x2cf   :  { %v8167_v59 = vpop.f32.mrb[64].mxu1  ;;  %8513 = vmatprep.mubr.msk.bf16.mxu0 %vm172_vm0, %v6357_v6 }
 0x2d0   :  { %v3490_v26 = vmul.f32 %v8167_v59, %v11074_v48  ;;  %v2945_v11 = vpop.f32.mrb[65].mxu1 }
 0x2d1   :  { %v3488_v45 = vmul.f32 %v11056_v38, %v2945_v11  ;;  %v8168_v18 = vpop.f32.mrb[66].mxu1  ;;  %v6359_v11 = vpack.c.bf16 %v6334_v58, %v6333_v4  ;;  %v11201_v10 = vpop.permute.xlu1 %3405 }
 0x2d2   :  { %v3522_v8 = vadd.f32 %v3490_v26, %v10967_v7  ;;  %v3491_v23 = vmul.f32 %v8168_v18, %v11084_v50  ;;  %v2948_v35 = vpop.f32.mrb[67].mxu1  ;;  %v11196_v7 = vpop.permute.xlu0 %3400 }
 0x2d3   :  { %v3520_v39 = vadd.f32 %v3488_v45, %v10971_v5  ;;  %v3489_v59 = vmul.f32 %v11068_v28, %v2948_v35  ;;  %v6338_v45 = vld [vmem:[#allocation2 + $0xb1] sm:$0xff] }
 0x2d4   :  { %v7423_v6 = vpack.c.bf16 %v3522_v8, %v3522_v8  ;;  %v3523_v31 = vadd.f32 %v3491_v23, %v10977_v0  ;;  %8484 = vmatmul.mubr.msk.bf16.gmra.mrb[108].mxu1 %vm172_vm0, %v10841_v14 }
 0x2d5   :  { %v7421_v38 = vpack.c.bf16 %v3520_v39, %v3520_v39  ;;  %v3521_v48 = vadd.f32 %v3489_v59, %v10982_v55  ;;  %8487 = vmatprep.mubr.msk.bf16.mxu1 %vm172_vm0, %v10861_v62  ;;  %v6335_v62 = vld [vmem:[#allocation2 + $0x99] sm:$0xff] }
 0x2d6   :  { %3682 = vst.msk [vmem:[#allocation14 + $0x8] sm:$0xf] %vm676_vm2, %v7423_v6  ;;  %v7424_v5 = vpack.c.bf16 %v3523_v31, %v3523_v31  ;;  %8514 = vmatmul.mubr.msk.bf16.gmra.mrb[104].mxu0 %vm172_vm0, %v6358_v53  ;;  %v6360_v23 = vpack.c.bf16 %v6336_v56, %v6335_v62  ;;  %v11212_v35 = vpop.permute.xlu0 %3410  ;;  %v6341_v62 = vld [vmem:[#allocation2 + $0xc9] sm:$0xff]  ;;  %v6342_v56 = vld [vmem:[#allocation2 + $0xd1] sm:$0xff] }
 0x2d7   :  { %3680 = vst.msk [vmem:[#allocation14] sm:$0xf] %vm676_vm2, %v7421_v38  ;;  %v7422_v26 = vpack.c.bf16 %v3521_v48, %v3521_v48  ;;  %v8171_v0 = vpop.f32.mrb[68].mxu1  ;;  %8517 = vmatprep.mubr.msk.bf16.mxu0 %vm172_vm0, %v6359_v11  ;;  %v6337_v48 = vld [vmem:[#allocation2 + $0xa9] sm:$0xff] }
 0x2d8   :  { %3683 = vst.msk [vmem:[#allocation14 + $0xc] sm:$0xf] %vm676_vm2, %v7424_v5  ;;  %v3494_v14 = vmul.f32 %v8171_v0, %v11122_v17  ;;  %v2961_v55 = vpop.f32.mrb[69].mxu1  ;;  %v6361_v6 = vpack.c.bf16 %v6338_v45, %v6337_v48  ;;  %v11220_v5 = vpop.permute.xlu1 %3415 }
 0x2d9   :  { %3681 = vst.msk [vmem:[#allocation14 + $0x4] sm:$0xf] %vm676_vm2, %v7422_v26  ;;  %v3492_v31 = vmul.f32 %v11097_v25, %v2961_v55  ;;  %v8172_v38 = vpop.f32.mrb[70].mxu1 }
 0x2da   :  { %v3526_v53 = vadd.f32 %v3494_v14, %v10995_v3  ;;  %v3495_v18 = vmul.f32 %v8172_v38, %v11125_v33  ;;  %v2964_v4 = vpop.f32.mrb[71].mxu1 }
 0x2db   :  { %v3524_v58 = vadd.f32 %v3492_v31, %v10999_v44  ;;  %v3493_v8 = vmul.f32 %v11102_v47, %v2964_v4  ;;  %v11230_v31 = vpop.permute.xlu0 %3420 }
 0x2dc   :  { %v7427_v39 = vpack.c.bf16 %v3526_v53, %v3526_v53  ;;  %v3527_v59 = vadd.f32 %v3495_v18, %v11005_v1  ;;  %8488 = vmatmul.mubr.msk.bf16.gmra.mrb[112].mxu1 %vm172_vm0, %v10863_v46 }
 0x2dd   :  { %v7425_v11 = vpack.c.bf16 %v3524_v58, %v3524_v58  ;;  %v3525_v3 = vadd.f32 %v3493_v8, %v11010_v20  ;;  %8491 = vmatprep.mubr.msk.bf16.mxu1 %vm172_vm0, %v10879_v2  ;;  %v6339_v20 = vld [vmem:[#allocation2 + $0xb9] sm:$0xff]  ;;  %v6340_v2 = vld [vmem:[#allocation2 + $0xc1] sm:$0xff]  ;;  %v11236_v58 = vpop.permute.xlu1 %3425 }
 0x2de   :  { %3686 = vst.msk [vmem:[#allocation14 + $0x18] sm:$0xf] %vm676_vm2, %v7427_v39  ;;  %v7428_v44 = vpack.c.bf16 %v3527_v59, %v3527_v59  ;;  %8518 = vmatmul.mubr.msk.bf16.gmra.mrb[108].mxu0 %vm172_vm0, %v6360_v23  ;;  %v6362_v4 = vpack.c.bf16 %v6340_v2, %v6339_v20  ;;  %v6363_v39 = vpack.c.bf16 %v6342_v56, %v6341_v62  ;;  %v6345_v20 = vld [vmem:[#allocation2 + $0xe9] sm:$0xff]  ;;  %v6346_v2 = vld [vmem:[#allocation2 + $0xf1] sm:$0xff] }
 0x2df   :  { %3684 = vst.msk [vmem:[#allocation14 + $0x10] sm:$0xf] %vm676_vm2, %v7425_v11  ;;  %v7426_v26 = vpack.c.bf16 %v3525_v3, %v3525_v3  ;;  %v8175_v1 = vpop.f32.mrb[72].mxu1  ;;  %8521 = vmatprep.mubr.msk.bf16.mxu0 %vm172_vm0, %v6361_v6  ;;  %v6056_v6 = vld [vmem:[#allocation2 + $0x108] sm:$0xff]  ;;  %v6057_v11 = vld [vmem:[#allocation2 + $0x110] sm:$0xff] }
 0x2e0   :  { %3687 = vst.msk [vmem:[#allocation14 + $0x1c] sm:$0xf] %vm676_vm2, %v7428_v44  ;;  %v3498_v46 = vmul.f32 %v8175_v1, %v11156_v30  ;;  %v2977_v0 = vpop.f32.mrb[73].mxu1  ;;  %v11247_v44 = vpop.permute.xlu0 %3430 }
 0x2e1   :  { %3685 = vst.msk [vmem:[#allocation14 + $0x14] sm:$0xf] %vm676_vm2, %v7426_v26  ;;  %v3496_v14 = vmul.f32 %v11138_v40, %v2977_v0  ;;  %v8176_v55 = vpop.f32.mrb[74].mxu1  ;;  %11851 = vst [vmem:[#allocation38_spill] sm:$0xff] %v11247_v44  ;;  %v6344_v26 = vld [vmem:[#allocation2 + $0xe1] sm:$0xff]  ;;  %v6074_v0 = vpack.c.bf16 %v6057_v11, %v6056_v6  ;;  %v6347_v11 = vld [vmem:[#allocation2 + $0xf9] sm:$0xff] }
 0x2e2   :  { %v3530_v38 = vadd.f32 %v3498_v46, %v11023_v34  ;;  %v3499_v48 = vmul.f32 %v8176_v55, %v11166_v16  ;;  %v2980_v45 = vpop.f32.mrb[75].mxu1 }
 0x2e3   :  { %v3528_v53 = vadd.f32 %v3496_v14, %v11027_v49  ;;  %v3497_v18 = vmul.f32 %v11150_v36, %v2980_v45  ;;  %v11254_v14 = vpop.permute.xlu1 %3435 }
 0x2e4   :  { %v7431_v8 = vpack.c.bf16 %v3530_v38, %v3530_v38  ;;  %v3531_v23 = vadd.f32 %v3499_v48, %v11031_v24  ;;  %8492 = vmatmul.mubr.msk.bf16.gmra.mrb[116].mxu1 %vm172_vm0, %v10881_v51  ;;  %11852 = vst [vmem:[#allocation52_spill] sm:$0xff] %v11254_v14 }
 0x2e5   :  { %v7429_v59 = vpack.c.bf16 %v3528_v53, %v3528_v53  ;;  %v3529_v34 = vadd.f32 %v3497_v18, %v11036_v21  ;;  %8495 = vmatprep.mubr.msk.bf16.mxu1 %vm172_vm0, %v10895_v37  ;;  %v6343_v37 = vld [vmem:[#allocation2 + $0xd9] sm:$0xff] }
 0x2e6   :  { %3690 = vst.msk [vmem:[#allocation14 + $0x28] sm:$0xf] %vm676_vm2, %v7431_v8  ;;  %v7432_v49 = vpack.c.bf16 %v3531_v23, %v3531_v23  ;;  %8522 = vmatmul.mubr.msk.bf16.gmra.mrb[112].mxu0 %vm172_vm0, %v6362_v4  ;;  %v6364_v45 = vpack.c.bf16 %v6344_v26, %v6343_v37  ;;  %v6365_v4 = vpack.c.bf16 %v6346_v2, %v6345_v20  ;;  %v6350_v37 = vld [vmem:[#allocation2 + $0x111] sm:$0xff] }
 0x2e7   :  { %3688 = vst.msk [vmem:[#allocation14 + $0x20] sm:$0xf] %vm676_vm2, %v7429_v59  ;;  %v7430_v3 = vpack.c.bf16 %v3529_v34, %v3529_v34  ;;  %v8179_v24 = vpop.f32.mrb[76].mxu1  ;;  %8525 = vmatprep.mubr.msk.bf16.mxu0 %vm172_vm0, %v6363_v39  ;;  %v6059_v39 = vld [vmem:[#allocation2 + $0x120] sm:$0xff]  ;;  %v11265_v59 = vpop.permute.xlu0 %3440 }
 0x2e8   :  { %3691 = vst.msk [vmem:[#allocation14 + $0x2c] sm:$0xf] %vm676_vm2, %v7432_v49  ;;  %v3502_v51 = vmul.f32 %v8179_v24, %v11196_v7  ;;  %v2993_v21 = vpop.f32.mrb[77].mxu1  ;;  %11853 = vst [vmem:[#allocation27_spill] sm:$0xff] %v11265_v59 }
 0x2e9   :  { %3689 = vst.msk [vmem:[#allocation14 + $0x24] sm:$0xf] %vm676_vm2, %v7430_v3  ;;  %v3500_v1 = vmul.f32 %v11179_v12, %v2993_v21  ;;  %v8180_v46 = vpop.f32.mrb[78].mxu1  ;;  %v6348_v3 = vld [vmem:[#allocation2 + $0x101] sm:$0xff]  ;;  %v6349_v21 = vld [vmem:[#allocation2 + $0x109] sm:$0xff] }
 0x2ea   :  { %v3534_v55 = vadd.f32 %v3502_v51, %v11049_v27  ;;  %v3503_v62 = vmul.f32 %v8180_v46, %v11201_v10  ;;  %v2996_v56 = vpop.f32.mrb[79].mxu1  ;;  %v6058_v27 = vld [vmem:[#allocation2 + $0x118] sm:$0xff]  ;;  %v6366_v2 = vpack.c.bf16 %v6348_v3, %v6347_v11 }
 0x2eb   :  { %v3532_v38 = vadd.f32 %v3500_v1, %v11053_v54  ;;  %v3501_v48 = vmul.f32 %v11184_v29, %v2996_v56  ;;  %v6075_v6 = vpack.c.bf16 %v6059_v39, %v6058_v27  ;;  %v11856_v56 = vld [vmem:[#allocation75_spill] sm:$0xff]  ;;  %v6351_v39 = vld [vmem:[#allocation2 + $0x119] sm:$0xff] }
 0x2ec   :  { %v7435_v53 = vpack.c.bf16 %v3534_v55, %v3534_v55  ;;  %v3535_v18 = vadd.f32 %v3503_v62, %v11059_v60  ;;  %8496 = vmatmul.mubr.msk.bf16.gmra.mrb[120].mxu1 %vm172_vm0, %v10897_v9  ;;  %v11270_v9 = vpop.permute.xlu1 %3445  ;;  %v11281_v55 = vpop.permute.xlu0 %3450 }
 0x2ed   :  { %v7433_v8 = vpack.c.bf16 %v3532_v38, %v3532_v38  ;;  %v3533_v23 = vadd.f32 %v3501_v48, %v11064_v57  ;;  %8499 = vmatprep.mubr.msk.bf16.mxu1 %vm172_vm0, %v6074_v0  ;;  %11854 = vst [vmem:[#allocation56_spill] sm:$0xff] %v11270_v9  ;;  %11855 = vst [vmem:[#allocation33_spill] sm:$0xff] %v11281_v55  ;;  %v6367_v48 = vpack.c.bf16 %v6350_v37, %v6349_v21 }
 0x2ee   :  { %3694 = vst.msk [vmem:[#allocation14 + $0x38] sm:$0xf] %vm676_vm2, %v7435_v53  ;;  %v7436_v54 = vpack.c.bf16 %v3535_v18, %v3535_v18  ;;  %8526 = vmatmul.mubr.msk.bf16.gmra.mrb[116].mxu0 %vm172_vm0, %v6364_v45  ;;  %v11857_v53 = vld [vmem:[#allocation23_spill] sm:$0xff] }
 0x2ef   :  { %3692 = vst.msk [vmem:[#allocation14 + $0x30] sm:$0xf] %vm676_vm2, %v7433_v8  ;;  %v7434_v34 = vpack.c.bf16 %v3533_v23, %v3533_v23  ;;  %v8183_v60 = vpop.f32.mrb[80].mxu1  ;;  %8529 = vmatprep.mubr.msk.bf16.mxu0 %vm172_vm0, %v6365_v4 }
 0x2f0   :  { %3695 = vst.msk [vmem:[#allocation14 + $0x3c] sm:$0xf] %vm676_vm2, %v7436_v54  ;;  %v3506_v57 = vmul.f32 %v8183_v60, %v11230_v31  ;;  %v3009_v49 = vpop.f32.mrb[81].mxu1  ;;  %v6352_v54 = vld [vmem:[#allocation2 + $0x121] sm:$0xff] }
 0x2f1   :  { %3693 = vst.msk [vmem:[#allocation14 + $0x34] sm:$0xf] %vm676_vm2, %v7434_v34  ;;  %v3504_v24 = vmul.f32 %v11212_v35, %v3009_v49  ;;  %v8184_v51 = vpop.f32.mrb[82].mxu1 }
 0x2f2   :  { %v3538_v26 = vadd.f32 %v3506_v57, %v11077_v61  ;;  %v3507_v1 = vmul.f32 %v8184_v51, %v11236_v58  ;;  %v3012_v46 = vpop.f32.mrb[83].mxu1  ;;  %v11286_v61 = vpop.permute.xlu1 %3455  ;;  %v6368_v51 = vpack.c.bf16 %v6352_v54, %v6351_v39  ;;  %v11865_v54 = vld [vmem:[#allocation28_spill] sm:$0xff] }
 0x2f3   :  { %v3536_v0 = vadd.f32 %v3504_v24, %v11081_v43  ;;  %v3505_v20 = vmul.f32 %v11220_v5, %v3012_v46  ;;  %11858 = vst [vmem:[#allocation34_spill] sm:$0xff] %v11286_v61  ;;  %v11296_v57 = vpop.permute.xlu0 %3460  ;;  %v11861_v46 = vld [vmem:[#allocation51_spill] sm:$0xff] }
 0x2f4   :  { %v7439_v62 = vpack.c.bf16 %v3538_v26, %v3538_v26  ;;  %v3539_v38 = vadd.f32 %v3507_v1, %v11856_v56  ;;  %8500 = vmatmul.mubr.msk.bf16.gmra.mrb[124].mxu1 %vm172_vm0, %v6075_v6  ;;  %11859 = vst [vmem:[#allocation39_spill] sm:$0xff] %v11296_v57 }
 0x2f5   :  { %v7437_v45 = vpack.c.bf16 %v3536_v0, %v3536_v0  ;;  %v3537_v18 = vadd.f32 %v3505_v20, %v11857_v53 }
 0x2f6   :  { %3698 = vst.msk [vmem:[#allocation14 + $0x48] sm:$0xf] %vm676_vm2, %v7439_v62  ;;  %v7440_v4 = vpack.c.bf16 %v3539_v38, %v3539_v38  ;;  %8530 = vmatmul.mubr.msk.bf16.gmra.mrb[120].mxu0 %vm172_vm0, %v6366_v2  ;;  %v11302_v21 = vpop.permute.xlu1 %3465 }
 0x2f7   :  { %3696 = vst.msk [vmem:[#allocation14 + $0x40] sm:$0xf] %vm676_vm2, %v7437_v45  ;;  %v7438_v43 = vpack.c.bf16 %v3537_v18, %v3537_v18  ;;  %v8187_v8 = vpop.f32.mrb[84].mxu1  ;;  %8533 = vmatprep.mubr.msk.bf16.mxu0 %vm172_vm0, %v6367_v48  ;;  %11860 = vst [vmem:[#allocation57_spill] sm:$0xff] %v11302_v21  ;;  %v11309_v2 = vpop.permute.xlu0 %3470 }
 0x2f8   :  { %3699 = vst.msk [vmem:[#allocation14 + $0x4c] sm:$0xf] %vm676_vm2, %v7440_v4  ;;  %v3510_v23 = vmul.f32 %v8187_v8, %v11265_v59  ;;  %v3025_v27 = vpop.f32.mrb[85].mxu1  ;;  %11862 = vst [vmem:[#allocation40_spill] sm:$0xff] %v11309_v2 }
 0x2f9   :  { %3697 = vst.msk [vmem:[#allocation14 + $0x44] sm:$0xf] %vm676_vm2, %v7438_v43  ;;  %v3508_v34 = vmul.f32 %v11247_v44, %v3025_v27  ;;  %v8188_v60 = vpop.f32.mrb[86].mxu1 }
 0x2fa   :  { %v3542_v49 = vadd.f32 %v3510_v23, %v11105_v52  ;;  %v3511_v6 = vmul.f32 %v8188_v60, %v11270_v9  ;;  %v3028_v11 = vpop.f32.mrb[87].mxu1  ;;  %v11315_v48 = vpop.permute.xlu1 %3475  ;;  %v11864_v23 = vld [vmem:[#allocation25_spill] sm:$0xff] }
 0x2fb   :  { %v3540_v3 = vadd.f32 %v3508_v34, %v11109_v19  ;;  %v3509_v24 = vmul.f32 %v11254_v14, %v3028_v11  ;;  %11863 = vst [vmem:[#allocation61_spill] sm:$0xff] %v11315_v48  ;;  %v11323_v60 = vpop.permute.xlu0 %3480 }
 0x2fc   :  { %v7443_v37 = vpack.c.bf16 %v3542_v49, %v3542_v49  ;;  %v3543_v26 = vadd.f32 %v3511_v6, %v11113_v13  ;;  %11866 = vst [vmem:[#allocation43_spill] sm:$0xff] %v11323_v60 }
 0x2fd   :  { %v7441_v1 = vpack.c.bf16 %v3540_v3, %v3540_v3  ;;  %v3541_v0 = vadd.f32 %v3509_v24, %v11861_v46 }
 0x2fe   :  { %3702 = vst.msk [vmem:[#allocation14 + $0x58] sm:$0xf] %vm676_vm2, %v7443_v37  ;;  %v7444_v20 = vpack.c.bf16 %v3543_v26, %v3543_v26  ;;  %8534 = vmatmul.mubr.msk.bf16.gmra.mrb[124].mxu0 %vm172_vm0, %v6368_v51  ;;  %v11327_v11 = vpop.permute.xlu1 %3485 }
 0x2ff   :  { %3700 = vst.msk [vmem:[#allocation14 + $0x50] sm:$0xf] %vm676_vm2, %v7441_v1  ;;  %v7442_v52 = vpack.c.bf16 %v3541_v0, %v3541_v0  ;;  %v8191_v19 = vpop.f32.mrb[88].mxu1  ;;  %11867 = vst [vmem:[#allocation44_spill] sm:$0xff] %v11327_v11 }
 0x300   :  { %3703 = vst.msk [vmem:[#allocation14 + $0x5c] sm:$0xf] %vm676_vm2, %v7444_v20  ;;  %v3514_v62 = vmul.f32 %v8191_v19, %v11296_v57  ;;  %v3041_v56 = vpop.f32.mrb[89].mxu1 }
 0x301   :  { %3701 = vst.msk [vmem:[#allocation14 + $0x54] sm:$0xf] %vm676_vm2, %v7442_v52  ;;  %v3512_v13 = vmul.f32 %v11281_v55, %v3041_v56  ;;  %v8192_v38 = vpop.f32.mrb[90].mxu1 }
 0x302   :  { %v3546_v45 = vadd.f32 %v3514_v62, %v11131_v22  ;;  %v3515_v53 = vmul.f32 %v8192_v38, %v11302_v21  ;;  %v3044_v18 = vpop.f32.mrb[91].mxu1 }
 0x303   :  { %v3544_v4 = vadd.f32 %v3512_v13, %v11135_v41  ;;  %v3513_v43 = vmul.f32 %v11286_v61, %v3044_v18 }
 0x304   :  { %v7447_v8 = vpack.c.bf16 %v3546_v45, %v3546_v45  ;;  %v3547_v27 = vadd.f32 %v3515_v53, %v11864_v23 }
 0x305   :  { %v7445_v39 = vpack.c.bf16 %v3544_v4, %v3544_v4  ;;  %v3545_v34 = vadd.f32 %v3513_v43, %v11865_v54 }
 0x306   :  { %3706 = vst.msk [vmem:[#allocation14 + $0x68] sm:$0xf] %vm676_vm2, %v7447_v8  ;;  %v7448_v49 = vpack.c.bf16 %v3547_v27, %v3547_v27 }
 0x307   :  { %3704 = vst.msk [vmem:[#allocation14 + $0x60] sm:$0xf] %vm676_vm2, %v7445_v39  ;;  %v7446_v22 = vpack.c.bf16 %v3545_v34, %v3545_v34  ;;  %v8195_v6 = vpop.f32.mrb[92].mxu1 }
 0x308   :  { %3707 = vst.msk [vmem:[#allocation14 + $0x6c] sm:$0xf] %vm676_vm2, %v7448_v49  ;;  %v3518_v41 = vmul.f32 %v8195_v6, %v11323_v60  ;;  %v3057_v3 = vpop.f32.mrb[93].mxu1 }
 0x309   :  { %3705 = vst.msk [vmem:[#allocation14 + $0x64] sm:$0xf] %vm676_vm2, %v7446_v22  ;;  %v3516_v24 = vmul.f32 %v11309_v2, %v3057_v3  ;;  %v8196_v51 = vpop.f32.mrb[94].mxu1 }
 0x30a   :  { %v3550_v37 = vadd.f32 %v3518_v41, %v11159_v42  ;;  %v3519_v26 = vmul.f32 %v8196_v51, %v11327_v11  ;;  %v3060_v1 = vpop.f32.mrb[95].mxu1 }
 0x30b   :  { %v3548_v46 = vadd.f32 %v3516_v24, %v11163_v32  ;;  %v3517_v0 = vmul.f32 %v11315_v48, %v3060_v1 }
 0x30c   :  { %v7451_v20 = vpack.c.bf16 %v3550_v37, %v3550_v37  ;;  %v3551_v52 = vadd.f32 %v3519_v26, %v11169_v63 }
 0x30d   :  { %v7449_v19 = vpack.c.bf16 %v3548_v46, %v3548_v46  ;;  %v3549_v62 = vadd.f32 %v3517_v0, %v11174_v15 }
 0x30e   :  { %3710 = vst.msk [vmem:[#allocation14 + $0x78] sm:$0xf] %vm676_vm2, %v7451_v20  ;;  %v7452_v56 = vpack.c.bf16 %v3551_v52, %v3551_v52 }
 0x30f   :  { %3708 = vst.msk [vmem:[#allocation14 + $0x70] sm:$0xf] %vm676_vm2, %v7449_v19  ;;  %v7450_v13 = vpack.c.bf16 %v3549_v62, %v3549_v62 }
 0x310   :  { %3711 = vst.msk [vmem:[#allocation14 + $0x7c] sm:$0xf] %vm676_vm2, %v7452_v56 }
 0x311   :  { %3709 = vst.msk [vmem:[#allocation14 + $0x74] sm:$0xf] %vm676_vm2, %v7450_v13 }
 0x359   :  { %v8439_v42 = vpop.f32.mrb[64].mxu0 }
 0x35a   :  { %v5869_v32 = vpop.f32.mrb[65].mxu0 }
 0x35b   :  { %v8440_v38 = vpop.f32.mrb[66].mxu0 }
 0x35c   :  { %v5872_v45 = vpop.f32.mrb[67].mxu0 }
 0x35d   :  { %9104 = shalt.err (!%p9101_p10)
}
 0x35e   :  { %s9105_s28 = scalar_lea.hbm %s11539_s7, 4096 }
 0x35f   :  { %p9106_p11 = scmp.ne.s32.totalorder %s11539_s7, %s9105_s28  ;;  %p9109_p12 = scmp.lt.u32.totalorder %s9105_s28, %s11539_s7 }
 0x361   :  { %p9111_p13 = pnand %p9109_p12, %p9106_p11 }
 0x363   :  { %9114 = shalt.err (!%p9111_p13)
}
 0x364   :  { %s9162_s10 = smov 64   ;;  %s9163_s11 = smov 4   ;;  %v8443_v63 = vpop.f32.mrb[68].mxu0  ;;  %v11871_v20 = vld [vmem:[#allocation60_spill] sm:$0xff]  ;;  %v11872_v19 = vld [vmem:[#allocation59_spill] sm:$0xff] }
 0x365   :  { %6926 = dma.vmem_to_hbm [thread:$0]  %s6921_s14, 4096, %s11539_s7, [#allocation16], %s9162_s10, %s9162_s10, %s9163_s11   ;;  %v5885_v15 = vpop.f32.mrb[69].mxu0  ;;  %v6616_v52 = vmul.f32 %v8439_v42, %v11871_v20  ;;  %v6614_v62 = vmul.f32 %v5869_v32, %v11872_v19  ;;  %v11873_v13 = vld [vmem:[#allocation24_spill] sm:$0xff]  ;;  %v11874_v60 = vld [vmem:[#allocation55_spill] sm:$0xff]  ;;  %v11879_v32 = vld [vmem:[#allocation30_spill] sm:$0xff] }
 0x366   :  { %v8444_v53 = vpop.f32.mrb[70].mxu0  ;;  %v6617_v48 = vmul.f32 %v8440_v38, %v11873_v13  ;;  %v6615_v61 = vmul.f32 %v5872_v45, %v11874_v60  ;;  %v6620_v20 = vmul.f32 %v8443_v63, %v11879_v32  ;;  %v11880_v38 = vld [vmem:[#allocation26_spill] sm:$0xff]  ;;  %s9164_s7 = smov [#allocation14]  }
 0x367   :  { %v5888_v18 = vpop.f32.mrb[71].mxu0  ;;  %s6908_s15 = sshll.u32 %s9164_s7, 4  ;;  %s6909_s15 = int_to_ptr.vmem [resolvable:$true] %s6908_s15 }
 0x368   :  { %s9115_s2 = scalar_lea.vmem %s6909_s15, 4096  ;;  %p9120_p1 = scmp.lt.s32.totalorder %s6909_s15, %s6909_s15 }
 0x369   :  { %v8447_v4 = vpop.f32.mrb[72].mxu0  ;;  %p9116_p0 = scmp.ne.s32.totalorder %s6909_s15, %s9115_s2  ;;  %p9121_p2 = scmp.lt.s32.totalorder %s9115_s2, %s9115_s2 }
 0x36a   :  { %v5901_v43 = vpop.f32.mrb[73].mxu0 }
 0x36b   :  { %v8448_v8 = vpop.f32.mrb[74].mxu0  ;;  %p9122_p3 = por %p9121_p2, %p9120_p1 }
 0x36c   :  { %v11358_v23 = vpop.f32.mrb[75].mxu0 }
 0x36d   :  { %p9123_p4 = pnand %p9122_p3, %p9116_p0 }
 0x371   :  { %v11360_v27 = vpop.f32.mrb[76].mxu0 }
 0x372   :  { %v11362_v39 = vpop.f32.mrb[77].mxu0 }
 0x373   :  { %v11364_v54 = vpop.f32.mrb[78].mxu0 }
 0x374   :  { %v11366_v34 = vpop.f32.mrb[79].mxu0 }
 0x379   :  { %v11368_v49 = vpop.f32.mrb[80].mxu0 }
 0x37a   :  { %v11370_v22 = vpop.f32.mrb[81].mxu0 }
 0x37b   :  { %v11372_v6 = vpop.f32.mrb[82].mxu0 }
 0x37c   :  { %v11374_v41 = vpop.f32.mrb[83].mxu0 }
 0x381   :  { %v11376_v3 = vpop.f32.mrb[84].mxu0 }
 0x382   :  { %v11378_v24 = vpop.f32.mrb[85].mxu0 }
 0x383   :  { %v11380_v51 = vpop.f32.mrb[86].mxu0 }
 0x384   :  { %v11382_v37 = vpop.f32.mrb[87].mxu0 }
 0x389   :  { %v11384_v26 = vpop.f32.mrb[88].mxu0 }
 0x38a   :  { %v11386_v1 = vpop.f32.mrb[89].mxu0 }
 0x38b   :  { %11868 = vst [vmem:[#allocation47_spill] sm:$0xff] %v11386_v1  ;;  %v11388_v46 = vpop.f32.mrb[90].mxu0  ;;  %v11884_v1 = vld [vmem:[#allocation73_spill] sm:$0xff] }
 0x38c   :  { %11869 = vst [vmem:[#allocation48_spill] sm:$0xff] %v11388_v46  ;;  %v11390_v0 = vpop.f32.mrb[91].mxu0 }
 0x38d   :  { %11870 = vst [vmem:[#allocation75_spill] sm:$0xff] %v11390_v0 }
 0x38f   :  { %v8473_v56 = vpop.f32.mrb[96].mxu1 }
 0x390   :  { %v6648_v11 = vadd.f32 %v8473_v56, %v6616_v52  ;;  %v6162_v2 = vpop.f32.mrb[97].mxu1  ;;  %v6618_v52 = vmul.f32 %v5885_v15, %v11880_v38  ;;  %v11881_v56 = vld [vmem:[#allocation35_spill] sm:$0xff] }
 0x391   :  { %v6646_v21 = vadd.f32 %v6614_v62, %v6162_v2  ;;  %v8474_v55 = vpop.f32.mrb[98].mxu1  ;;  %v11396_v57 = vpop.f32.mrb[92].mxu0  ;;  %v6621_v60 = vmul.f32 %v8444_v53, %v11881_v56  ;;  %v11882_v62 = vld [vmem:[#allocation29_spill] sm:$0xff] }
 0x392   :  { %11875 = vst [vmem:[#allocation23_spill] sm:$0xff] %v11396_v57  ;;  %v6649_v14 = vadd.f32 %v8474_v55, %v6617_v48  ;;  %v6165_v9 = vpop.f32.mrb[99].mxu1  ;;  %v11398_v44 = vpop.f32.mrb[93].mxu0  ;;  %v6619_v13 = vmul.f32 %v5888_v18, %v11882_v62 }
 0x393   :  { %11876 = vst [vmem:[#allocation51_spill] sm:$0xff] %v11398_v44  ;;  %v6647_v59 = vadd.f32 %v6615_v61, %v6165_v9  ;;  %v11400_v0 = vpop.f32.mrb[94].mxu0  ;;  %v11883_v61 = vld [vmem:[#allocation74_spill] sm:$0xff] }
 0x394   :  { %11877 = vst [vmem:[#allocation25_spill] sm:$0xff] %v11400_v0  ;;  %v11402_v42 = vpop.f32.mrb[95].mxu0 }
 0x395   :  { %11878 = vst [vmem:[#allocation28_spill] sm:$0xff] %v11402_v42 }
 0x397   :  { %v8477_v19 = vpop.f32.mrb[100].mxu1 }
 0x398   :  { %v6652_v2 = vadd.f32 %v8477_v19, %v6620_v20  ;;  %v6178_v45 = vpop.f32.mrb[101].mxu1  ;;  %v11885_v20 = vld [vmem:[#allocation42_spill] sm:$0xff] }
 0x399   :  { %v6650_v55 = vadd.f32 %v6618_v52, %v6178_v45  ;;  %v8478_v48 = vpop.f32.mrb[102].mxu1  ;;  %v8507_v57 = vpop.f32.mrb[96].mxu0  ;;  %v6624_v19 = vmul.f32 %v8447_v4, %v11885_v20  ;;  %v11886_v52 = vld [vmem:[#allocation37_spill] sm:$0xff] }
 0x39a   :  { %v6653_v44 = vadd.f32 %v8478_v48, %v6621_v60  ;;  %v6181_v9 = vpop.f32.mrb[103].mxu1  ;;  %v6680_v0 = vmul.f32 %v8507_v57, %v11883_v61  ;;  %v6455_v46 = vpop.f32.mrb[97].mxu0  ;;  %v6622_v45 = vmul.f32 %v5901_v43, %v11886_v52  ;;  %v11887_v57 = vld [vmem:[#allocation45_spill] sm:$0xff] }
 0x39b   :  { %v6651_v42 = vadd.f32 %v6619_v13, %v6181_v9  ;;  %v6678_v63 = vmul.f32 %v6455_v46, %v11884_v1  ;;  %v8508_v32 = vpop.f32.mrb[98].mxu0  ;;  %v6625_v61 = vmul.f32 %v8448_v8, %v11887_v57  ;;  %v11891_v57 = vld [vmem:[#allocation53_spill] sm:$0xff] }
 0x39c   :  { %v6712_v15 = vadd.f32 %v6680_v0, %v6648_v11  ;;  %v6681_v38 = vmul.f32 %v8508_v32, %v11084_v50  ;;  %v6458_v53 = vpop.f32.mrb[99].mxu0  ;;  %v11888_v11 = vld [vmem:[#allocation41_spill] sm:$0xff] }
 0x39d   :  { %v6710_v56 = vadd.f32 %v6678_v63, %v6646_v21  ;;  %v6679_v18 = vmul.f32 %v6458_v53, %v11068_v28  ;;  %v6623_v50 = vmul.f32 %v11358_v23, %v11888_v11 }
 0x39e   :  { %v7487_v60 = vpack.c.bf16 %v6712_v15, %v6712_v15  ;;  %v6713_v62 = vadd.f32 %v6681_v38, %v6649_v14 }
 0x39f   :  { %v8481_v48 = vpop.f32.mrb[104].mxu1  ;;  %v7485_v13 = vpack.c.bf16 %v6710_v56, %v6710_v56  ;;  %v6711_v9 = vadd.f32 %v6679_v18, %v6647_v59 }
 0x3a0   :  { %v6656_v1 = vadd.f32 %v8481_v48, %v6624_v19  ;;  %v6194_v46 = vpop.f32.mrb[105].mxu1  ;;  %6873 = vst.msk [vmem:[#allocation14 + $0x88] sm:$0xf] %vm676_vm2, %v7487_v60  ;;  %v7488_v4 = vpack.c.bf16 %v6713_v62, %v6713_v62  ;;  %v11889_v19 = vld [vmem:[#allocation50_spill] sm:$0xff] }
 0x3a1   :  { %v6654_v21 = vadd.f32 %v6622_v45, %v6194_v46  ;;  %v8482_v0 = vpop.f32.mrb[106].mxu1  ;;  %6871 = vst.msk [vmem:[#allocation14 + $0x80] sm:$0xf] %vm676_vm2, %v7485_v13  ;;  %v7486_v28 = vpack.c.bf16 %v6711_v9, %v6711_v9  ;;  %v8511_v43 = vpop.f32.mrb[100].mxu0  ;;  %v6628_v56 = vmul.f32 %v11360_v27, %v11889_v19  ;;  %v11890_v45 = vld [vmem:[#allocation46_spill] sm:$0xff]  ;;  %v11892_v9 = vld [vmem:[#allocation49_spill] sm:$0xff] }
 0x3a2   :  { %v6657_v14 = vadd.f32 %v8482_v0, %v6625_v61  ;;  %v6197_v63 = vpop.f32.mrb[107].mxu1  ;;  %6874 = vst.msk [vmem:[#allocation14 + $0x8c] sm:$0xf] %vm676_vm2, %v7488_v4  ;;  %v6684_v59 = vmul.f32 %v8511_v43, %v11122_v17  ;;  %v6471_v8 = vpop.f32.mrb[101].mxu0  ;;  %v6626_v17 = vmul.f32 %v11362_v39, %v11890_v45  ;;  %v6627_v46 = vmul.f32 %v11366_v34, %v11892_v9  ;;  %v11896_v45 = vld [vmem:[#allocation58_spill] sm:$0xff] }
 0x3a3   :  { %v6655_v32 = vadd.f32 %v6623_v50, %v6197_v63  ;;  %6872 = vst.msk [vmem:[#allocation14 + $0x84] sm:$0xf] %vm676_vm2, %v7486_v28  ;;  %v6682_v23 = vmul.f32 %v6471_v8, %v11097_v25  ;;  %v8512_v15 = vpop.f32.mrb[102].mxu0  ;;  %v6629_v25 = vmul.f32 %v11364_v54, %v11891_v57 }
 0x3a4   :  { %v6716_v38 = vadd.f32 %v6684_v59, %v6652_v2  ;;  %v6685_v53 = vmul.f32 %v8512_v15, %v11125_v33  ;;  %v6474_v20 = vpop.f32.mrb[103].mxu0  ;;  %v11893_v59 = vld [vmem:[#allocation62_spill] sm:$0xff] }
 0x3a5   :  { %v6714_v18 = vadd.f32 %v6682_v23, %v6650_v55  ;;  %v6683_v52 = vmul.f32 %v6474_v20, %v11102_v47  ;;  %v6632_v8 = vmul.f32 %v11368_v49, %v11893_v59 }
 0x3a6   :  { %v7491_v60 = vpack.c.bf16 %v6716_v38, %v6716_v38  ;;  %v6717_v62 = vadd.f32 %v6685_v53, %v6653_v44  ;;  %v11894_v38 = vld [vmem:[#allocation54_spill] sm:$0xff] }
 0x3a7   :  { %v8485_v48 = vpop.f32.mrb[108].mxu1  ;;  %v7489_v61 = vpack.c.bf16 %v6714_v18, %v6714_v18  ;;  %v6715_v2 = vadd.f32 %v6683_v52, %v6651_v42 }
 0x3a8   :  { %v6660_v13 = vadd.f32 %v8485_v48, %v6628_v56  ;;  %v6210_v33 = vpop.f32.mrb[109].mxu1  ;;  %6877 = vst.msk [vmem:[#allocation14 + $0x98] sm:$0xf] %vm676_vm2, %v7491_v60  ;;  %v7492_v27 = vpack.c.bf16 %v6717_v62, %v6717_v62  ;;  %v11895_v56 = vld [vmem:[#allocation31_spill] sm:$0xff] }
 0x3a9   :  { %v6658_v47 = vadd.f32 %v6626_v17, %v6210_v33  ;;  %v8486_v55 = vpop.f32.mrb[110].mxu1  ;;  %6875 = vst.msk [vmem:[#allocation14 + $0x90] sm:$0xf] %vm676_vm2, %v7489_v61  ;;  %v7490_v39 = vpack.c.bf16 %v6715_v2, %v6715_v2  ;;  %v8515_v44 = vpop.f32.mrb[104].mxu0  ;;  %v6631_v17 = vmul.f32 %v11374_v41, %v11896_v45  ;;  %v11897_v33 = vld [vmem:[#allocation63_spill] sm:$0xff]  ;;  %v11904_v45 = vld [vmem:[#allocation68_spill] sm:$0xff] }
 0x3aa   :  { %v6661_v11 = vadd.f32 %v8486_v55, %v6629_v25  ;;  %v6213_v50 = vpop.f32.mrb[111].mxu1  ;;  %6878 = vst.msk [vmem:[#allocation14 + $0x9c] sm:$0xf] %vm676_vm2, %v7492_v27  ;;  %v6688_v54 = vmul.f32 %v8515_v44, %v11156_v30  ;;  %v6487_v42 = vpop.f32.mrb[105].mxu0  ;;  %v6630_v30 = vmul.f32 %v11370_v22, %v11894_v38  ;;  %v6636_v9 = vmul.f32 %v11376_v3, %v11897_v33  ;;  %v11898_v55 = vld [vmem:[#allocation32_spill] sm:$0xff] }
 0x3ab   :  { %v6659_v4 = vadd.f32 %v6627_v46, %v6213_v50  ;;  %6876 = vst.msk [vmem:[#allocation14 + $0x94] sm:$0xf] %vm676_vm2, %v7490_v39  ;;  %v6686_v34 = vmul.f32 %v6487_v42, %v11138_v40  ;;  %v8516_v0 = vpop.f32.mrb[106].mxu0  ;;  %v6633_v40 = vmul.f32 %v11372_v6, %v11895_v56  ;;  %v11902_v56 = vld [vmem:[#allocation65_spill] sm:$0xff] }
 0x3ac   :  { %v6720_v28 = vadd.f32 %v6688_v54, %v6656_v1  ;;  %v6689_v43 = vmul.f32 %v8516_v0, %v11166_v16  ;;  %v6490_v63 = vpop.f32.mrb[107].mxu0  ;;  %v11899_v54 = vld [vmem:[#allocation64_spill] sm:$0xff] }
 0x3ad   :  { %v6718_v23 = vadd.f32 %v6686_v34, %v6654_v21  ;;  %v6687_v15 = vmul.f32 %v6490_v63, %v11150_v36  ;;  %v11900_v0 = vld [vmem:[#allocation36_spill] sm:$0xff] }
 0x3ae   :  { %v7495_v53 = vpack.c.bf16 %v6720_v28, %v6720_v28  ;;  %v6721_v20 = vadd.f32 %v6689_v43, %v6657_v14  ;;  %v6635_v28 = vmul.f32 %v11382_v37, %v11900_v0 }
 0x3af   :  { %v8489_v19 = vpop.f32.mrb[112].mxu1  ;;  %v7493_v18 = vpack.c.bf16 %v6718_v23, %v6718_v23  ;;  %v6719_v1 = vadd.f32 %v6687_v15, %v6655_v32 }
 0x3b0   :  { %v6664_v52 = vadd.f32 %v8489_v19, %v6632_v8  ;;  %v6226_v16 = vpop.f32.mrb[113].mxu1  ;;  %6881 = vst.msk [vmem:[#allocation14 + $0xa8] sm:$0xf] %vm676_vm2, %v7495_v53  ;;  %v7496_v49 = vpack.c.bf16 %v6721_v20, %v6721_v20 }
 0x3b1   :  { %v6662_v36 = vadd.f32 %v6630_v30, %v6226_v16  ;;  %v8490_v21 = vpop.f32.mrb[114].mxu1  ;;  %6879 = vst.msk [vmem:[#allocation14 + $0xa0] sm:$0xf] %vm676_vm2, %v7493_v18  ;;  %v7494_v22 = vpack.c.bf16 %v6719_v1, %v6719_v1  ;;  %v8519_v14 = vpop.f32.mrb[108].mxu0  ;;  %v11901_v30 = vld [vmem:[#allocation67_spill] sm:$0xff] }
 0x3b2   :  { %v6665_v60 = vadd.f32 %v8490_v21, %v6633_v40  ;;  %v6229_v62 = vpop.f32.mrb[115].mxu1  ;;  %6882 = vst.msk [vmem:[#allocation14 + $0xac] sm:$0xf] %vm676_vm2, %v7496_v49  ;;  %v6692_v6 = vmul.f32 %v8519_v14, %v11196_v7  ;;  %v6503_v32 = vpop.f32.mrb[109].mxu0  ;;  %v6634_v7 = vmul.f32 %v11378_v24, %v11898_v55  ;;  %v6640_v53 = vmul.f32 %v11384_v26, %v11901_v30  ;;  %v11903_v40 = vld [vmem:[#allocation47_spill] sm:$0xff] }
 0x3b3   :  { %v6663_v48 = vadd.f32 %v6631_v17, %v6229_v62  ;;  %6880 = vst.msk [vmem:[#allocation14 + $0xa4] sm:$0xf] %vm676_vm2, %v7494_v22  ;;  %v6690_v41 = vmul.f32 %v6503_v32, %v11179_v12  ;;  %v8520_v57 = vpop.f32.mrb[110].mxu0  ;;  %v6637_v12 = vmul.f32 %v11380_v51, %v11899_v54  ;;  %v11905_v17 = vld [vmem:[#allocation48_spill] sm:$0xff]  ;;  %v11906_v22 = vld [vmem:[#allocation66_spill] sm:$0xff]  ;;  %v11907_v14 = vld [vmem:[#allocation75_spill] sm:$0xff] }
 0x3b4   :  { %v6724_v25 = vadd.f32 %v6692_v6, %v6660_v13  ;;  %v6693_v61 = vmul.f32 %v8520_v57, %v11201_v10  ;;  %v6506_v2 = vpop.f32.mrb[111].mxu0  ;;  %v6639_v62 = vmul.f32 %v11907_v14, %v11906_v22  ;;  %v11908_v57 = vld [vmem:[#allocation27_spill] sm:$0xff] }
 0x3b5   :  { %v6722_v46 = vadd.f32 %v6690_v41, %v6658_v47  ;;  %v6691_v27 = vmul.f32 %v6506_v2, %v11184_v29  ;;  %v11909_v2 = vld [vmem:[#allocation38_spill] sm:$0xff] }
 0x3b6   :  { %v7499_v39 = vpack.c.bf16 %v6724_v25, %v6724_v25  ;;  %v6725_v44 = vadd.f32 %v6693_v61, %v6661_v11 }
 0x3b7   :  { %v8493_v50 = vpop.f32.mrb[116].mxu1  ;;  %v7497_v42 = vpack.c.bf16 %v6722_v46, %v6722_v46  ;;  %v6723_v13 = vadd.f32 %v6691_v27, %v6659_v4  ;;  %v11910_v27 = vld [vmem:[#allocation56_spill] sm:$0xff] }
 0x3b8   :  { %v6668_v34 = vadd.f32 %v8493_v50, %v6636_v9  ;;  %v6242_v10 = vpop.f32.mrb[117].mxu1  ;;  %6885 = vst.msk [vmem:[#allocation14 + $0xb8] sm:$0xf] %vm676_vm2, %v7499_v39  ;;  %v7500_v3 = vpack.c.bf16 %v6725_v44, %v6725_v44  ;;  %v11911_v39 = vld [vmem:[#allocation71_spill] sm:$0xff] }
 0x3b9   :  { %v6666_v29 = vadd.f32 %v6634_v7, %v6242_v10  ;;  %v8494_v47 = vpop.f32.mrb[118].mxu1  ;;  %6883 = vst.msk [vmem:[#allocation14 + $0xb0] sm:$0xf] %vm676_vm2, %v7497_v42  ;;  %v7498_v24 = vpack.c.bf16 %v6723_v13, %v6723_v13  ;;  %v8523_v11 = vpop.f32.mrb[112].mxu0  ;;  %v11912_v44 = vld [vmem:[#allocation23_spill] sm:$0xff]  ;;  %v11914_v13 = vld [vmem:[#allocation69_spill] sm:$0xff] }
 0x3ba   :  { %v6669_v43 = vadd.f32 %v8494_v47, %v6637_v12  ;;  %v6245_v63 = vpop.f32.mrb[119].mxu1  ;;  %6886 = vst.msk [vmem:[#allocation14 + $0xbc] sm:$0xf] %vm676_vm2, %v7500_v3  ;;  %v6696_v51 = vmul.f32 %v8523_v11, %v11230_v31  ;;  %v6519_v4 = vpop.f32.mrb[113].mxu0  ;;  %v6638_v31 = vmul.f32 %v11903_v40, %v11902_v56  ;;  %v6644_v50 = vmul.f32 %v11912_v44, %v11911_v39  ;;  %v11913_v12 = vld [vmem:[#allocation52_spill] sm:$0xff]  ;;  %v11915_v10 = vld [vmem:[#allocation51_spill] sm:$0xff] }
 0x3bb   :  { %v6667_v59 = vadd.f32 %v6635_v28, %v6245_v63  ;;  %6884 = vst.msk [vmem:[#allocation14 + $0xb4] sm:$0xf] %vm676_vm2, %v7498_v24  ;;  %v6694_v37 = vmul.f32 %v6519_v4, %v11212_v35  ;;  %v8524_v8 = vpop.f32.mrb[114].mxu0  ;;  %v6641_v35 = vmul.f32 %v11905_v17, %v11904_v45  ;;  %v6642_v0 = vmul.f32 %v11915_v10, %v11914_v13  ;;  %v11916_v24 = vld [vmem:[#allocation72_spill] sm:$0xff]  ;;  %v11917_v11 = vld [vmem:[#allocation25_spill] sm:$0xff]  ;;  %v11920_v56 = vld [vmem:[#allocation39_spill] sm:$0xff] }
 0x3bc   :  { %v6728_v23 = vadd.f32 %v6696_v51, %v6664_v52  ;;  %v6697_v15 = vmul.f32 %v8524_v8, %v11236_v58  ;;  %v6522_v38 = vpop.f32.mrb[115].mxu0  ;;  %v6645_v63 = vmul.f32 %v11917_v11, %v11916_v24  ;;  %v11918_v8 = vld [vmem:[#allocation70_spill] sm:$0xff]  ;;  %v11922_v17 = vld [vmem:[#allocation57_spill] sm:$0xff] }
 0x3bd   :  { %v6726_v20 = vadd.f32 %v6694_v37, %v6662_v36  ;;  %v6695_v19 = vmul.f32 %v6522_v38, %v11220_v5 }
 0x3be   :  { %v7503_v18 = vpack.c.bf16 %v6728_v23, %v6728_v23  ;;  %v6729_v1 = vadd.f32 %v6697_v15, %v6665_v60  ;;  %v11919_v23 = vld [vmem:[#allocation28_spill] sm:$0xff] }
 0x3bf   :  { %v8497_v16 = vpop.f32.mrb[120].mxu1  ;;  %v7501_v49 = vpack.c.bf16 %v6726_v20, %v6726_v20  ;;  %v6727_v52 = vadd.f32 %v6695_v19, %v6663_v48  ;;  %v6643_v15 = vmul.f32 %v11919_v23, %v11918_v8 }
 0x3c0   :  { %v6672_v21 = vadd.f32 %v8497_v16, %v6640_v53  ;;  %v6258_v58 = vpop.f32.mrb[121].mxu1  ;;  %6889 = vst.msk [vmem:[#allocation14 + $0xc8] sm:$0xf] %vm676_vm2, %v7503_v18  ;;  %v7504_v26 = vpack.c.bf16 %v6729_v1, %v6729_v1  ;;  %v11921_v18 = vld [vmem:[#allocation33_spill] sm:$0xff] }
 0x3c1   :  { %v6670_v5 = vadd.f32 %v6638_v31, %v6258_v58  ;;  %v8498_v36 = vpop.f32.mrb[122].mxu1  ;;  %6887 = vst.msk [vmem:[#allocation14 + $0xc0] sm:$0xf] %vm676_vm2, %v7501_v49  ;;  %v7502_v6 = vpack.c.bf16 %v6727_v52, %v6727_v52  ;;  %v8527_v60 = vpop.f32.mrb[116].mxu0  ;;  %v11923_v58 = vld [vmem:[#allocation34_spill] sm:$0xff] }
 0x3c2   :  { %v6673_v32 = vadd.f32 %v8498_v36, %v6641_v35  ;;  %v6261_v41 = vpop.f32.mrb[123].mxu1  ;;  %6890 = vst.msk [vmem:[#allocation14 + $0xcc] sm:$0xf] %vm676_vm2, %v7504_v26  ;;  %v6700_v48 = vmul.f32 %v8527_v60, %v11908_v57  ;;  %v6535_v25 = vpop.f32.mrb[117].mxu0 }
 0x3c3   :  { %v6671_v61 = vadd.f32 %v6639_v62, %v6261_v41  ;;  %6888 = vst.msk [vmem:[#allocation14 + $0xc4] sm:$0xf] %vm676_vm2, %v7502_v6  ;;  %v6698_v33 = vmul.f32 %v6535_v25, %v11909_v2  ;;  %v8528_v9 = vpop.f32.mrb[118].mxu0 }
 0x3c4   :  { %v6732_v46 = vadd.f32 %v6700_v48, %v6668_v34  ;;  %v6701_v55 = vmul.f32 %v8528_v9, %v11910_v27  ;;  %v6538_v7 = vpop.f32.mrb[119].mxu0  ;;  %v11927_v27 = vld [vmem:[#allocation61_spill] sm:$0xff] }
 0x3c5   :  { %v6730_v54 = vadd.f32 %v6698_v33, %v6666_v29  ;;  %v6699_v42 = vmul.f32 %v6538_v7, %v11913_v12  ;;  %v11926_v33 = vld [vmem:[#allocation44_spill] sm:$0xff] }
 0x3c6   :  { %v7507_v28 = vpack.c.bf16 %v6732_v46, %v6732_v46  ;;  %v6733_v3 = vadd.f32 %v6701_v55, %v6669_v43 }
 0x3c7   :  { %v8501_v47 = vpop.f32.mrb[124].mxu1  ;;  %v7505_v51 = vpack.c.bf16 %v6730_v54, %v6730_v54  ;;  %v6731_v34 = vadd.f32 %v6699_v42, %v6667_v59 }
 0x3c8   :  { %v6676_v4 = vadd.f32 %v8501_v47, %v6644_v50  ;;  %v6274_v37 = vpop.f32.mrb[125].mxu1  ;;  %6893 = vst.msk [vmem:[#allocation14 + $0xd8] sm:$0xf] %vm676_vm2, %v7507_v28  ;;  %v7508_v29 = vpack.c.bf16 %v6733_v3, %v6733_v3 }
 0x3c9   :  { %v6674_v38 = vadd.f32 %v6642_v0, %v6274_v37  ;;  %v8502_v30 = vpop.f32.mrb[126].mxu1  ;;  %6891 = vst.msk [vmem:[#allocation14 + $0xd0] sm:$0xf] %vm676_vm2, %v7505_v51  ;;  %v7506_v53 = vpack.c.bf16 %v6731_v34, %v6731_v34  ;;  %v8531_v43 = vpop.f32.mrb[120].mxu0 }
 0x3ca   :  { %v6677_v20 = vadd.f32 %v8502_v30, %v6645_v63  ;;  %v6277_v19 = vpop.f32.mrb[127].mxu1  ;;  %6894 = vst.msk [vmem:[#allocation14 + $0xdc] sm:$0xf] %vm676_vm2, %v7508_v29  ;;  %v6704_v59 = vmul.f32 %v8531_v43, %v11920_v56  ;;  %v6551_v40 = vpop.f32.mrb[121].mxu0 }
 0x3cb   :  { %v6675_v31 = vadd.f32 %v6643_v15, %v6277_v19  ;;  %6892 = vst.msk [vmem:[#allocation14 + $0xd4] sm:$0xf] %vm676_vm2, %v7506_v53  ;;  %v6702_v1 = vmul.f32 %v6551_v40, %v11921_v18  ;;  %v8532_v16 = vpop.f32.mrb[122].mxu0 }
 0x3cc   :  { %v6736_v45 = vadd.f32 %v6704_v59, %v6672_v21  ;;  %v6705_v35 = vmul.f32 %v8532_v16, %v11922_v17  ;;  %v6554_v49 = vpop.f32.mrb[123].mxu0  ;;  %v11924_v21 = vld [vmem:[#allocation43_spill] sm:$0xff] }
 0x3cd   :  { %v6734_v52 = vadd.f32 %v6702_v1, %v6670_v5  ;;  %v6703_v22 = vmul.f32 %v6554_v49, %v11923_v58  ;;  %v11925_v5 = vld [vmem:[#allocation40_spill] sm:$0xff] }
 0x3ce   :  { %v7511_v14 = vpack.c.bf16 %v6736_v45, %v6736_v45  ;;  %v6737_v62 = vadd.f32 %v6705_v35, %v6673_v32 }
 0x3cf   :  { %v7509_v26 = vpack.c.bf16 %v6734_v52, %v6734_v52  ;;  %v6735_v36 = vadd.f32 %v6703_v22, %v6671_v61 }
 0x3d0   :  { %6897 = vst.msk [vmem:[#allocation14 + $0xe8] sm:$0xf] %vm676_vm2, %v7511_v14  ;;  %v7512_v6 = vpack.c.bf16 %v6737_v62, %v6737_v62 }
 0x3d1   :  { %6895 = vst.msk [vmem:[#allocation14 + $0xe0] sm:$0xf] %vm676_vm2, %v7509_v26  ;;  %v7510_v60 = vpack.c.bf16 %v6735_v36, %v6735_v36  ;;  %v8535_v41 = vpop.f32.mrb[124].mxu0 }
 0x3d2   :  { %6898 = vst.msk [vmem:[#allocation14 + $0xec] sm:$0xf] %vm676_vm2, %v7512_v6  ;;  %v6708_v57 = vmul.f32 %v8535_v41, %v11924_v21  ;;  %v6567_v48 = vpop.f32.mrb[125].mxu0 }
 0x3d3   :  { %6896 = vst.msk [vmem:[#allocation14 + $0xe4] sm:$0xf] %vm676_vm2, %v7510_v60  ;;  %v6706_v25 = vmul.f32 %v6567_v48, %v11925_v5  ;;  %v8536_v2 = vpop.f32.mrb[126].mxu0 }
 0x3d4   :  { %v6740_v32 = vadd.f32 %v6708_v57, %v6676_v4  ;;  %v6709_v61 = vmul.f32 %v8536_v2, %v11926_v33  ;;  %v6570_v9 = vpop.f32.mrb[127].mxu0 }
 0x3d5   :  { %v6738_v46 = vadd.f32 %v6706_v25, %v6674_v38  ;;  %v6707_v55 = vmul.f32 %v6570_v9, %v11927_v27 }
 0x3d6   :  { %v7515_v7 = vpack.c.bf16 %v6740_v32, %v6740_v32  ;;  %v6741_v39 = vadd.f32 %v6709_v61, %v6677_v20 }
 0x3d7   :  { %v7513_v44 = vpack.c.bf16 %v6738_v46, %v6738_v46  ;;  %v6739_v50 = vadd.f32 %v6707_v55, %v6675_v31 }
 0x3d8   :  { %6901 = vst.msk [vmem:[#allocation14 + $0xf8] sm:$0xf] %vm676_vm2, %v7515_v7  ;;  %v7516_v54 = vpack.c.bf16 %v6741_v39, %v6741_v39 }
 0x3d9   :  { %6899 = vst.msk [vmem:[#allocation14 + $0xf0] sm:$0xf] %vm676_vm2, %v7513_v44  ;;  %v7514_v12 = vpack.c.bf16 %v6739_v50, %v6739_v50 }
 0x3da   :  { %6902 = vst.msk [vmem:[#allocation14 + $0xfc] sm:$0xf] %vm676_vm2, %v7516_v54 }
 0x3db   :  { %6900 = vst.msk [vmem:[#allocation14 + $0xf4] sm:$0xf] %vm676_vm2, %v7514_v12 }
 0x3dc   :  { %9126 = shalt.err (!%p9123_p4)
}
 0x3dd   :  { %s9127_s19 = scalar_lea.hbm %s11538_s6, 4096 }
 0x3de   :  { %p9128_p5 = scmp.ne.s32.totalorder %s11538_s6, %s9127_s19  ;;  %p9131_p6 = scmp.lt.u32.totalorder %s9127_s19, %s11538_s6 }
 0x3e0   :  { %p9133_p7 = pnand %p9131_p6, %p9128_p5 }
 0x3e2   :  { %9136 = shalt.err (!%p9133_p7)
}
 0x3e3   :  { %6914 = dma.vmem_to_hbm [thread:$0]  %s6909_s15, 4096, %s11538_s6, [#allocation5], %s9162_s10, %s9162_s10, %s9163_s11  }
 0x3e4   :  { %9145 = dma.done.wait [#allocation5], 4096  }
 0x3e5   :  { %9146 = vsyncadd [#allocation5], 4294963200 }
 0x3e6   :  { %9147 = dma.done.wait [#allocation16], 4096  }
 0x3e7   :  { %9148 = vsyncadd [#allocation16], 4294963200 }
 0x3e8   :  { %6933 = vsyncpa [#allocation4], 1 }
 0x3e9   :  { %6934 = vsyncpa [#allocation7], 1 }
 0x3ea   :  { %6935 = vsyncpa [#allocation10], 1 }
 0x3eb   :  { %6936 = vsyncpa [#allocation13], 1 }
 0x3ec   :  { %6937 = vsyncpa [#allocation5], 1 }
 0x3ed   :  { %6938 = vsyncpa [#allocation16], 1 }

</bundles_post_ra>
